<compile_context>
chip_gen: v5e
topology: v5e:2x2
jax: 0.10.0
libtpu: 0.0.40
codegen_flags: <defaults>
</compile_context>

<pallas_src>
import functools
import math

import jax
import jax.numpy as jnp
from jax import lax
from jax.experimental import pallas as pl
from jax.experimental.pallas import tpu as pltpu

LN_EPS = 1e-5   # nn.LayerNorm default
BN_EPS = 1e-5   # nn.BatchNorm1d default


# ----------------------------------------------------------------------------- kernel
def _layer_norm(x, w, b):
    mu = jnp.mean(x, axis=-1, keepdims=True)
    var = jnp.mean((x - mu) ** 2, axis=-1, keepdims=True)
    return (x - mu) * lax.rsqrt(var + LN_EPS) * w + b


def _transformer_kernel(x_ref, wqkv_ref, wo_ref, w1_ref, w2_ref,
                        bqkv_ref, b1_ref, vecs_ref, bnss_ref, out_ref,
                        *, nhead, layers, batch, seq):
    """Full TransformerEncoder (all layers) + folded BatchNorm for the whole batch.

    x_ref:    [B*S, D] f32 activations (batch flattened in the wrapper)
    wqkv_ref: [L, D, 3D] bf16 (1/sqrt(hd) folded into the Q columns)
    wo_ref:   [L, D, D]  bf16
    w1_ref:   [L, D, FF] bf16
    w2_ref:   [L, D, FF] bf16 (natural nn.Linear(FF, D).weight layout, lane-dense FF)
    bqkv_ref: [L, 1, 3D] f32 (Q part pre-scaled)
    b1_ref:   [L, 1, FF] f32
    vecs_ref: [L, 8, D]  f32 rows: 0=bo 1=ln1w 2=ln1b 3=b2 4=ln2w 5=ln2b 6,7=pad
    bnss_ref: [B*S, 2]   f32 cols: 0=BN scale 1=BN shift (per flattened row)
    """
    x = x_ref[...]                                  # [N, D] f32, N = B*S
    N, D = x.shape
    hd = D // nhead

    for l in range(layers):                         # static unroll over layers
        vl = vecs_ref[l]                            # [8, D]
        bo,  ln1w, ln1b = vl[0:1, :], vl[1:2, :], vl[2:3, :]
        b2,  ln2w, ln2b = vl[3:4, :], vl[4:5, :], vl[5:6, :]

        # ---- packed QKV projection (head scale pre-folded into weights/bias) ----
        qkv = jnp.dot(x.astype(jnp.bfloat16), wqkv_ref[l],
                      preferred_element_type=jnp.float32) + bqkv_ref[l]   # [N, 3D] f32
        wo = wo_ref[l]                              # [D, D] bf16

        attn = None
        for h in range(nhead):
            # f32 slices + sublane-aligned reshape to [B, S, hd], then cast for the MXU
            qh = qkv[:, h * hd:(h + 1) * hd].reshape(batch, seq, hd).astype(jnp.bfloat16)
            kh = qkv[:, D + h * hd:D + (h + 1) * hd].reshape(batch, seq, hd).astype(jnp.bfloat16)
            vh = qkv[:, 2 * D + h * hd:2 * D + (h + 1) * hd].reshape(batch, seq, hd).astype(jnp.bfloat16)
            # s[b] = qh[b] @ kh[b]^T  ('bqd,bkd->bqk', same pattern as flash attention)
            s = lax.dot_general(qh, kh, (((2,), (2,)), ((0,), (0,))),
                                preferred_element_type=jnp.float32)       # [B, S, S]
            s = s - jnp.max(s, axis=-1, keepdims=True)
            p = jnp.exp(s)
            p = p / jnp.sum(p, axis=-1, keepdims=True)                    # exact softmax
            # oh[b] = p[b] @ vh[b]   ('bqk,bkd->bqd')
            oh = lax.dot_general(p.astype(jnp.bfloat16), vh,
                                 (((2,), (1,)), ((0,), (0,))),
                                 preferred_element_type=jnp.float32)      # [B, S, hd]
            # fold the output projection per head (sublane slice of W_o) -> no lane concat
            contrib = jnp.dot(oh.reshape(N, hd).astype(jnp.bfloat16),
                              wo[h * hd:(h + 1) * hd, :],
                              preferred_element_type=jnp.float32)         # [N, D]
            attn = contrib if attn is None else attn + contrib
        attn = attn + bo

        # ---- residual + LayerNorm1 ----
        y = _layer_norm(x + attn, ln1w, ln1b)

        # ---- feed-forward: Linear -> ReLU -> Linear (dropout = identity in eval) ----
        h1 = jnp.dot(y.astype(jnp.bfloat16), w1_ref[l],
                     preferred_element_type=jnp.float32) + b1_ref[l]
        h1 = jnp.maximum(h1, 0.0)
        # w2 kept in natural [D, FF] layout (lane-dense FF); contract over FF of both
        # operands -- identical dimension-numbers pattern to flash q.kT, no weight transpose.
        ff = lax.dot_general(h1.astype(jnp.bfloat16), w2_ref[l],
                             (((1,), (1,)), ((), ())),
                             preferred_element_type=jnp.float32) + b2

        # ---- residual + LayerNorm2 ----
        x = _layer_norm(y + ff, ln2w, ln2b)

    # ---- folded BatchNorm1d(days) eval-mode affine epilogue ----
    out_ref[...] = x * bnss_ref[:, 0:1] + bnss_ref[:, 1:2]


# ----------------------------------------------------------------------------- wrapper
def prep_kernel_params(p, bn, nhead, batch):
    """One-time weight transform: fold head scale, cast big weights to bf16, pack vectors."""
    L, D, _ = p["wo_t"].shape
    hd = D // nhead
    scale = 1.0 / math.sqrt(hd)
    wqkv = p["wqkv_t"].at[:, :, :D].multiply(scale)          # fold 1/sqrt(hd) into Q cols
    bqkv = p["bqkv"].at[:, :, :D].multiply(scale)

    zeros = jnp.zeros_like(p["bo"])                          # [L, 1, D]
    vecs = jnp.concatenate([p["bo"], p["ln1w"], p["ln1b"],
                            p["b2"], p["ln2w"], p["ln2b"],
                            zeros, zeros], axis=1)           # [L, 8, D]

    bn_scale = bn["gamma"] * lax.rsqrt(bn["var"] + BN_EPS)   # [S, 1]
    bn_shift = bn["beta"] - bn["mean"] * bn_scale            # [S, 1]
    bnss = jnp.concatenate([jnp.tile(bn_scale, (batch, 1)),
                            jnp.tile(bn_shift, (batch, 1))], axis=1)   # [B*S, 2]

    return {
        "wqkv": wqkv.astype(jnp.bfloat16),
        "wo":   p["wo_t"].astype(jnp.bfloat16),
        "w1":   p["w1_t"].astype(jnp.bfloat16),
        "w2":   p["w2"].astype(jnp.bfloat16),
        "bqkv": bqkv,
        "b1":   p["b1"],
        "vecs": vecs,
        "bnss": bnss,
    }


def transformer_forward(x, kp, nhead):
    B, S, D = x.shape
    L = kp["wqkv"].shape[0]
    FF = kp["w1"].shape[2]
    N = B * S
    assert D % nhead == 0, "d_model must be divisible by nhead"

    def spec(shape):
        n = len(shape)
        return pl.BlockSpec(shape, lambda i, _n=n: (0,) * _n)

    kernel = functools.partial(_transformer_kernel, nhead=nhead, layers=L,
                               batch=B, seq=S)
    out = pl.pallas_call(
        kernel,
        out_shape=jax.ShapeDtypeStruct((N, D), jnp.float32),
        grid=(1,),                                    # single step: whole batch at once
        in_specs=[
            spec((N, D)),                             # activations (flattened batch)
            spec((L, D, 3 * D)),                      # wqkv (bf16, Q-scaled)
            spec((L, D, D)),                          # wo   (bf16)
            spec((L, D, FF)),                         # w1   (bf16)
            spec((L, D, FF)),                         # w2   (bf16, natural layout)
            spec((L, 1, 3 * D)),                      # bqkv
            spec((L, 1, FF)),                         # b1
            spec((L, 8, D)),                          # packed small per-layer vectors
            spec((N, 2)),                             # packed BN scale/shift
        ],
        out_specs=spec((N, D)),
        compiler_params=pltpu.CompilerParams(
            dimension_semantics=("arbitrary",),
            vmem_limit_bytes=32 * 1024 * 1024),
    )(x.reshape(N, D), kp["wqkv"], kp["wo"], kp["w1"], kp["w2"],
      kp["bqkv"], kp["b1"], kp["vecs"], kp["bnss"])
    return out.reshape(B, S, D)


# ----------------------------------------------------------------------------- params
def init_params(key, layers, days, d_model, dim_ff):
    def nrm(k, shape, s):
        return jax.random.normal(k, shape, jnp.float32) * s

    L = layers
    keys = jax.random.split(key, 16)
    params = {
        # linear weights pre-transposed so the math is x @ W_t + b (except w2: natural [D,FF])
        "wqkv_t": nrm(keys[0], (L, d_model, 3 * d_model), 0.05),
        "bqkv":   nrm(keys[1], (L, 1, 3 * d_model), 0.01),
        "wo_t":   nrm(keys[2], (L, d_model, d_model), 0.05),
        "bo":     nrm(keys[3], (L, 1, d_model), 0.01),
        "ln1w":   1.0 + nrm(keys[4], (L, 1, d_model), 0.02),
        "ln1b":   nrm(keys[5], (L, 1, d_model), 0.02),
        "w1_t":   nrm(keys[6], (L, d_model, dim_ff), 0.05),
        "b1":     nrm(keys[7], (L, 1, dim_ff), 0.01),
        "w2":     nrm(keys[8], (L, d_model, dim_ff), 0.02),   # nn.Linear(FF, D).weight layout
        "b2":     nrm(keys[9], (L, 1, d_model), 0.01),
        "ln2w":   1.0 + nrm(keys[10], (L, 1, d_model), 0.02),
        "ln2b":   nrm(keys[11], (L, 1, d_model), 0.02),
    }
    bn = {
        "gamma": 1.0 + nrm(keys[12], (days, 1), 0.02),
        "beta":  nrm(keys[13], (days, 1), 0.02),
        "mean":  nrm(keys[14], (days, 1), 0.02),
        "var":   1.0 + jax.random.uniform(keys[15], (days, 1), jnp.float32, 0.0, 0.2),
    }
    return params, bn


# ----------------------------------------------------------------------------- reference
def reference_forward(x, p, bn, nhead):
    HP = lax.Precision.HIGHEST
    B, S, D = x.shape
    hd = D // nhead
    L = p["wqkv_t"].shape[0]
    y = x
    for l in range(L):
        qkv = jnp.einsum("bsd,de->bse", y, p["wqkv_t"][l], precision=HP) + p["bqkv"][l, 0]
        q, k, v = qkv[..., :D], qkv[..., D:2 * D], qkv[..., 2 * D:]
        split = lambda t: t.reshape(B, S, nhead, hd).transpose(0, 2, 1, 3)
        qh, kh, vh = split(q) / math.sqrt(hd), split(k), split(v)
        s = jnp.einsum("bhqe,bhke->bhqk", qh, kh, precision=HP)
        pa = jax.nn.softmax(s, axis=-1)
        o = jnp.einsum("bhqk,bhke->bhqe", pa, vh, precision=HP)
        o = o.transpose(0, 2, 1, 3).reshape(B, S, D)
        o = jnp.einsum("bsd,de->bse", o, p["wo_t"][l], precision=HP) + p["bo"][l, 0]
        yr = y + o
        mu = yr.mean(-1, keepdims=True)
        var = ((yr - mu) ** 2).mean(-1, keepdims=True)
        yr = (yr - mu) * lax.rsqrt(var + LN_EPS) * p["ln1w"][l, 0] + p["ln1b"][l, 0]
        h1 = jnp.maximum(
            jnp.einsum("bsd,df->bsf", yr, p["w1_t"][l], precision=HP) + p["b1"][l, 0], 0.0)
        ff = jnp.einsum("bsf,df->bsd", h1, p["w2"][l], precision=HP) + p["b2"][l, 0]
        z = yr + ff
        mu2 = z.mean(-1, keepdims=True)
        var2 = ((z - mu2) ** 2).mean(-1, keepdims=True)
        y = (z - mu2) * lax.rsqrt(var2 + LN_EPS) * p["ln2w"][l, 0] + p["ln2b"][l, 0]
    return ((y - bn["mean"][None]) * lax.rsqrt(bn["var"][None] + BN_EPS)
            * bn["gamma"][None] + bn["beta"][None])


# ----------------------------------------------------------------------------- main
if __name__ == "__main__":
    nhead, layers, days, n_features = 4, 2, 8, 32
    dim_ff = 2048          # nn.TransformerEncoderLayer default dim_feedforward
    batch = 2

    key = jax.random.PRNGKey(0)
    kx, kp = jax.random.split(key)
    x = jax.random.normal(kx, (batch, days, n_features), jnp.float32)
    params, bn_params = init_params(kp, layers, days, n_features, dim_ff)
    kparams = prep_kernel_params(params, bn_params, nhead, batch)

    out = transformer_forward(x, kparams, nhead)
    out = jax.block_until_ready(out)

    ref = reference_forward(x, params, bn_params, nhead)
    assert out.shape == (batch, days, n_features)
    # tolerance covers bf16 matmul operands (weights + activation casts) vs. an f32
    # Precision.HIGHEST reference, compounded over 2 encoder layers
    err = float(jnp.max(jnp.abs(out - ref)))
    assert jnp.allclose(out, ref, atol=2e-2, rtol=2e-2), err
    print("KERNEL_OK")
</pallas_src>

<mosaic_0001>
module attributes {stable_mosaic.version = 11 : i64} {
  func.func @_transformer_kernel(%arg0: i32, %arg1: memref<16x32xf32, #tpu.memory_space<vmem>>, %arg2: memref<2x32x96xbf16, #tpu.memory_space<vmem>>, %arg3: memref<2x32x32xbf16, #tpu.memory_space<vmem>>, %arg4: memref<2x32x2048xbf16, #tpu.memory_space<vmem>>, %arg5: memref<2x32x2048xbf16, #tpu.memory_space<vmem>>, %arg6: memref<2x1x96xf32, #tpu.memory_space<vmem>>, %arg7: memref<2x1x2048xf32, #tpu.memory_space<vmem>>, %arg8: memref<2x8x32xf32, #tpu.memory_space<vmem>>, %arg9: memref<16x2xf32, #tpu.memory_space<vmem>>, %arg10: memref<16x32xf32, #tpu.memory_space<vmem>>) attributes {dimension_semantics = [#tpu.dimension_semantics<arbitrary>], iteration_bounds = array<i64: 1>, scalar_prefetch = 0 : i64, scratch_operands = 0 : i64, tpu.core_type = #tpu.core_type<tc>, window_params = [{pipeline_mode = #tpu.pipeline_mode<synchronous>, transform_indices = @transform_0, window_bounds = array<i64: 16, 32>}, {pipeline_mode = #tpu.pipeline_mode<synchronous>, transform_indices = @transform_1, window_bounds = array<i64: 2, 32, 96>}, {pipeline_mode = #tpu.pipeline_mode<synchronous>, transform_indices = @transform_2, window_bounds = array<i64: 2, 32, 32>}, {pipeline_mode = #tpu.pipeline_mode<synchronous>, transform_indices = @transform_3, window_bounds = array<i64: 2, 32, 2048>}, {pipeline_mode = #tpu.pipeline_mode<synchronous>, transform_indices = @transform_4, window_bounds = array<i64: 2, 32, 2048>}, {pipeline_mode = #tpu.pipeline_mode<synchronous>, transform_indices = @transform_5, window_bounds = array<i64: 2, 1, 96>}, {pipeline_mode = #tpu.pipeline_mode<synchronous>, transform_indices = @transform_6, window_bounds = array<i64: 2, 1, 2048>}, {pipeline_mode = #tpu.pipeline_mode<synchronous>, transform_indices = @transform_7, window_bounds = array<i64: 2, 8, 32>}, {pipeline_mode = #tpu.pipeline_mode<synchronous>, transform_indices = @transform_8, window_bounds = array<i64: 16, 2>}, {pipeline_mode = #tpu.pipeline_mode<synchronous>, transform_indices = @transform_9, window_bounds = array<i64: 16, 32>}]} {
    %c0 = arith.constant 0 : index
    %c0_0 = arith.constant 0 : index
    %0 = vector.load %arg1[%c0, %c0_0] : memref<16x32xf32, #tpu.memory_space<vmem>>, vector<16x32xf32>
    %c0_1 = arith.constant 0 : index
    %c0_2 = arith.constant 0 : index
    %c0_3 = arith.constant 0 : index
    %1 = vector.load %arg8[%c0_1, %c0_2, %c0_3] : memref<2x8x32xf32, #tpu.memory_space<vmem>>, vector<1x8x32xf32>
    %2 = vector.shape_cast %1 : vector<1x8x32xf32> to vector<8x32xf32>
    %3 = vector.extract_strided_slice %2 {offsets = [0, 0], sizes = [1, 32], strides = [1, 1]} : vector<8x32xf32> to vector<1x32xf32>
    %4 = vector.extract_strided_slice %2 {offsets = [1, 0], sizes = [1, 32], strides = [1, 1]} : vector<8x32xf32> to vector<1x32xf32>
    %5 = vector.extract_strided_slice %2 {offsets = [2, 0], sizes = [1, 32], strides = [1, 1]} : vector<8x32xf32> to vector<1x32xf32>
    %6 = vector.extract_strided_slice %2 {offsets = [3, 0], sizes = [1, 32], strides = [1, 1]} : vector<8x32xf32> to vector<1x32xf32>
    %7 = vector.extract_strided_slice %2 {offsets = [4, 0], sizes = [1, 32], strides = [1, 1]} : vector<8x32xf32> to vector<1x32xf32>
    %8 = vector.extract_strided_slice %2 {offsets = [5, 0], sizes = [1, 32], strides = [1, 1]} : vector<8x32xf32> to vector<1x32xf32>
    %9 = arith.truncf %0 : vector<16x32xf32> to vector<16x32xbf16>
    %c0_4 = arith.constant 0 : index
    %c0_5 = arith.constant 0 : index
    %c0_6 = arith.constant 0 : index
    %10 = vector.load %arg2[%c0_4, %c0_5, %c0_6] : memref<2x32x96xbf16, #tpu.memory_space<vmem>>, vector<1x32x96xbf16>
    %11 = vector.shape_cast %10 : vector<1x32x96xbf16> to vector<32x96xbf16>
    %cst = arith.constant dense<0.000000e+00> : vector<16x96xf32>
    %12 = tpu.matmul %9, %11, %cst {dimension_numbers = #tpu.dot_dimension_numbers<[1], [0], [0], [1], [0, 0, 1, 1], [], []>} : vector<16x32xbf16>, vector<32x96xbf16>, vector<16x96xf32> -> vector<16x96xf32>
    %c0_7 = arith.constant 0 : index
    %c0_8 = arith.constant 0 : index
    %c0_9 = arith.constant 0 : index
    %13 = vector.load %arg6[%c0_7, %c0_8, %c0_9] : memref<2x1x96xf32, #tpu.memory_space<vmem>>, vector<1x1x96xf32>
    %14 = vector.shape_cast %13 : vector<1x1x96xf32> to vector<1x96xf32>
    %15 = vector.broadcast %14 : vector<1x96xf32> to vector<16x96xf32>
    %16 = arith.addf %12, %15 : vector<16x96xf32>
    %c0_10 = arith.constant 0 : index
    %c0_11 = arith.constant 0 : index
    %c0_12 = arith.constant 0 : index
    %17 = vector.load %arg3[%c0_10, %c0_11, %c0_12] : memref<2x32x32xbf16, #tpu.memory_space<vmem>>, vector<1x32x32xbf16>
    %18 = vector.shape_cast %17 : vector<1x32x32xbf16> to vector<32x32xbf16>
    %19 = vector.extract_strided_slice %16 {offsets = [0, 0], sizes = [16, 8], strides = [1, 1]} : vector<16x96xf32> to vector<16x8xf32>
    %20 = vector.shape_cast %19 : vector<16x8xf32> to vector<2x8x8xf32>
    %21 = arith.truncf %20 : vector<2x8x8xf32> to vector<2x8x8xbf16>
    %22 = vector.extract_strided_slice %16 {offsets = [0, 32], sizes = [16, 8], strides = [1, 1]} : vector<16x96xf32> to vector<16x8xf32>
    %23 = vector.shape_cast %22 : vector<16x8xf32> to vector<2x8x8xf32>
    %24 = arith.truncf %23 : vector<2x8x8xf32> to vector<2x8x8xbf16>
    %25 = vector.extract_strided_slice %16 {offsets = [0, 64], sizes = [16, 8], strides = [1, 1]} : vector<16x96xf32> to vector<16x8xf32>
    %26 = vector.shape_cast %25 : vector<16x8xf32> to vector<2x8x8xf32>
    %27 = arith.truncf %26 : vector<2x8x8xf32> to vector<2x8x8xbf16>
    %cst_13 = arith.constant dense<0.000000e+00> : vector<2x8x8xf32>
    %28 = tpu.matmul %21, %24, %cst_13 {dimension_numbers = #tpu.dot_dimension_numbers<[2], [2], [1], [1], [0, 0, 0, 1, 1, 1], [0], [0]>} : vector<2x8x8xbf16>, vector<2x8x8xbf16>, vector<2x8x8xf32> -> vector<2x8x8xf32>
    %cst_14 = arith.constant dense<0xFF800000> : vector<2x8xf32>
    %29 = vector.multi_reduction <maximumf>, %28, %cst_14 [2] : vector<2x8x8xf32> to vector<2x8xf32>
    %30 = vector.shape_cast %29 : vector<2x8xf32> to vector<2x8x1xf32>
    %31 = vector.broadcast %30 : vector<2x8x1xf32> to vector<2x8x8xf32>
    %32 = arith.subf %28, %31 : vector<2x8x8xf32>
    %33 = math.exp %32 : vector<2x8x8xf32>
    %cst_15 = arith.constant dense<0.000000e+00> : vector<2x8xf32>
    %34 = vector.multi_reduction <add>, %33, %cst_15 [2] : vector<2x8x8xf32> to vector<2x8xf32>
    %35 = vector.shape_cast %34 : vector<2x8xf32> to vector<2x8x1xf32>
    %36 = vector.broadcast %35 : vector<2x8x1xf32> to vector<2x8x8xf32>
    %37 = arith.divf %33, %36 : vector<2x8x8xf32>
    %38 = arith.truncf %37 : vector<2x8x8xf32> to vector<2x8x8xbf16>
    %cst_16 = arith.constant dense<0.000000e+00> : vector<2x8x8xf32>
    %39 = tpu.matmul %38, %27, %cst_16 {dimension_numbers = #tpu.dot_dimension_numbers<[2], [1], [1], [2], [0, 0, 0, 1, 1, 2], [0], [0]>} : vector<2x8x8xbf16>, vector<2x8x8xbf16>, vector<2x8x8xf32> -> vector<2x8x8xf32>
    %40 = vector.shape_cast %39 : vector<2x8x8xf32> to vector<16x8xf32>
    %41 = arith.truncf %40 : vector<16x8xf32> to vector<16x8xbf16>
    %42 = vector.extract_strided_slice %18 {offsets = [0, 0], sizes = [8, 32], strides = [1, 1]} : vector<32x32xbf16> to vector<8x32xbf16>
    %cst_17 = arith.constant dense<0.000000e+00> : vector<16x32xf32>
    %43 = tpu.matmul %41, %42, %cst_17 {dimension_numbers = #tpu.dot_dimension_numbers<[1], [0], [0], [1], [0, 0, 1, 1], [], []>} : vector<16x8xbf16>, vector<8x32xbf16>, vector<16x32xf32> -> vector<16x32xf32>
    %44 = vector.extract_strided_slice %16 {offsets = [0, 8], sizes = [16, 8], strides = [1, 1]} : vector<16x96xf32> to vector<16x8xf32>
    %45 = vector.shape_cast %44 : vector<16x8xf32> to vector<2x8x8xf32>
    %46 = arith.truncf %45 : vector<2x8x8xf32> to vector<2x8x8xbf16>
    %47 = vector.extract_strided_slice %16 {offsets = [0, 40], sizes = [16, 8], strides = [1, 1]} : vector<16x96xf32> to vector<16x8xf32>
    %48 = vector.shape_cast %47 : vector<16x8xf32> to vector<2x8x8xf32>
    %49 = arith.truncf %48 : vector<2x8x8xf32> to vector<2x8x8xbf16>
    %50 = vector.extract_strided_slice %16 {offsets = [0, 72], sizes = [16, 8], strides = [1, 1]} : vector<16x96xf32> to vector<16x8xf32>
    %51 = vector.shape_cast %50 : vector<16x8xf32> to vector<2x8x8xf32>
    %52 = arith.truncf %51 : vector<2x8x8xf32> to vector<2x8x8xbf16>
    %cst_18 = arith.constant dense<0.000000e+00> : vector<2x8x8xf32>
    %53 = tpu.matmul %46, %49, %cst_18 {dimension_numbers = #tpu.dot_dimension_numbers<[2], [2], [1], [1], [0, 0, 0, 1, 1, 1], [0], [0]>} : vector<2x8x8xbf16>, vector<2x8x8xbf16>, vector<2x8x8xf32> -> vector<2x8x8xf32>
    %cst_19 = arith.constant dense<0xFF800000> : vector<2x8xf32>
    %54 = vector.multi_reduction <maximumf>, %53, %cst_19 [2] : vector<2x8x8xf32> to vector<2x8xf32>
    %55 = vector.shape_cast %54 : vector<2x8xf32> to vector<2x8x1xf32>
    %56 = vector.broadcast %55 : vector<2x8x1xf32> to vector<2x8x8xf32>
    %57 = arith.subf %53, %56 : vector<2x8x8xf32>
    %58 = math.exp %57 : vector<2x8x8xf32>
    %cst_20 = arith.constant dense<0.000000e+00> : vector<2x8xf32>
    %59 = vector.multi_reduction <add>, %58, %cst_20 [2] : vector<2x8x8xf32> to vector<2x8xf32>
    %60 = vector.shape_cast %59 : vector<2x8xf32> to vector<2x8x1xf32>
    %61 = vector.broadcast %60 : vector<2x8x1xf32> to vector<2x8x8xf32>
    %62 = arith.divf %58, %61 : vector<2x8x8xf32>
    %63 = arith.truncf %62 : vector<2x8x8xf32> to vector<2x8x8xbf16>
    %cst_21 = arith.constant dense<0.000000e+00> : vector<2x8x8xf32>
    %64 = tpu.matmul %63, %52, %cst_21 {dimension_numbers = #tpu.dot_dimension_numbers<[2], [1], [1], [2], [0, 0, 0, 1, 1, 2], [0], [0]>} : vector<2x8x8xbf16>, vector<2x8x8xbf16>, vector<2x8x8xf32> -> vector<2x8x8xf32>
    %65 = vector.shape_cast %64 : vector<2x8x8xf32> to vector<16x8xf32>
    %66 = arith.truncf %65 : vector<16x8xf32> to vector<16x8xbf16>
    %67 = vector.extract_strided_slice %18 {offsets = [8, 0], sizes = [8, 32], strides = [1, 1]} : vector<32x32xbf16> to vector<8x32xbf16>
    %cst_22 = arith.constant dense<0.000000e+00> : vector<16x32xf32>
    %68 = tpu.matmul %66, %67, %cst_22 {dimension_numbers = #tpu.dot_dimension_numbers<[1], [0], [0], [1], [0, 0, 1, 1], [], []>} : vector<16x8xbf16>, vector<8x32xbf16>, vector<16x32xf32> -> vector<16x32xf32>
    %69 = arith.addf %43, %68 : vector<16x32xf32>
    %70 = vector.extract_strided_slice %16 {offsets = [0, 16], sizes = [16, 8], strides = [1, 1]} : vector<16x96xf32> to vector<16x8xf32>
    %71 = vector.shape_cast %70 : vector<16x8xf32> to vector<2x8x8xf32>
    %72 = arith.truncf %71 : vector<2x8x8xf32> to vector<2x8x8xbf16>
    %73 = vector.extract_strided_slice %16 {offsets = [0, 48], sizes = [16, 8], strides = [1, 1]} : vector<16x96xf32> to vector<16x8xf32>
    %74 = vector.shape_cast %73 : vector<16x8xf32> to vector<2x8x8xf32>
    %75 = arith.truncf %74 : vector<2x8x8xf32> to vector<2x8x8xbf16>
    %76 = vector.extract_strided_slice %16 {offsets = [0, 80], sizes = [16, 8], strides = [1, 1]} : vector<16x96xf32> to vector<16x8xf32>
    %77 = vector.shape_cast %76 : vector<16x8xf32> to vector<2x8x8xf32>
    %78 = arith.truncf %77 : vector<2x8x8xf32> to vector<2x8x8xbf16>
    %cst_23 = arith.constant dense<0.000000e+00> : vector<2x8x8xf32>
    %79 = tpu.matmul %72, %75, %cst_23 {dimension_numbers = #tpu.dot_dimension_numbers<[2], [2], [1], [1], [0, 0, 0, 1, 1, 1], [0], [0]>} : vector<2x8x8xbf16>, vector<2x8x8xbf16>, vector<2x8x8xf32> -> vector<2x8x8xf32>
    %cst_24 = arith.constant dense<0xFF800000> : vector<2x8xf32>
    %80 = vector.multi_reduction <maximumf>, %79, %cst_24 [2] : vector<2x8x8xf32> to vector<2x8xf32>
    %81 = vector.shape_cast %80 : vector<2x8xf32> to vector<2x8x1xf32>
    %82 = vector.broadcast %81 : vector<2x8x1xf32> to vector<2x8x8xf32>
    %83 = arith.subf %79, %82 : vector<2x8x8xf32>
    %84 = math.exp %83 : vector<2x8x8xf32>
    %cst_25 = arith.constant dense<0.000000e+00> : vector<2x8xf32>
    %85 = vector.multi_reduction <add>, %84, %cst_25 [2] : vector<2x8x8xf32> to vector<2x8xf32>
    %86 = vector.shape_cast %85 : vector<2x8xf32> to vector<2x8x1xf32>
    %87 = vector.broadcast %86 : vector<2x8x1xf32> to vector<2x8x8xf32>
    %88 = arith.divf %84, %87 : vector<2x8x8xf32>
    %89 = arith.truncf %88 : vector<2x8x8xf32> to vector<2x8x8xbf16>
    %cst_26 = arith.constant dense<0.000000e+00> : vector<2x8x8xf32>
    %90 = tpu.matmul %89, %78, %cst_26 {dimension_numbers = #tpu.dot_dimension_numbers<[2], [1], [1], [2], [0, 0, 0, 1, 1, 2], [0], [0]>} : vector<2x8x8xbf16>, vector<2x8x8xbf16>, vector<2x8x8xf32> -> vector<2x8x8xf32>
    %91 = vector.shape_cast %90 : vector<2x8x8xf32> to vector<16x8xf32>
    %92 = arith.truncf %91 : vector<16x8xf32> to vector<16x8xbf16>
    %93 = vector.extract_strided_slice %18 {offsets = [16, 0], sizes = [8, 32], strides = [1, 1]} : vector<32x32xbf16> to vector<8x32xbf16>
    %cst_27 = arith.constant dense<0.000000e+00> : vector<16x32xf32>
    %94 = tpu.matmul %92, %93, %cst_27 {dimension_numbers = #tpu.dot_dimension_numbers<[1], [0], [0], [1], [0, 0, 1, 1], [], []>} : vector<16x8xbf16>, vector<8x32xbf16>, vector<16x32xf32> -> vector<16x32xf32>
    %95 = arith.addf %69, %94 : vector<16x32xf32>
    %96 = vector.extract_strided_slice %16 {offsets = [0, 24], sizes = [16, 8], strides = [1, 1]} : vector<16x96xf32> to vector<16x8xf32>
    %97 = vector.shape_cast %96 : vector<16x8xf32> to vector<2x8x8xf32>
    %98 = arith.truncf %97 : vector<2x8x8xf32> to vector<2x8x8xbf16>
    %99 = vector.extract_strided_slice %16 {offsets = [0, 56], sizes = [16, 8], strides = [1, 1]} : vector<16x96xf32> to vector<16x8xf32>
    %100 = vector.shape_cast %99 : vector<16x8xf32> to vector<2x8x8xf32>
    %101 = arith.truncf %100 : vector<2x8x8xf32> to vector<2x8x8xbf16>
    %102 = vector.extract_strided_slice %16 {offsets = [0, 88], sizes = [16, 8], strides = [1, 1]} : vector<16x96xf32> to vector<16x8xf32>
    %103 = vector.shape_cast %102 : vector<16x8xf32> to vector<2x8x8xf32>
    %104 = arith.truncf %103 : vector<2x8x8xf32> to vector<2x8x8xbf16>
    %cst_28 = arith.constant dense<0.000000e+00> : vector<2x8x8xf32>
    %105 = tpu.matmul %98, %101, %cst_28 {dimension_numbers = #tpu.dot_dimension_numbers<[2], [2], [1], [1], [0, 0, 0, 1, 1, 1], [0], [0]>} : vector<2x8x8xbf16>, vector<2x8x8xbf16>, vector<2x8x8xf32> -> vector<2x8x8xf32>
    %cst_29 = arith.constant dense<0xFF800000> : vector<2x8xf32>
    %106 = vector.multi_reduction <maximumf>, %105, %cst_29 [2] : vector<2x8x8xf32> to vector<2x8xf32>
    %107 = vector.shape_cast %106 : vector<2x8xf32> to vector<2x8x1xf32>
    %108 = vector.broadcast %107 : vector<2x8x1xf32> to vector<2x8x8xf32>
    %109 = arith.subf %105, %108 : vector<2x8x8xf32>
    %110 = math.exp %109 : vector<2x8x8xf32>
    %cst_30 = arith.constant dense<0.000000e+00> : vector<2x8xf32>
    %111 = vector.multi_reduction <add>, %110, %cst_30 [2] : vector<2x8x8xf32> to vector<2x8xf32>
    %112 = vector.shape_cast %111 : vector<2x8xf32> to vector<2x8x1xf32>
    %113 = vector.broadcast %112 : vector<2x8x1xf32> to vector<2x8x8xf32>
    %114 = arith.divf %110, %113 : vector<2x8x8xf32>
    %115 = arith.truncf %114 : vector<2x8x8xf32> to vector<2x8x8xbf16>
    %cst_31 = arith.constant dense<0.000000e+00> : vector<2x8x8xf32>
    %116 = tpu.matmul %115, %104, %cst_31 {dimension_numbers = #tpu.dot_dimension_numbers<[2], [1], [1], [2], [0, 0, 0, 1, 1, 2], [0], [0]>} : vector<2x8x8xbf16>, vector<2x8x8xbf16>, vector<2x8x8xf32> -> vector<2x8x8xf32>
    %117 = vector.shape_cast %116 : vector<2x8x8xf32> to vector<16x8xf32>
    %118 = arith.truncf %117 : vector<16x8xf32> to vector<16x8xbf16>
    %119 = vector.extract_strided_slice %18 {offsets = [24, 0], sizes = [8, 32], strides = [1, 1]} : vector<32x32xbf16> to vector<8x32xbf16>
    %cst_32 = arith.constant dense<0.000000e+00> : vector<16x32xf32>
    %120 = tpu.matmul %118, %119, %cst_32 {dimension_numbers = #tpu.dot_dimension_numbers<[1], [0], [0], [1], [0, 0, 1, 1], [], []>} : vector<16x8xbf16>, vector<8x32xbf16>, vector<16x32xf32> -> vector<16x32xf32>
    %121 = arith.addf %95, %120 : vector<16x32xf32>
    %122 = vector.broadcast %3 : vector<1x32xf32> to vector<16x32xf32>
    %123 = arith.addf %121, %122 : vector<16x32xf32>
    %124 = arith.addf %0, %123 : vector<16x32xf32>
    %cst_33 = arith.constant dense<0.000000e+00> : vector<16xf32>
    %125 = vector.multi_reduction <add>, %124, %cst_33 [1] : vector<16x32xf32> to vector<16xf32>
    %126 = vector.shape_cast %125 : vector<16xf32> to vector<16x1xf32>
    %cst_34 = arith.constant 3.200000e+01 : f32
    %127 = vector.broadcast %cst_34 : f32 to vector<16x1xf32>
    %128 = arith.divf %126, %127 : vector<16x1xf32>
    %129 = vector.broadcast %128 : vector<16x1xf32> to vector<16x32xf32>
    %130 = arith.subf %124, %129 : vector<16x32xf32>
    %131 = arith.mulf %130, %130 : vector<16x32xf32>
    %cst_35 = arith.constant dense<0.000000e+00> : vector<16xf32>
    %132 = vector.multi_reduction <add>, %131, %cst_35 [1] : vector<16x32xf32> to vector<16xf32>
    %133 = vector.shape_cast %132 : vector<16xf32> to vector<16x1xf32>
    %cst_36 = arith.constant 3.200000e+01 : f32
    %134 = vector.broadcast %cst_36 : f32 to vector<16x1xf32>
    %135 = arith.divf %133, %134 : vector<16x1xf32>
    %136 = vector.broadcast %128 : vector<16x1xf32> to vector<16x32xf32>
    %137 = arith.subf %124, %136 : vector<16x32xf32>
    %cst_37 = arith.constant 9.99999974E-6 : f32
    %138 = vector.broadcast %cst_37 : f32 to vector<16x1xf32>
    %139 = arith.addf %135, %138 : vector<16x1xf32>
    %140 = math.rsqrt %139 : vector<16x1xf32>
    %141 = vector.broadcast %140 : vector<16x1xf32> to vector<16x32xf32>
    %142 = arith.mulf %137, %141 : vector<16x32xf32>
    %143 = vector.broadcast %4 : vector<1x32xf32> to vector<16x32xf32>
    %144 = arith.mulf %142, %143 : vector<16x32xf32>
    %145 = vector.broadcast %5 : vector<1x32xf32> to vector<16x32xf32>
    %146 = arith.addf %144, %145 : vector<16x32xf32>
    %147 = arith.truncf %146 : vector<16x32xf32> to vector<16x32xbf16>
    %c0_38 = arith.constant 0 : index
    %c0_39 = arith.constant 0 : index
    %c0_40 = arith.constant 0 : index
    %148 = vector.load %arg4[%c0_38, %c0_39, %c0_40] : memref<2x32x2048xbf16, #tpu.memory_space<vmem>>, vector<1x32x2048xbf16>
    %149 = vector.shape_cast %148 : vector<1x32x2048xbf16> to vector<32x2048xbf16>
    %cst_41 = arith.constant dense<0.000000e+00> : vector<16x2048xf32>
    %150 = tpu.matmul %147, %149, %cst_41 {dimension_numbers = #tpu.dot_dimension_numbers<[1], [0], [0], [1], [0, 0, 1, 1], [], []>} : vector<16x32xbf16>, vector<32x2048xbf16>, vector<16x2048xf32> -> vector<16x2048xf32>
    %c0_42 = arith.constant 0 : index
    %c0_43 = arith.constant 0 : index
    %c0_44 = arith.constant 0 : index
    %151 = vector.load %arg7[%c0_42, %c0_43, %c0_44] : memref<2x1x2048xf32, #tpu.memory_space<vmem>>, vector<1x1x2048xf32>
    %152 = vector.shape_cast %151 : vector<1x1x2048xf32> to vector<1x2048xf32>
    %153 = vector.broadcast %152 : vector<1x2048xf32> to vector<16x2048xf32>
    %154 = arith.addf %150, %153 : vector<16x2048xf32>
    %cst_45 = arith.constant 0.000000e+00 : f32
    %155 = vector.broadcast %cst_45 : f32 to vector<16x2048xf32>
    %156 = arith.maximumf %154, %155 : vector<16x2048xf32>
    %157 = arith.truncf %156 : vector<16x2048xf32> to vector<16x2048xbf16>
    %c0_46 = arith.constant 0 : index
    %c0_47 = arith.constant 0 : index
    %c0_48 = arith.constant 0 : index
    %158 = vector.load %arg5[%c0_46, %c0_47, %c0_48] : memref<2x32x2048xbf16, #tpu.memory_space<vmem>>, vector<1x32x2048xbf16>
    %159 = vector.shape_cast %158 : vector<1x32x2048xbf16> to vector<32x2048xbf16>
    %cst_49 = arith.constant dense<0.000000e+00> : vector<16x32xf32>
    %160 = tpu.matmul %157, %159, %cst_49 {dimension_numbers = #tpu.dot_dimension_numbers<[1], [1], [0], [0], [0, 0, 1, 0], [], []>} : vector<16x2048xbf16>, vector<32x2048xbf16>, vector<16x32xf32> -> vector<16x32xf32>
    %161 = vector.broadcast %6 : vector<1x32xf32> to vector<16x32xf32>
    %162 = arith.addf %160, %161 : vector<16x32xf32>
    %163 = arith.addf %146, %162 : vector<16x32xf32>
    %cst_50 = arith.constant dense<0.000000e+00> : vector<16xf32>
    %164 = vector.multi_reduction <add>, %163, %cst_50 [1] : vector<16x32xf32> to vector<16xf32>
    %165 = vector.shape_cast %164 : vector<16xf32> to vector<16x1xf32>
    %cst_51 = arith.constant 3.200000e+01 : f32
    %166 = vector.broadcast %cst_51 : f32 to vector<16x1xf32>
    %167 = arith.divf %165, %166 : vector<16x1xf32>
    %168 = vector.broadcast %167 : vector<16x1xf32> to vector<16x32xf32>
    %169 = arith.subf %163, %168 : vector<16x32xf32>
    %170 = arith.mulf %169, %169 : vector<16x32xf32>
    %cst_52 = arith.constant dense<0.000000e+00> : vector<16xf32>
    %171 = vector.multi_reduction <add>, %170, %cst_52 [1] : vector<16x32xf32> to vector<16xf32>
    %172 = vector.shape_cast %171 : vector<16xf32> to vector<16x1xf32>
    %cst_53 = arith.constant 3.200000e+01 : f32
    %173 = vector.broadcast %cst_53 : f32 to vector<16x1xf32>
    %174 = arith.divf %172, %173 : vector<16x1xf32>
    %175 = vector.broadcast %167 : vector<16x1xf32> to vector<16x32xf32>
    %176 = arith.subf %163, %175 : vector<16x32xf32>
    %cst_54 = arith.constant 9.99999974E-6 : f32
    %177 = vector.broadcast %cst_54 : f32 to vector<16x1xf32>
    %178 = arith.addf %174, %177 : vector<16x1xf32>
    %179 = math.rsqrt %178 : vector<16x1xf32>
    %180 = vector.broadcast %179 : vector<16x1xf32> to vector<16x32xf32>
    %181 = arith.mulf %176, %180 : vector<16x32xf32>
    %182 = vector.broadcast %7 : vector<1x32xf32> to vector<16x32xf32>
    %183 = arith.mulf %181, %182 : vector<16x32xf32>
    %184 = vector.broadcast %8 : vector<1x32xf32> to vector<16x32xf32>
    %185 = arith.addf %183, %184 : vector<16x32xf32>
    %c1 = arith.constant 1 : index
    %c0_55 = arith.constant 0 : index
    %c0_56 = arith.constant 0 : index
    %186 = vector.load %arg8[%c1, %c0_55, %c0_56] : memref<2x8x32xf32, #tpu.memory_space<vmem>>, vector<1x8x32xf32>
    %187 = vector.shape_cast %186 : vector<1x8x32xf32> to vector<8x32xf32>
    %188 = vector.extract_strided_slice %187 {offsets = [0, 0], sizes = [1, 32], strides = [1, 1]} : vector<8x32xf32> to vector<1x32xf32>
    %189 = vector.extract_strided_slice %187 {offsets = [1, 0], sizes = [1, 32], strides = [1, 1]} : vector<8x32xf32> to vector<1x32xf32>
    %190 = vector.extract_strided_slice %187 {offsets = [2, 0], sizes = [1, 32], strides = [1, 1]} : vector<8x32xf32> to vector<1x32xf32>
    %191 = vector.extract_strided_slice %187 {offsets = [3, 0], sizes = [1, 32], strides = [1, 1]} : vector<8x32xf32> to vector<1x32xf32>
    %192 = vector.extract_strided_slice %187 {offsets = [4, 0], sizes = [1, 32], strides = [1, 1]} : vector<8x32xf32> to vector<1x32xf32>
    %193 = vector.extract_strided_slice %187 {offsets = [5, 0], sizes = [1, 32], strides = [1, 1]} : vector<8x32xf32> to vector<1x32xf32>
    %194 = arith.truncf %185 : vector<16x32xf32> to vector<16x32xbf16>
    %c1_57 = arith.constant 1 : index
    %c0_58 = arith.constant 0 : index
    %c0_59 = arith.constant 0 : index
    %195 = vector.load %arg2[%c1_57, %c0_58, %c0_59] : memref<2x32x96xbf16, #tpu.memory_space<vmem>>, vector<1x32x96xbf16>
    %196 = vector.shape_cast %195 : vector<1x32x96xbf16> to vector<32x96xbf16>
    %cst_60 = arith.constant dense<0.000000e+00> : vector<16x96xf32>
    %197 = tpu.matmul %194, %196, %cst_60 {dimension_numbers = #tpu.dot_dimension_numbers<[1], [0], [0], [1], [0, 0, 1, 1], [], []>} : vector<16x32xbf16>, vector<32x96xbf16>, vector<16x96xf32> -> vector<16x96xf32>
    %c1_61 = arith.constant 1 : index
    %c0_62 = arith.constant 0 : index
    %c0_63 = arith.constant 0 : index
    %198 = vector.load %arg6[%c1_61, %c0_62, %c0_63] : memref<2x1x96xf32, #tpu.memory_space<vmem>>, vector<1x1x96xf32>
    %199 = vector.shape_cast %198 : vector<1x1x96xf32> to vector<1x96xf32>
    %200 = vector.broadcast %199 : vector<1x96xf32> to vector<16x96xf32>
    %201 = arith.addf %197, %200 : vector<16x96xf32>
    %c1_64 = arith.constant 1 : index
    %c0_65 = arith.constant 0 : index
    %c0_66 = arith.constant 0 : index
    %202 = vector.load %arg3[%c1_64, %c0_65, %c0_66] : memref<2x32x32xbf16, #tpu.memory_space<vmem>>, vector<1x32x32xbf16>
    %203 = vector.shape_cast %202 : vector<1x32x32xbf16> to vector<32x32xbf16>
    %204 = vector.extract_strided_slice %201 {offsets = [0, 0], sizes = [16, 8], strides = [1, 1]} : vector<16x96xf32> to vector<16x8xf32>
    %205 = vector.shape_cast %204 : vector<16x8xf32> to vector<2x8x8xf32>
    %206 = arith.truncf %205 : vector<2x8x8xf32> to vector<2x8x8xbf16>
    %207 = vector.extract_strided_slice %201 {offsets = [0, 32], sizes = [16, 8], strides = [1, 1]} : vector<16x96xf32> to vector<16x8xf32>
    %208 = vector.shape_cast %207 : vector<16x8xf32> to vector<2x8x8xf32>
    %209 = arith.truncf %208 : vector<2x8x8xf32> to vector<2x8x8xbf16>
    %210 = vector.extract_strided_slice %201 {offsets = [0, 64], sizes = [16, 8], strides = [1, 1]} : vector<16x96xf32> to vector<16x8xf32>
    %211 = vector.shape_cast %210 : vector<16x8xf32> to vector<2x8x8xf32>
    %212 = arith.truncf %211 : vector<2x8x8xf32> to vector<2x8x8xbf16>
    %cst_67 = arith.constant dense<0.000000e+00> : vector<2x8x8xf32>
    %213 = tpu.matmul %206, %209, %cst_67 {dimension_numbers = #tpu.dot_dimension_numbers<[2], [2], [1], [1], [0, 0, 0, 1, 1, 1], [0], [0]>} : vector<2x8x8xbf16>, vector<2x8x8xbf16>, vector<2x8x8xf32> -> vector<2x8x8xf32>
    %cst_68 = arith.constant dense<0xFF800000> : vector<2x8xf32>
    %214 = vector.multi_reduction <maximumf>, %213, %cst_68 [2] : vector<2x8x8xf32> to vector<2x8xf32>
    %215 = vector.shape_cast %214 : vector<2x8xf32> to vector<2x8x1xf32>
    %216 = vector.broadcast %215 : vector<2x8x1xf32> to vector<2x8x8xf32>
    %217 = arith.subf %213, %216 : vector<2x8x8xf32>
    %218 = math.exp %217 : vector<2x8x8xf32>
    %cst_69 = arith.constant dense<0.000000e+00> : vector<2x8xf32>
    %219 = vector.multi_reduction <add>, %218, %cst_69 [2] : vector<2x8x8xf32> to vector<2x8xf32>
    %220 = vector.shape_cast %219 : vector<2x8xf32> to vector<2x8x1xf32>
    %221 = vector.broadcast %220 : vector<2x8x1xf32> to vector<2x8x8xf32>
    %222 = arith.divf %218, %221 : vector<2x8x8xf32>
    %223 = arith.truncf %222 : vector<2x8x8xf32> to vector<2x8x8xbf16>
    %cst_70 = arith.constant dense<0.000000e+00> : vector<2x8x8xf32>
    %224 = tpu.matmul %223, %212, %cst_70 {dimension_numbers = #tpu.dot_dimension_numbers<[2], [1], [1], [2], [0, 0, 0, 1, 1, 2], [0], [0]>} : vector<2x8x8xbf16>, vector<2x8x8xbf16>, vector<2x8x8xf32> -> vector<2x8x8xf32>
    %225 = vector.shape_cast %224 : vector<2x8x8xf32> to vector<16x8xf32>
    %226 = arith.truncf %225 : vector<16x8xf32> to vector<16x8xbf16>
    %227 = vector.extract_strided_slice %203 {offsets = [0, 0], sizes = [8, 32], strides = [1, 1]} : vector<32x32xbf16> to vector<8x32xbf16>
    %cst_71 = arith.constant dense<0.000000e+00> : vector<16x32xf32>
    %228 = tpu.matmul %226, %227, %cst_71 {dimension_numbers = #tpu.dot_dimension_numbers<[1], [0], [0], [1], [0, 0, 1, 1], [], []>} : vector<16x8xbf16>, vector<8x32xbf16>, vector<16x32xf32> -> vector<16x32xf32>
    %229 = vector.extract_strided_slice %201 {offsets = [0, 8], sizes = [16, 8], strides = [1, 1]} : vector<16x96xf32> to vector<16x8xf32>
    %230 = vector.shape_cast %229 : vector<16x8xf32> to vector<2x8x8xf32>
    %231 = arith.truncf %230 : vector<2x8x8xf32> to vector<2x8x8xbf16>
    %232 = vector.extract_strided_slice %201 {offsets = [0, 40], sizes = [16, 8], strides = [1, 1]} : vector<16x96xf32> to vector<16x8xf32>
    %233 = vector.shape_cast %232 : vector<16x8xf32> to vector<2x8x8xf32>
    %234 = arith.truncf %233 : vector<2x8x8xf32> to vector<2x8x8xbf16>
    %235 = vector.extract_strided_slice %201 {offsets = [0, 72], sizes = [16, 8], strides = [1, 1]} : vector<16x96xf32> to vector<16x8xf32>
    %236 = vector.shape_cast %235 : vector<16x8xf32> to vector<2x8x8xf32>
    %237 = arith.truncf %236 : vector<2x8x8xf32> to vector<2x8x8xbf16>
    %cst_72 = arith.constant dense<0.000000e+00> : vector<2x8x8xf32>
    %238 = tpu.matmul %231, %234, %cst_72 {dimension_numbers = #tpu.dot_dimension_numbers<[2], [2], [1], [1], [0, 0, 0, 1, 1, 1], [0], [0]>} : vector<2x8x8xbf16>, vector<2x8x8xbf16>, vector<2x8x8xf32> -> vector<2x8x8xf32>
    %cst_73 = arith.constant dense<0xFF800000> : vector<2x8xf32>
    %239 = vector.multi_reduction <maximumf>, %238, %cst_73 [2] : vector<2x8x8xf32> to vector<2x8xf32>
    %240 = vector.shape_cast %239 : vector<2x8xf32> to vector<2x8x1xf32>
    %241 = vector.broadcast %240 : vector<2x8x1xf32> to vector<2x8x8xf32>
    %242 = arith.subf %238, %241 : vector<2x8x8xf32>
    %243 = math.exp %242 : vector<2x8x8xf32>
    %cst_74 = arith.constant dense<0.000000e+00> : vector<2x8xf32>
    %244 = vector.multi_reduction <add>, %243, %cst_74 [2] : vector<2x8x8xf32> to vector<2x8xf32>
    %245 = vector.shape_cast %244 : vector<2x8xf32> to vector<2x8x1xf32>
    %246 = vector.broadcast %245 : vector<2x8x1xf32> to vector<2x8x8xf32>
    %247 = arith.divf %243, %246 : vector<2x8x8xf32>
    %248 = arith.truncf %247 : vector<2x8x8xf32> to vector<2x8x8xbf16>
    %cst_75 = arith.constant dense<0.000000e+00> : vector<2x8x8xf32>
    %249 = tpu.matmul %248, %237, %cst_75 {dimension_numbers = #tpu.dot_dimension_numbers<[2], [1], [1], [2], [0, 0, 0, 1, 1, 2], [0], [0]>} : vector<2x8x8xbf16>, vector<2x8x8xbf16>, vector<2x8x8xf32> -> vector<2x8x8xf32>
    %250 = vector.shape_cast %249 : vector<2x8x8xf32> to vector<16x8xf32>
    %251 = arith.truncf %250 : vector<16x8xf32> to vector<16x8xbf16>
    %252 = vector.extract_strided_slice %203 {offsets = [8, 0], sizes = [8, 32], strides = [1, 1]} : vector<32x32xbf16> to vector<8x32xbf16>
    %cst_76 = arith.constant dense<0.000000e+00> : vector<16x32xf32>
    %253 = tpu.matmul %251, %252, %cst_76 {dimension_numbers = #tpu.dot_dimension_numbers<[1], [0], [0], [1], [0, 0, 1, 1], [], []>} : vector<16x8xbf16>, vector<8x32xbf16>, vector<16x32xf32> -> vector<16x32xf32>
    %254 = arith.addf %228, %253 : vector<16x32xf32>
    %255 = vector.extract_strided_slice %201 {offsets = [0, 16], sizes = [16, 8], strides = [1, 1]} : vector<16x96xf32> to vector<16x8xf32>
    %256 = vector.shape_cast %255 : vector<16x8xf32> to vector<2x8x8xf32>
    %257 = arith.truncf %256 : vector<2x8x8xf32> to vector<2x8x8xbf16>
    %258 = vector.extract_strided_slice %201 {offsets = [0, 48], sizes = [16, 8], strides = [1, 1]} : vector<16x96xf32> to vector<16x8xf32>
    %259 = vector.shape_cast %258 : vector<16x8xf32> to vector<2x8x8xf32>
    %260 = arith.truncf %259 : vector<2x8x8xf32> to vector<2x8x8xbf16>
    %261 = vector.extract_strided_slice %201 {offsets = [0, 80], sizes = [16, 8], strides = [1, 1]} : vector<16x96xf32> to vector<16x8xf32>
    %262 = vector.shape_cast %261 : vector<16x8xf32> to vector<2x8x8xf32>
    %263 = arith.truncf %262 : vector<2x8x8xf32> to vector<2x8x8xbf16>
    %cst_77 = arith.constant dense<0.000000e+00> : vector<2x8x8xf32>
    %264 = tpu.matmul %257, %260, %cst_77 {dimension_numbers = #tpu.dot_dimension_numbers<[2], [2], [1], [1], [0, 0, 0, 1, 1, 1], [0], [0]>} : vector<2x8x8xbf16>, vector<2x8x8xbf16>, vector<2x8x8xf32> -> vector<2x8x8xf32>
    %cst_78 = arith.constant dense<0xFF800000> : vector<2x8xf32>
    %265 = vector.multi_reduction <maximumf>, %264, %cst_78 [2] : vector<2x8x8xf32> to vector<2x8xf32>
    %266 = vector.shape_cast %265 : vector<2x8xf32> to vector<2x8x1xf32>
    %267 = vector.broadcast %266 : vector<2x8x1xf32> to vector<2x8x8xf32>
    %268 = arith.subf %264, %267 : vector<2x8x8xf32>
    %269 = math.exp %268 : vector<2x8x8xf32>
    %cst_79 = arith.constant dense<0.000000e+00> : vector<2x8xf32>
    %270 = vector.multi_reduction <add>, %269, %cst_79 [2] : vector<2x8x8xf32> to vector<2x8xf32>
    %271 = vector.shape_cast %270 : vector<2x8xf32> to vector<2x8x1xf32>
    %272 = vector.broadcast %271 : vector<2x8x1xf32> to vector<2x8x8xf32>
    %273 = arith.divf %269, %272 : vector<2x8x8xf32>
    %274 = arith.truncf %273 : vector<2x8x8xf32> to vector<2x8x8xbf16>
    %cst_80 = arith.constant dense<0.000000e+00> : vector<2x8x8xf32>
    %275 = tpu.matmul %274, %263, %cst_80 {dimension_numbers = #tpu.dot_dimension_numbers<[2], [1], [1], [2], [0, 0, 0, 1, 1, 2], [0], [0]>} : vector<2x8x8xbf16>, vector<2x8x8xbf16>, vector<2x8x8xf32> -> vector<2x8x8xf32>
    %276 = vector.shape_cast %275 : vector<2x8x8xf32> to vector<16x8xf32>
    %277 = arith.truncf %276 : vector<16x8xf32> to vector<16x8xbf16>
    %278 = vector.extract_strided_slice %203 {offsets = [16, 0], sizes = [8, 32], strides = [1, 1]} : vector<32x32xbf16> to vector<8x32xbf16>
    %cst_81 = arith.constant dense<0.000000e+00> : vector<16x32xf32>
    %279 = tpu.matmul %277, %278, %cst_81 {dimension_numbers = #tpu.dot_dimension_numbers<[1], [0], [0], [1], [0, 0, 1, 1], [], []>} : vector<16x8xbf16>, vector<8x32xbf16>, vector<16x32xf32> -> vector<16x32xf32>
    %280 = arith.addf %254, %279 : vector<16x32xf32>
    %281 = vector.extract_strided_slice %201 {offsets = [0, 24], sizes = [16, 8], strides = [1, 1]} : vector<16x96xf32> to vector<16x8xf32>
    %282 = vector.shape_cast %281 : vector<16x8xf32> to vector<2x8x8xf32>
    %283 = arith.truncf %282 : vector<2x8x8xf32> to vector<2x8x8xbf16>
    %284 = vector.extract_strided_slice %201 {offsets = [0, 56], sizes = [16, 8], strides = [1, 1]} : vector<16x96xf32> to vector<16x8xf32>
    %285 = vector.shape_cast %284 : vector<16x8xf32> to vector<2x8x8xf32>
    %286 = arith.truncf %285 : vector<2x8x8xf32> to vector<2x8x8xbf16>
    %287 = vector.extract_strided_slice %201 {offsets = [0, 88], sizes = [16, 8], strides = [1, 1]} : vector<16x96xf32> to vector<16x8xf32>
    %288 = vector.shape_cast %287 : vector<16x8xf32> to vector<2x8x8xf32>
    %289 = arith.truncf %288 : vector<2x8x8xf32> to vector<2x8x8xbf16>
    %cst_82 = arith.constant dense<0.000000e+00> : vector<2x8x8xf32>
    %290 = tpu.matmul %283, %286, %cst_82 {dimension_numbers = #tpu.dot_dimension_numbers<[2], [2], [1], [1], [0, 0, 0, 1, 1, 1], [0], [0]>} : vector<2x8x8xbf16>, vector<2x8x8xbf16>, vector<2x8x8xf32> -> vector<2x8x8xf32>
    %cst_83 = arith.constant dense<0xFF800000> : vector<2x8xf32>
    %291 = vector.multi_reduction <maximumf>, %290, %cst_83 [2] : vector<2x8x8xf32> to vector<2x8xf32>
    %292 = vector.shape_cast %291 : vector<2x8xf32> to vector<2x8x1xf32>
    %293 = vector.broadcast %292 : vector<2x8x1xf32> to vector<2x8x8xf32>
    %294 = arith.subf %290, %293 : vector<2x8x8xf32>
    %295 = math.exp %294 : vector<2x8x8xf32>
    %cst_84 = arith.constant dense<0.000000e+00> : vector<2x8xf32>
    %296 = vector.multi_reduction <add>, %295, %cst_84 [2] : vector<2x8x8xf32> to vector<2x8xf32>
    %297 = vector.shape_cast %296 : vector<2x8xf32> to vector<2x8x1xf32>
    %298 = vector.broadcast %297 : vector<2x8x1xf32> to vector<2x8x8xf32>
    %299 = arith.divf %295, %298 : vector<2x8x8xf32>
    %300 = arith.truncf %299 : vector<2x8x8xf32> to vector<2x8x8xbf16>
    %cst_85 = arith.constant dense<0.000000e+00> : vector<2x8x8xf32>
    %301 = tpu.matmul %300, %289, %cst_85 {dimension_numbers = #tpu.dot_dimension_numbers<[2], [1], [1], [2], [0, 0, 0, 1, 1, 2], [0], [0]>} : vector<2x8x8xbf16>, vector<2x8x8xbf16>, vector<2x8x8xf32> -> vector<2x8x8xf32>
    %302 = vector.shape_cast %301 : vector<2x8x8xf32> to vector<16x8xf32>
    %303 = arith.truncf %302 : vector<16x8xf32> to vector<16x8xbf16>
    %304 = vector.extract_strided_slice %203 {offsets = [24, 0], sizes = [8, 32], strides = [1, 1]} : vector<32x32xbf16> to vector<8x32xbf16>
    %cst_86 = arith.constant dense<0.000000e+00> : vector<16x32xf32>
    %305 = tpu.matmul %303, %304, %cst_86 {dimension_numbers = #tpu.dot_dimension_numbers<[1], [0], [0], [1], [0, 0, 1, 1], [], []>} : vector<16x8xbf16>, vector<8x32xbf16>, vector<16x32xf32> -> vector<16x32xf32>
    %306 = arith.addf %280, %305 : vector<16x32xf32>
    %307 = vector.broadcast %188 : vector<1x32xf32> to vector<16x32xf32>
    %308 = arith.addf %306, %307 : vector<16x32xf32>
    %309 = arith.addf %185, %308 : vector<16x32xf32>
    %cst_87 = arith.constant dense<0.000000e+00> : vector<16xf32>
    %310 = vector.multi_reduction <add>, %309, %cst_87 [1] : vector<16x32xf32> to vector<16xf32>
    %311 = vector.shape_cast %310 : vector<16xf32> to vector<16x1xf32>
    %cst_88 = arith.constant 3.200000e+01 : f32
    %312 = vector.broadcast %cst_88 : f32 to vector<16x1xf32>
    %313 = arith.divf %311, %312 : vector<16x1xf32>
    %314 = vector.broadcast %313 : vector<16x1xf32> to vector<16x32xf32>
    %315 = arith.subf %309, %314 : vector<16x32xf32>
    %316 = arith.mulf %315, %315 : vector<16x32xf32>
    %cst_89 = arith.constant dense<0.000000e+00> : vector<16xf32>
    %317 = vector.multi_reduction <add>, %316, %cst_89 [1] : vector<16x32xf32> to vector<16xf32>
    %318 = vector.shape_cast %317 : vector<16xf32> to vector<16x1xf32>
    %cst_90 = arith.constant 3.200000e+01 : f32
    %319 = vector.broadcast %cst_90 : f32 to vector<16x1xf32>
    %320 = arith.divf %318, %319 : vector<16x1xf32>
    %321 = vector.broadcast %313 : vector<16x1xf32> to vector<16x32xf32>
    %322 = arith.subf %309, %321 : vector<16x32xf32>
    %cst_91 = arith.constant 9.99999974E-6 : f32
    %323 = vector.broadcast %cst_91 : f32 to vector<16x1xf32>
    %324 = arith.addf %320, %323 : vector<16x1xf32>
    %325 = math.rsqrt %324 : vector<16x1xf32>
    %326 = vector.broadcast %325 : vector<16x1xf32> to vector<16x32xf32>
    %327 = arith.mulf %322, %326 : vector<16x32xf32>
    %328 = vector.broadcast %189 : vector<1x32xf32> to vector<16x32xf32>
    %329 = arith.mulf %327, %328 : vector<16x32xf32>
    %330 = vector.broadcast %190 : vector<1x32xf32> to vector<16x32xf32>
    %331 = arith.addf %329, %330 : vector<16x32xf32>
    %332 = arith.truncf %331 : vector<16x32xf32> to vector<16x32xbf16>
    %c1_92 = arith.constant 1 : index
    %c0_93 = arith.constant 0 : index
    %c0_94 = arith.constant 0 : index
    %333 = vector.load %arg4[%c1_92, %c0_93, %c0_94] : memref<2x32x2048xbf16, #tpu.memory_space<vmem>>, vector<1x32x2048xbf16>
    %334 = vector.shape_cast %333 : vector<1x32x2048xbf16> to vector<32x2048xbf16>
    %cst_95 = arith.constant dense<0.000000e+00> : vector<16x2048xf32>
    %335 = tpu.matmul %332, %334, %cst_95 {dimension_numbers = #tpu.dot_dimension_numbers<[1], [0], [0], [1], [0, 0, 1, 1], [], []>} : vector<16x32xbf16>, vector<32x2048xbf16>, vector<16x2048xf32> -> vector<16x2048xf32>
    %c1_96 = arith.constant 1 : index
    %c0_97 = arith.constant 0 : index
    %c0_98 = arith.constant 0 : index
    %336 = vector.load %arg7[%c1_96, %c0_97, %c0_98] : memref<2x1x2048xf32, #tpu.memory_space<vmem>>, vector<1x1x2048xf32>
    %337 = vector.shape_cast %336 : vector<1x1x2048xf32> to vector<1x2048xf32>
    %338 = vector.broadcast %337 : vector<1x2048xf32> to vector<16x2048xf32>
    %339 = arith.addf %335, %338 : vector<16x2048xf32>
    %cst_99 = arith.constant 0.000000e+00 : f32
    %340 = vector.broadcast %cst_99 : f32 to vector<16x2048xf32>
    %341 = arith.maximumf %339, %340 : vector<16x2048xf32>
    %342 = arith.truncf %341 : vector<16x2048xf32> to vector<16x2048xbf16>
    %c1_100 = arith.constant 1 : index
    %c0_101 = arith.constant 0 : index
    %c0_102 = arith.constant 0 : index
    %343 = vector.load %arg5[%c1_100, %c0_101, %c0_102] : memref<2x32x2048xbf16, #tpu.memory_space<vmem>>, vector<1x32x2048xbf16>
    %344 = vector.shape_cast %343 : vector<1x32x2048xbf16> to vector<32x2048xbf16>
    %cst_103 = arith.constant dense<0.000000e+00> : vector<16x32xf32>
    %345 = tpu.matmul %342, %344, %cst_103 {dimension_numbers = #tpu.dot_dimension_numbers<[1], [1], [0], [0], [0, 0, 1, 0], [], []>} : vector<16x2048xbf16>, vector<32x2048xbf16>, vector<16x32xf32> -> vector<16x32xf32>
    %346 = vector.broadcast %191 : vector<1x32xf32> to vector<16x32xf32>
    %347 = arith.addf %345, %346 : vector<16x32xf32>
    %348 = arith.addf %331, %347 : vector<16x32xf32>
    %cst_104 = arith.constant dense<0.000000e+00> : vector<16xf32>
    %349 = vector.multi_reduction <add>, %348, %cst_104 [1] : vector<16x32xf32> to vector<16xf32>
    %350 = vector.shape_cast %349 : vector<16xf32> to vector<16x1xf32>
    %cst_105 = arith.constant 3.200000e+01 : f32
    %351 = vector.broadcast %cst_105 : f32 to vector<16x1xf32>
    %352 = arith.divf %350, %351 : vector<16x1xf32>
    %353 = vector.broadcast %352 : vector<16x1xf32> to vector<16x32xf32>
    %354 = arith.subf %348, %353 : vector<16x32xf32>
    %355 = arith.mulf %354, %354 : vector<16x32xf32>
    %cst_106 = arith.constant dense<0.000000e+00> : vector<16xf32>
    %356 = vector.multi_reduction <add>, %355, %cst_106 [1] : vector<16x32xf32> to vector<16xf32>
    %357 = vector.shape_cast %356 : vector<16xf32> to vector<16x1xf32>
    %cst_107 = arith.constant 3.200000e+01 : f32
    %358 = vector.broadcast %cst_107 : f32 to vector<16x1xf32>
    %359 = arith.divf %357, %358 : vector<16x1xf32>
    %360 = vector.broadcast %352 : vector<16x1xf32> to vector<16x32xf32>
    %361 = arith.subf %348, %360 : vector<16x32xf32>
    %cst_108 = arith.constant 9.99999974E-6 : f32
    %362 = vector.broadcast %cst_108 : f32 to vector<16x1xf32>
    %363 = arith.addf %359, %362 : vector<16x1xf32>
    %364 = math.rsqrt %363 : vector<16x1xf32>
    %365 = vector.broadcast %364 : vector<16x1xf32> to vector<16x32xf32>
    %366 = arith.mulf %361, %365 : vector<16x32xf32>
    %367 = vector.broadcast %192 : vector<1x32xf32> to vector<16x32xf32>
    %368 = arith.mulf %366, %367 : vector<16x32xf32>
    %369 = vector.broadcast %193 : vector<1x32xf32> to vector<16x32xf32>
    %370 = arith.addf %368, %369 : vector<16x32xf32>
    %c0_109 = arith.constant 0 : index
    %c0_110 = arith.constant 0 : index
    %371 = vector.load %arg9[%c0_109, %c0_110] : memref<16x2xf32, #tpu.memory_space<vmem>>, vector<16x1xf32>
    %372 = vector.broadcast %371 : vector<16x1xf32> to vector<16x32xf32>
    %373 = arith.mulf %370, %372 : vector<16x32xf32>
    %c0_111 = arith.constant 0 : index
    %c1_112 = arith.constant 1 : index
    %374 = vector.load %arg9[%c0_111, %c1_112] : memref<16x2xf32, #tpu.memory_space<vmem>>, vector<16x1xf32>
    %375 = vector.broadcast %374 : vector<16x1xf32> to vector<16x32xf32>
    %376 = arith.addf %373, %375 : vector<16x32xf32>
    %c0_113 = arith.constant 0 : index
    %c0_114 = arith.constant 0 : index
    %377 = vector.load %arg10[%c0_113, %c0_114] : memref<16x32xf32, #tpu.memory_space<vmem>>, vector<16x32xf32>
    tpu.vector_store %arg10[%c0_113, %c0_114], %376 {strides = array<i32>} : memref<16x32xf32, #tpu.memory_space<vmem>>, vector<16x32xf32>,
    return
  }
  func.func @transform_0(%arg0: i32) -> (i32, i32) {
    %c0_i32 = arith.constant 0 : i32
    %c0_i32_0 = arith.constant 0 : i32
    %c0_i32_1 = arith.constant 0 : i32
    return %c0_i32, %c0_i32_0 : i32, i32
  }
  func.func @transform_1(%arg0: i32) -> (i32, i32, i32) {
    %c0_i32 = arith.constant 0 : i32
    %c0_i32_0 = arith.constant 0 : i32
    %c0_i32_1 = arith.constant 0 : i32
    %c0_i32_2 = arith.constant 0 : i32
    return %c0_i32, %c0_i32_0, %c0_i32_1 : i32, i32, i32
  }
  func.func @transform_2(%arg0: i32) -> (i32, i32, i32) {
    %c0_i32 = arith.constant 0 : i32
    %c0_i32_0 = arith.constant 0 : i32
    %c0_i32_1 = arith.constant 0 : i32
    %c0_i32_2 = arith.constant 0 : i32
    return %c0_i32, %c0_i32_0, %c0_i32_1 : i32, i32, i32
  }
  func.func @transform_3(%arg0: i32) -> (i32, i32, i32) {
    %c0_i32 = arith.constant 0 : i32
    %c0_i32_0 = arith.constant 0 : i32
    %c0_i32_1 = arith.constant 0 : i32
    %c0_i32_2 = arith.constant 0 : i32
    return %c0_i32, %c0_i32_0, %c0_i32_1 : i32, i32, i32
  }
  func.func @transform_4(%arg0: i32) -> (i32, i32, i32) {
    %c0_i32 = arith.constant 0 : i32
    %c0_i32_0 = arith.constant 0 : i32
    %c0_i32_1 = arith.constant 0 : i32
    %c0_i32_2 = arith.constant 0 : i32
    return %c0_i32, %c0_i32_0, %c0_i32_1 : i32, i32, i32
  }
  func.func @transform_5(%arg0: i32) -> (i32, i32, i32) {
    %c0_i32 = arith.constant 0 : i32
    %c0_i32_0 = arith.constant 0 : i32
    %c0_i32_1 = arith.constant 0 : i32
    %c0_i32_2 = arith.constant 0 : i32
    return %c0_i32, %c0_i32_0, %c0_i32_1 : i32, i32, i32
  }
  func.func @transform_6(%arg0: i32) -> (i32, i32, i32) {
    %c0_i32 = arith.constant 0 : i32
    %c0_i32_0 = arith.constant 0 : i32
    %c0_i32_1 = arith.constant 0 : i32
    %c0_i32_2 = arith.constant 0 : i32
    return %c0_i32, %c0_i32_0, %c0_i32_1 : i32, i32, i32
  }
  func.func @transform_7(%arg0: i32) -> (i32, i32, i32) {
    %c0_i32 = arith.constant 0 : i32
    %c0_i32_0 = arith.constant 0 : i32
    %c0_i32_1 = arith.constant 0 : i32
    %c0_i32_2 = arith.constant 0 : i32
    return %c0_i32, %c0_i32_0, %c0_i32_1 : i32, i32, i32
  }
  func.func @transform_8(%arg0: i32) -> (i32, i32) {
    %c0_i32 = arith.constant 0 : i32
    %c0_i32_0 = arith.constant 0 : i32
    %c0_i32_1 = arith.constant 0 : i32
    return %c0_i32, %c0_i32_0 : i32, i32
  }
  func.func @transform_9(%arg0: i32) -> (i32, i32) {
    %c0_i32 = arith.constant 0 : i32
    %c0_i32_0 = arith.constant 0 : i32
    %c0_i32_1 = arith.constant 0 : i32
    return %c0_i32, %c0_i32_0 : i32, i32
  }
}

</mosaic_0001>

<bundles_post_ra>
// kernel: tpu_custom_call.1
= control target key start
LH: loop header
LB: loop body
LE: loop exit
PB: predicated region body
PF: predicated region fallthrough
CT: control target
= control target key end

     0   :  { %14 = vsyncpa [#allocation3], 0  ;;  %s5267_s0 = inlined_call_operand.vmem [shape: f32[16,32], index: 0, kind: input, shape index: {}]   ;;  %s5268_s1 = inlined_call_operand.hbm [shape: bf16[2,32,96], index: 1, kind: input, shape index: {}]   ;;  %s5269_s2 = inlined_call_operand.hbm [shape: bf16[2,32,32], index: 2, kind: input, shape index: {}]   ;;  %s5270_s3 = inlined_call_operand.hbm [shape: bf16[2,32,2048], index: 3, kind: input, shape index: {}]   ;;  %s5271_s4 = inlined_call_operand.hbm [shape: bf16[2,32,2048], index: 4, kind: input, shape index: {}]   ;;  %s5272_s5 = inlined_call_operand.vmem [shape: f32[2,1,96], index: 5, kind: input, shape index: {}]   ;;  %s5273_s6 = inlined_call_operand.hbm [shape: f32[2,1,2048], index: 6, kind: input, shape index: {}]   ;;  %s5274_s7 = inlined_call_operand.hbm [shape: f32[2,8,32], index: 7, kind: input, shape index: {}]   ;;  %s5275_s8 = inlined_call_operand.vmem [shape: f32[16,2], index: 8, kind: input, shape index: {}]   ;;  %s5276_s9 = inlined_call_operand.hbm [shape: f32[16,32], index: 9, kind: output, shape index: {}]  }
   0x1   :  { %15 = vsyncpa [#allocation6], 0 }
   0x2   :  { %16 = vsyncpa [#allocation9], 0 }
   0x3   :  { %17 = vsyncpa [#allocation12], 0 }
   0x4   :  { %18 = vsyncpa [#allocation4], 0  ;;  %s38_s11 = sshll.u32 %s5269_s2, 4  ;;  %s4655_s12 = smov [#allocation5]   ;;  %s39_s11 = int_to_ptr.hbm [resolvable:$true] %s38_s11 }
   0x5   :  { %s40_s13 = sshll.u32 %s4655_s12, 4  ;;  %s4656_s14 = smov 64   ;;  %s41_s13 = int_to_ptr.vmem [resolvable:$true] %s40_s13 }
   0x6   :  { %s4657_s15 = smov 4   ;;  %s64_s18 = sshll.u32 %s5271_s4, 4  ;;  %s65_s18 = int_to_ptr.hbm [resolvable:$true] %s64_s18 }
   0x7   :  { %46 = dma.hbm_to_vmem [thread:$0]  %s39_s11, 512, %s41_s13, [#allocation6], %s4656_s14, %s4656_s14, %s4657_s15  }
   0x8   :  { %s4658_s19 = smov [#allocation8]   ;;  %s25_s2 = sshll.u32 %s5268_s1, 4  ;;  %s26_s2 = int_to_ptr.hbm [resolvable:$true] %s25_s2 }
   0x9   :  { %s66_s20 = sshll.u32 %s4658_s19, 4  ;;  %s4659_s23 = smov 1024   ;;  %s67_s20 = int_to_ptr.vmem [resolvable:$true] %s66_s20 }
   0xa   :  { %72 = dma.hbm_to_vmem [thread:$0]  %s65_s18, 8192, %s67_s20, [#allocation9], %s4659_s23, %s4659_s23, %s4656_s14  }
   0xb   :  { %s4660_s24 = smov [#allocation2]   ;;  %s51_s28 = sshll.u32 %s5270_s3, 4  ;;  %s52_s28 = int_to_ptr.hbm [resolvable:$true] %s51_s28 }
   0xc   :  { %s27_s25 = sshll.u32 %s4660_s24, 4  ;;  %s79_s30 = sshll.u32 %s5273_s6, 4  ;;  %s28_s25 = int_to_ptr.vmem [resolvable:$true] %s27_s25  ;;  %s80_s30 = int_to_ptr.hbm [resolvable:$true] %s79_s30 }
   0xd   :  { %33 = dma.hbm_to_vmem [thread:$0]  %s26_s2, 512, %s28_s25, [#allocation3], %s4656_s14, %s4656_s14, %s4657_s15  }
   0xe   :  { %s4661_s1 = smov [#allocation7]   ;;  %s4662_s11 = smov [#allocation10]  }
   0xf   :  { %s53_s10 = sshll.u32 %s4661_s1, 4  ;;  %s81_s12 = sshll.u32 %s4662_s11, 4  ;;  %s54_s10 = int_to_ptr.vmem [resolvable:$true] %s53_s10  ;;  %s82_s12 = int_to_ptr.vmem [resolvable:$true] %s81_s12 }
  0x10   :  { %59 = dma.hbm_to_vmem [thread:$0]  %s52_s28, 8192, %s54_s10, [#allocation6], %s4659_s23, %s4659_s23, %s4656_s14  }
  0x11   :  { %s4663_s13 = smov 256   ;;  %s4664_s3 = smov 16  }
  0x12   :  { %87 = dma.hbm_to_vmem [thread:$0]  %s80_s30, 512, %s82_s12, [#allocation9], %s4663_s13, %s4663_s13, %s4664_s3  }
  0x13   :  { %s92_s15 = sshll.u32 %s5274_s7, 4  ;;  %s4665_s18 = smov [#allocation11]   ;;  %s93_s15 = int_to_ptr.hbm [resolvable:$true] %s92_s15 }
  0x14   :  { %s94_s19 = sshll.u32 %s4665_s18, 4  ;;  %s4666_s6 = smov 128   ;;  %s95_s19 = int_to_ptr.vmem [resolvable:$true] %s94_s19 }
  0x15   :  { %s4667_s20 = smov 8  }
  0x16   :  { %100 = dma.hbm_to_vmem [thread:$0]  %s93_s15, 256, %s95_s19, [#allocation12], %s4666_s6, %s4666_s6, %s4667_s20  }
  0x17   :  { %4645 = dma.done.wait [#allocation3], 512  }
  0x18   :  { %4646 = vsyncadd [#allocation3], 4294966784 }
  0x19   :  { %4647 = dma.done.wait [#allocation6], 8704  }
  0x1a   :  { %4648 = vsyncadd [#allocation6], 4294958592 }
  0x1b   :  { %4649 = dma.done.wait [#allocation9], 8704  }
  0x1c   :  { %4650 = vsyncadd [#allocation9], 4294958592 }
  0x1d   :  { %4651 = dma.done.wait [#allocation12], 256  }
  0x1e   :  { %4652 = vsyncadd [#allocation12], 4294967040  ;;  %v4229_v0 = vld [vmem:[#allocation2 + $0x8] sm:$0xff]  ;;  %v4228_v1 = vld [vmem:[#allocation2] sm:$0xff]  ;;  %vm152_vm0 = vcmask 261120   ;;  %s4669_s25 = smov 88  }
  0x1f   :  { %162 = vmatpush.bf16.msra.mxu0 %v4229_v0  ;;  %v4762_v2 = vld [vmem:[%s5267_s0] sm:$0xff]  ;;  %v4767_v3 = vld [vmem:[%s5267_s0 + $0x8] sm:$0xff]  ;;  %s4668_s0 = smov 96   ;;  %s4670_s26 = smov 120   ;;  %vm181_vm1 = vcmask 64512   ;;  %vm280_vm2 = vcmask 1043456  }
  0x20   :  { %v131_v4 = vpack.c.bf16 %v4767_v3, %v4762_v2  ;;  %v4391_v5 = vld [vmem:[%s5272_s5] ss:$0 sm:$0xff]  ;;  %s4671_s27 = smov 56   ;;  %s4672_s28 = smov 80   ;;  %v171_v0 = vld [vmem:[#allocation5 + $0x4] sm:$0xf] }
  0x21   :  { %s4673_s4 = smov 112   ;;  %s4674_s29 = smov 48  }
  0x22   :  { %s4675_s30 = smov 72   ;;  %s4676_s1 = smov 104  }
  0x23   :  { %163 = vmatpush.bf16.msra.mxu0 %v4228_v1  ;;  %s4677_s10 = smov 40   ;;  %s3609_s18 = sshll.u32 %s5276_s9, 4  ;;  %s3610_s18 = int_to_ptr.hbm [resolvable:$true] %s3609_s18 }
  0x26   :  { %3633 = vmatmul.msk.bf16.vlgmr.msra.gmra.mxu0 %vm152_vm0, %v131_v4  ;;  %v462_v4 = vsel %vm280_vm2, %v171_v0, 0 }
  0xa3   :  { %v165_v6 = vpop.f32.mrf.mxu0 }
  0xa4   :  { %v166_v7 = vadd.f32 %v4391_v5, %v165_v6 }
  0xa6   :  { %v174_v8 = vpack.c.bf16 %v166_v7, %v166_v7 }
  0xa8   :  { %v177_v9 = vunpack.c.l.b16 %v174_v8 }
  0xaa   :  { %v4775_v10 = vpack.c.b16 %v177_v9, %v177_v9 }
  0xab   :  { %v167_v11 = vpop.f32.mrf.mxu0 }
  0xac   :  { %v168_v12 = vadd.f32 %v4391_v5, %v167_v11  ;;  %179 = vrot.lane.b32.xlu1 %v4775_v10, %s4668_s0  ;;  %321 = vrot.lane.b32.xlu0 %v4775_v10, %s4669_s25 }
  0xae   :  { %v175_v13 = vpack.c.bf16 %v168_v12, %v168_v12 }
  0xb0   :  { %v202_v14 = vunpack.c.l.b16 %v175_v13 }
  0xb2   :  { %v4781_v15 = vpack.c.b16 %v202_v14, %v202_v14 }
  0xb4   :  { %344 = vrot.lane.b32.xlu2 %v4781_v15, %s4669_s25  ;;  %204 = vrot.lane.b32.xlu1 %v4781_v15, %s4668_s0 }
  0xb5   :  { %319 = vrot.lane.b32.xlu0 %v4775_v10, %s4670_s26 }
  0xbc   :  { %342 = vrot.lane.b32.xlu2 %v4781_v15, %s4670_s26 }
  0xc4   :  { %415 = vrot.lane.b32.xlu2 %v4775_v10, %s4671_s27 }
 0x10e   :  { %v345_v16 = vpop.permute.xlu2 %344 }
 0x10f   :  { %v350_v22 = vsel %vm181_vm1, %v345_v16, 0 }
 0x116   :  { %v343_v17 = vpop.permute.xlu2 %342 }
 0x11e   :  { %v180_v18 = vpop.permute.xlu1 %179  ;;  %v322_v19 = vpop.permute.xlu0 %321 }
 0x11f   :  { %v186_v20 = vsel %vm181_vm1, %v180_v18, 0  ;;  %v327_v21 = vsel %vm181_vm1, %v322_v19, 0  ;;  %v416_v23 = vpop.permute.xlu2 %415 }
 0x120   :  { %195 = vmatpush.bf16.xpose.msra.mxu1 %v186_v20  ;;  %336 = vmatpush.bf16.xpose.msrb.mxu0 %v327_v21  ;;  %v421_v27 = vsel %vm280_vm2, %v416_v23, 0 }
 0x126   :  { %v205_v24 = vpop.permute.xlu1 %204 }
 0x127   :  { %v320_v25 = vpop.permute.xlu0 %319  ;;  %3634 = vmatmul.msk.bf16.vlgmr.msra.gmra.mxu1 %vm181_vm1, %v174_v8  ;;  %v210_v26 = vsel %vm181_vm1, %v205_v24, 0 }
 0x128   :  { %359 = vmatpush.bf16.xpose.msrb.mxu1 %v350_v22  ;;  %3638 = vmatmul.msk.bf16.vlgmr.msrb.gmra.mxu0 %vm181_vm1, %v320_v25 }
 0x129   :  { %219 = vmatpush.bf16.xpose.msra.mxu2 %v210_v26  ;;  %471 = vmatpush.bf16.msra.mxu0 %v462_v4 }
 0x130   :  { %3635 = vmatmul.msk.bf16.vlgmr.msra.gmra.mxu2 %vm181_vm1, %v175_v13 }
 0x131   :  { %430 = vmatpush.bf16.msrb.mxu2 %v421_v27 }
 0x137   :  { %3639 = vmatmul.msk.bf16.vlgmr.msrb.gmra.mxu1 %vm181_vm1, %v343_v17 }
 0x1a4   :  { %v197_v28 = vpop.f32.mrf.mxu1 }
 0x1a5   :  { %v338_v29 = vpop.f32.mrf.mxu0  ;;  %v225_v30 = vsel %vm181_vm1, %v197_v28, -inf }
 0x1a6   :  { %226 = vmax.xlane.f32.xlu2 %v225_v30  ;;  %v365_v31 = vsel %vm181_vm1, %v338_v29, -inf }
 0x1a7   :  { %366 = vmax.xlane.f32.xlu0 %v365_v31 }
 0x1ac   :  { %v199_v32 = vpop.f32.mrf.mxu1 }
 0x1ad   :  { %v340_v33 = vpop.f32.mrf.mxu0 }
 0x1b3   :  { %v221_v34 = vpop.f32.mrf.mxu2 }
 0x1b4   :  { %v228_v35 = vsel %vm181_vm1, %v221_v34, -inf  ;;  %v361_v36 = vpop.f32.mrf.mxu1 }
 0x1b5   :  { %229 = vmax.xlane.f32.xlu2 %v228_v35  ;;  %v368_v38 = vsel %vm181_vm1, %v361_v36, -inf }
 0x1bb   :  { %v223_v37 = vpop.f32.mrf.mxu2  ;;  %500 = vrot.lane.b32.xlu0 %v4775_v10, %s4672_s28 }
 0x1bc   :  { %v363_v39 = vpop.f32.mrf.mxu1 }
 0x1bd   :  { %369 = vmax.xlane.f32.xlu2 %v368_v38 }
 0x219   :  { %v227_v40 = vpop.xlane.xlu2 %226 }
 0x21a   :  { %v231_v41 = vsub.f32 %v197_v28, %v227_v40  ;;  %v367_v42 = vpop.xlane.xlu0 %366 }
 0x21b   :  { %v371_v43 = vsub.f32 %v338_v29, %v367_v42 }
 0x21c   :  { %v233_v44 = vmul.f32 1.442695, %v231_v41 }
 0x21d   :  { %v373_v45 = vmul.f32 1.442695, %v371_v43 }
 0x21e   :  { %4393 = vpow2.f32 %v233_v44 }
 0x21f   :  { %4395 = vpow2.f32 %v373_v45 }
 0x224   :  { %v4808_v46 = vpop.eup %4393 }
 0x225   :  { %v4810_v47 = vpop.eup %4395  ;;  %v237_v48 = vsel %vm181_vm1, %v4808_v46, 0.0 }
 0x226   :  { %238 = vadd.xlane.f32.xlu0 %v237_v48  ;;  %v377_v49 = vsel %vm181_vm1, %v4810_v47, 0.0 }
 0x227   :  { %378 = vadd.xlane.f32.xlu1 %v377_v49 }
 0x228   :  { %v230_v50 = vpop.xlane.xlu2 %229 }
 0x229   :  { %v232_v51 = vsub.f32 %v221_v34, %v230_v50 }
 0x22b   :  { %v235_v52 = vmul.f32 1.442695, %v232_v51 }
 0x22d   :  { %4397 = vpow2.f32 %v235_v52  ;;  %v501_v53 = vpop.permute.xlu0 %500 }
 0x22e   :  { %v506_v54 = vsel %vm181_vm1, %v501_v53, 0 }
 0x22f   :  { %515 = vmatpush.bf16.xpose.msra.mxu2 %v506_v54 }
 0x230   :  { %v370_v55 = vpop.xlane.xlu2 %369 }
 0x231   :  { %v372_v56 = vsub.f32 %v361_v36, %v370_v55 }
 0x233   :  { %v4817_v57 = vpop.eup %4397  ;;  %v375_v58 = vmul.f32 1.442695, %v372_v56 }
 0x234   :  { %v240_v59 = vsel %vm181_vm1, %v4817_v57, 0.0 }
 0x235   :  { %4399 = vpow2.f32 %v375_v58  ;;  %241 = vadd.xlane.f32.xlu2 %v240_v59 }
 0x23b   :  { %v4821_v60 = vpop.eup %4399 }
 0x23c   :  { %v380_v61 = vsel %vm181_vm1, %v4821_v60, 0.0 }
 0x23d   :  { %381 = vadd.xlane.f32.xlu2 %v380_v61 }
 0x240   :  { %498 = vrot.lane.b32.xlu1 %v4775_v10, %s4673_s4 }
 0x248   :  { %275 = vrot.lane.b32.xlu1 %v4775_v10, %s4656_s14 }
 0x250   :  { %297 = vrot.lane.b32.xlu1 %v4781_v15, %s4656_s14 }
 0x255   :  { %436 = vrot.lane.b32.xlu2 %v4781_v15, %s4671_s27 }
 0x258   :  { %523 = vrot.lane.b32.xlu1 %v4781_v15, %s4672_s28 }
 0x25d   :  { %594 = vrot.lane.b32.xlu2 %v4775_v10, %s4674_s29 }
 0x260   :  { %521 = vrot.lane.b32.xlu1 %v4781_v15, %s4673_s4 }
 0x265   :  { %684 = vrot.lane.b32.xlu2 %v4781_v15, %s4675_s30 }
 0x26d   :  { %659 = vrot.lane.b32.xlu2 %v4775_v10, %s4676_s1 }
 0x275   :  { %682 = vrot.lane.b32.xlu2 %v4781_v15, %s4676_s1 }
 0x299   :  { %v239_v62 = vpop.xlane.xlu0 %238 }
 0x29a   :  { %v379_v63 = vpop.xlane.xlu1 %378  ;;  %4401 = vrcp.f32 %v239_v62  ;;  %v254_v26 = vand.u32 2147483648, %v239_v62  ;;  %vm248_vm8 = vweird.f32 %v239_v62  ;;  %v252_v27 = vand.u32 2147483647, %v239_v62 }
 0x29b   :  { %4403 = vrcp.f32 %v379_v63  ;;  %v394_v9 = vand.u32 2147483648, %v379_v63  ;;  %v392_v12 = vand.u32 2147483647, %v379_v63  ;;  %vm388_vm4 = vweird.f32 %v379_v63 }
 0x29c   :  { %v255_v31 = vor.u32 1.1754944e-38, %v254_v26  ;;  %vm253_vm10 = vcmp.eq.f32.partialorder %v252_v27, 8.507059e+37 }
 0x29d   :  { %v395_v17 = vor.u32 1.1754944e-38, %v394_v9  ;;  %vm393_vm6 = vcmp.eq.f32.partialorder %v392_v12, 8.507059e+37 }
 0x2a0   :  { %v4402_v1 = vpop.eup %4401 }
 0x2a1   :  { %v4404_v5 = vpop.eup %4403  ;;  %v244_v7 = vmul.f32 %v4402_v1, %v239_v62  ;;  %vm249_vm7 = vweird.f32 %v4402_v1 }
 0x2a2   :  { %v384_v6 = vmul.f32 %v4404_v5, %v379_v63  ;;  %vm389_vm3 = vweird.f32 %v4404_v5  ;;  %vm250_vm9 = vmor %vm248_vm8, %vm249_vm7 }
 0x2a3   :  { %v245_v13 = vsub.f32 1.0, %v244_v7  ;;  %vm390_vm5 = vmor %vm388_vm4, %vm389_vm3  ;;  %v170_v7 = vld [vmem:[#allocation5] sm:$0xf] }
 0x2a4   :  { %v385_v8 = vsub.f32 1.0, %v384_v6 }
 0x2a5   :  { %v246_v19 = vmul.f32 %v4402_v1, %v245_v13 }
 0x2a6   :  { %v386_v11 = vmul.f32 %v4404_v5, %v385_v8  ;;  %v482_v8 = vsel %vm280_vm2, %v170_v7, 0 }
 0x2a7   :  { %v247_v24 = vadd.f32 %v4402_v1, %v246_v19  ;;  %491 = vmatpush.bf16.msra.mxu1 %v482_v8 }
 0x2a8   :  { %v242_v14 = vpop.xlane.xlu2 %241  ;;  %v387_v16 = vadd.f32 %v4404_v5, %v386_v11 }
 0x2a9   :  { %4405 = vrcp.f32 %v242_v14  ;;  %v251_v30 = vsel %vm250_vm9, %v4402_v1, %v247_v24  ;;  %v269_v43 = vand.u32 2147483648, %v242_v14  ;;  %vm263_vm12 = vweird.f32 %v242_v14 }
 0x2aa   :  { %v391_v18 = vsel %vm390_vm5, %v4404_v5, %v387_v16  ;;  %v256_v32 = vsel %vm253_vm10, %v255_v31, %v251_v30  ;;  %v267_v45 = vand.u32 2147483647, %v242_v14 }
 0x2ab   :  { %v396_v20 = vsel %vm393_vm6, %v395_v17, %v391_v18  ;;  %v257_v35 = vmul.f32 %v4808_v46, %v256_v32  ;;  %v270_v50 = vor.u32 1.1754944e-38, %v269_v43 }
 0x2ac   :  { %v397_v21 = vmul.f32 %v4810_v47, %v396_v20  ;;  %vm268_vm14 = vcmp.eq.f32.partialorder %v267_v45, 8.507059e+37 }
 0x2ad   :  { %v273_v39 = vpack.c.bf16 %v257_v35, %v257_v35 }
 0x2ae   :  { %v413_v22 = vpack.c.bf16 %v397_v21, %v397_v21 }
 0x2af   :  { %v4406_v25 = vpop.eup %4405 }
 0x2b0   :  { %v382_v23 = vpop.xlane.xlu2 %381  ;;  %3640 = vmatmul.msk.bf16.vlgmr.msrb.gmra.mxu2 %vm181_vm1, %v413_v22  ;;  %v259_v29 = vmul.f32 %v4406_v25, %v242_v14  ;;  %vm264_vm11 = vweird.f32 %v4406_v25 }
 0x2b1   :  { %4407 = vrcp.f32 %v382_v23  ;;  %vm265_vm13 = vmor %vm263_vm12, %vm264_vm11  ;;  %v409_v62 = vand.u32 2147483648, %v382_v23  ;;  %vm403_vm3 = vweird.f32 %v382_v23  ;;  %v407_v63 = vand.u32 2147483647, %v382_v23 }
 0x2b2   :  { %v499_v28 = vpop.permute.xlu1 %498  ;;  %v260_v33 = vsub.f32 1.0, %v259_v29 }
 0x2b3   :  { %v410_v1 = vor.u32 1.1754944e-38, %v409_v62  ;;  %vm408_vm5 = vcmp.eq.f32.partialorder %v407_v63, 8.507059e+37 }
 0x2b4   :  { %v261_v37 = vmul.f32 %v4406_v25, %v260_v33 }
 0x2b6   :  { %v262_v40 = vadd.f32 %v4406_v25, %v261_v37 }
 0x2b7   :  { %v4408_v42 = vpop.eup %4407 }
 0x2b8   :  { %v437_v34 = vpop.permute.xlu2 %436  ;;  %v399_v47 = vmul.f32 %v4408_v42, %v382_v23  ;;  %v266_v49 = vsel %vm265_vm13, %v4406_v25, %v262_v40  ;;  %vm404_vm15 = vweird.f32 %v4408_v42 }
 0x2b9   :  { %v442_v51 = vsel %vm280_vm2, %v437_v34, 0  ;;  %v271_v52 = vsel %vm268_vm14, %v270_v50, %v266_v49  ;;  %vm405_vm4 = vmor %vm403_vm3, %vm404_vm15 }
 0x2ba   :  { %v276_v36 = vpop.permute.xlu1 %275  ;;  %v400_v53 = vsub.f32 1.0, %v399_v47  ;;  %v272_v54 = vmul.f32 %v4817_v57, %v271_v52 }
 0x2bb   :  { %v282_v38 = vsel %vm280_vm2, %v276_v36, 0 }
 0x2bc   :  { %291 = vmatpush.bf16.msra.mxu3 %v282_v38  ;;  %v401_v55 = vmul.f32 %v4408_v42, %v400_v53  ;;  %v274_v58 = vpack.c.bf16 %v272_v54, %v272_v54 }
 0x2be   :  { %v402_v59 = vadd.f32 %v4408_v42, %v401_v55 }
 0x2bf   :  { %3636 = vmatmul.msk.bf16.vlgmr.msra.gmra.mxu3 %vm181_vm1, %v273_v39 }
 0x2c0   :  { %v595_v41 = vpop.permute.xlu2 %594  ;;  %3644 = vmatmul.msk.bf16.vlgmr.msra.gmra.mxu2 %vm181_vm1, %v499_v28  ;;  %v406_v0 = vsel %vm405_vm4, %v4408_v42, %v402_v59 }
 0x2c1   :  { %v600_v44 = vsel %vm280_vm2, %v595_v41, 0  ;;  %v411_v4 = vsel %vm408_vm5, %v410_v1, %v406_v0 }
 0x2c2   :  { %609 = vmatpush.bf16.msrb.mxu0 %v600_v44  ;;  %v298_v46 = vpop.permute.xlu1 %297  ;;  %v412_v57 = vmul.f32 %v4821_v60, %v411_v4 }
 0x2c3   :  { %v303_v48 = vsel %vm280_vm2, %v298_v46, 0 }
 0x2c4   :  { %312 = vmatpush.bf16.msrb.mxu3 %v303_v48  ;;  %v414_v5 = vpack.c.bf16 %v412_v57, %v412_v57 }
 0x2c8   :  { %451 = vmatpush.bf16.msra.mxu3 %v442_v51  ;;  %v685_v20 = vpop.permute.xlu2 %684 }
 0x2c9   :  { %v690_v23 = vsel %vm181_vm1, %v685_v20, 0 }
 0x2ca   :  { %v524_v56 = vpop.permute.xlu1 %523 }
 0x2cb   :  { %v529_v61 = vsel %vm181_vm1, %v524_v56, 0 }
 0x2cf   :  { %3637 = vmatmul.msk.bf16.vlgmr.msrb.gmra.mxu3 %vm181_vm1, %v274_v58 }
 0x2d0   :  { %538 = vmatpush.bf16.xpose.msrb.mxu3 %v529_v61  ;;  %v660_v53 = vpop.permute.xlu2 %659 }
 0x2d2   :  { %v522_v6 = vpop.permute.xlu1 %521 }
 0x2d8   :  { %v683_v54 = vpop.permute.xlu2 %682 }
 0x2df   :  { %3641 = vmatmul.msk.bf16.vlgmr.msra.gmra.mxu3 %vm181_vm1, %v414_v5 }
 0x2ef   :  { %3645 = vmatmul.msk.bf16.vlgmr.msrb.gmra.mxu3 %vm181_vm1, %v522_v6 }
 0x333   :  { %v432_v9 = vpop.f32.mrf.mxu2 }
 0x33b   :  { %v434_v11 = vpop.f32.mrf.mxu2 }
 0x342   :  { %v293_v12 = vpop.f32.mrf.mxu3 }
 0x343   :  { %v517_v13 = vpop.f32.mrf.mxu2 }
 0x344   :  { %v544_v14 = vsel %vm181_vm1, %v517_v13, -inf }
 0x345   :  { %545 = vmax.xlane.f32.xlu1 %v544_v14 }
 0x34a   :  { %v295_v16 = vpop.f32.mrf.mxu3 }
 0x34b   :  { %v519_v17 = vpop.f32.mrf.mxu2 }
 0x352   :  { %v314_v60 = vpop.f32.mrf.mxu3 }
 0x353   :  { %v318_v18 = vpack.c.bf16 %v314_v60, %v293_v12 }
 0x355   :  { %3643 = vmatmul.msk.bf16.vlgmr.msra.gmra.mxu1 %vm181_vm1, %v318_v18 }
 0x35a   :  { %v316_v19 = vpop.f32.mrf.mxu3 }
 0x35e   :  { %615 = vrot.lane.b32.xlu1 %v4781_v15, %s4674_s29 }
 0x362   :  { %v453_v21 = vpop.f32.mrf.mxu3 }
 0x363   :  { %v457_v22 = vpack.c.bf16 %v453_v21, %v432_v9 }
 0x365   :  { %3642 = vmatmul.msk.bf16.vlgmr.msra.gmra.mxu0 %vm181_vm1, %v457_v22 }
 0x366   :  { %699 = vmatpush.bf16.xpose.msra.mxu0 %v690_v23 }
 0x36a   :  { %v455_v24 = vpop.f32.mrf.mxu3 }
 0x372   :  { %v540_v25 = vpop.f32.mrf.mxu3 }
 0x373   :  { %v547_v37 = vsel %vm181_vm1, %v540_v25, -inf }
 0x37a   :  { %v542_v26 = vpop.f32.mrf.mxu3 }
 0x3b8   :  { %v546_v27 = vpop.xlane.xlu1 %545 }
 0x3b9   :  { %v550_v28 = vsub.f32 %v517_v13, %v546_v27 }
 0x3bb   :  { %v552_v29 = vmul.f32 1.442695, %v550_v28 }
 0x3bd   :  { %4409 = vpow2.f32 %v552_v29 }
 0x3c3   :  { %v4410_v30 = vpop.eup %4409 }
 0x3c4   :  { %v556_v31 = vsel %vm181_vm1, %v4410_v30, 0.0 }
 0x3c5   :  { %557 = vadd.xlane.f32.xlu0 %v556_v31 }
 0x3d0   :  { %v616_v32 = vpop.permute.xlu1 %615 }
 0x3d1   :  { %v621_v33 = vsel %vm280_vm2, %v616_v32, 0  ;;  %v172_v32 = vld [vmem:[#allocation5 + $0x8] sm:$0xf] }
 0x3d2   :  { %630 = vmatpush.bf16.msrb.mxu1 %v621_v33  ;;  %v493_v34 = vpop.f32.mrf.mxu1  ;;  %v641_v33 = vsel %vm280_vm2, %v172_v32, 0 }
 0x3d3   :  { %650 = vmatpush.bf16.msrb.mxu2 %v641_v33 }
 0x3d9   :  { %661 = vrot.lane.b32.xlu0 %v4775_v10, %s4675_s30 }
 0x3e2   :  { %v473_v35 = vpop.f32.mrf.mxu0 }
 0x3e3   :  { %v4872_v36 = vadd.f32 %v493_v34, %v473_v35  ;;  %v4892_v34 = vpop.f32.mrf.mxu1 }
 0x3ea   :  { %v4880_v62 = vpop.f32.mrf.mxu0 }
 0x403   :  { %548 = vmax.xlane.f32.xlu0 %v547_v37 }
 0x438   :  { %v558_v38 = vpop.xlane.xlu0 %557 }
 0x439   :  { %4411 = vrcp.f32 %v558_v38  ;;  %v573_v42 = vand.u32 2147483648, %v558_v38  ;;  %v571_v44 = vand.u32 2147483647, %v558_v38  ;;  %vm567_vm7 = vweird.f32 %v558_v38 }
 0x43b   :  { %v574_v46 = vor.u32 1.1754944e-38, %v573_v42  ;;  %vm572_vm9 = vcmp.eq.f32.partialorder %v571_v44, 8.507059e+37 }
 0x43f   :  { %v4412_v39 = vpop.eup %4411 }
 0x440   :  { %v563_v40 = vmul.f32 %v4412_v39, %v558_v38  ;;  %vm568_vm6 = vweird.f32 %v4412_v39 }
 0x441   :  { %vm569_vm8 = vmor %vm567_vm7, %vm568_vm6 }
 0x442   :  { %v564_v41 = vsub.f32 1.0, %v563_v40 }
 0x444   :  { %v565_v43 = vmul.f32 %v4412_v39, %v564_v41 }
 0x446   :  { %v566_v45 = vadd.f32 %v4412_v39, %v565_v43 }
 0x448   :  { %v570_v47 = vsel %vm569_vm8, %v4412_v39, %v566_v45 }
 0x449   :  { %v575_v48 = vsel %vm572_vm9, %v574_v46, %v570_v47 }
 0x44a   :  { %v576_v49 = vmul.f32 %v4410_v30, %v575_v48 }
 0x44b   :  { %v662_v50 = vpop.permute.xlu0 %661 }
 0x44c   :  { %v667_v51 = vsel %vm181_vm1, %v662_v50, 0  ;;  %v592_v52 = vpack.c.bf16 %v576_v49, %v576_v49 }
 0x44d   :  { %676 = vmatpush.bf16.xpose.msra.mxu3 %v667_v51 }
 0x44e   :  { %3646 = vmatmul.msk.bf16.vlgmr.msrb.gmra.mxu0 %vm181_vm1, %v592_v52 }
 0x454   :  { %3649 = vmatmul.msk.bf16.vlgmr.msra.gmra.mxu3 %vm181_vm1, %v660_v53 }
 0x45e   :  { %3650 = vmatmul.msk.bf16.vlgmr.msra.gmra.mxu0 %vm181_vm1, %v683_v54 }
 0x476   :  { %v549_v55 = vpop.xlane.xlu0 %548 }
 0x477   :  { %v551_v56 = vsub.f32 %v540_v25, %v549_v55 }
 0x479   :  { %v554_v58 = vmul.f32 1.442695, %v551_v56 }
 0x47b   :  { %4413 = vpow2.f32 %v554_v58 }
 0x481   :  { %v4414_v59 = vpop.eup %4413 }
 0x482   :  { %v559_v61 = vsel %vm181_vm1, %v4414_v59, 0.0 }
 0x483   :  { %560 = vadd.xlane.f32.xlu2 %v559_v61 }
 0x4cb   :  { %v611_v63 = vpop.f32.mrf.mxu0 }
 0x4d3   :  { %v613_v0 = vpop.f32.mrf.mxu0 }
 0x4d7   :  { %v678_v1 = vpop.f32.mrf.mxu3 }
 0x4d8   :  { %v705_v4 = vsel %vm181_vm1, %v678_v1, -inf }
 0x4d9   :  { %706 = vmax.xlane.f32.xlu0 %v705_v4 }
 0x4db   :  { %v701_v57 = vpop.f32.mrf.mxu0 }
 0x4dc   :  { %v708_v5 = vsel %vm181_vm1, %v701_v57, -inf }
 0x4dd   :  { %709 = vmax.xlane.f32.xlu1 %v708_v5 }
 0x4df   :  { %v680_v6 = vpop.f32.mrf.mxu3 }
 0x4e3   :  { %v703_v7 = vpop.f32.mrf.mxu0 }
 0x4f6   :  { %v561_v8 = vpop.xlane.xlu2 %560 }
 0x4f7   :  { %4415 = vrcp.f32 %v561_v8  ;;  %v588_v13 = vand.u32 2147483648, %v561_v8  ;;  %v586_v16 = vand.u32 2147483647, %v561_v8  ;;  %vm582_vm11 = vweird.f32 %v561_v8 }
 0x4f9   :  { %v589_v60 = vor.u32 1.1754944e-38, %v588_v13  ;;  %vm587_vm13 = vcmp.eq.f32.partialorder %v586_v16, 8.507059e+37 }
 0x4fd   :  { %v4416_v9 = vpop.eup %4415 }
 0x4fe   :  { %v578_v11 = vmul.f32 %v4416_v9, %v561_v8  ;;  %vm583_vm10 = vweird.f32 %v4416_v9 }
 0x4ff   :  { %vm584_vm12 = vmor %vm582_vm11, %vm583_vm10 }
 0x500   :  { %v579_v12 = vsub.f32 1.0, %v578_v11 }
 0x502   :  { %v580_v14 = vmul.f32 %v4416_v9, %v579_v12 }
 0x504   :  { %v581_v17 = vadd.f32 %v4416_v9, %v580_v14 }
 0x506   :  { %v585_v18 = vsel %vm584_vm12, %v4416_v9, %v581_v17  ;;  %v173_v9 = vld [vmem:[#allocation5 + $0xc] sm:$0xf] }
 0x507   :  { %v590_v19 = vsel %vm587_vm13, %v589_v60, %v585_v18  ;;  %v802_v11 = vsel %vm280_vm2, %v173_v9, 0  ;;  %v4902_v18 = vld [vmem:[#allocation11] sm:$0xff] }
 0x508   :  { %v591_v20 = vmul.f32 %v4414_v59, %v590_v19  ;;  %811 = vmatpush.bf16.msrb.mxu3 %v802_v11  ;;  %v820_v19 = vperm.slane %v4902_v18, 0 }
 0x50a   :  { %v593_v21 = vpack.c.bf16 %v591_v20, %v591_v20 }
 0x50c   :  { %3647 = vmatmul.msk.bf16.vlgmr.msrb.gmra.mxu1 %vm181_vm1, %v593_v21 }
 0x54c   :  { %v707_v22 = vpop.xlane.xlu0 %706 }
 0x54d   :  { %v711_v23 = vsub.f32 %v678_v1, %v707_v22 }
 0x54f   :  { %v713_v24 = vmul.f32 1.442695, %v711_v23 }
 0x550   :  { %v710_v25 = vpop.xlane.xlu1 %709 }
 0x551   :  { %4417 = vpow2.f32 %v713_v24  ;;  %v712_v26 = vsub.f32 %v701_v57, %v710_v25 }
 0x553   :  { %v715_v27 = vmul.f32 1.442695, %v712_v26 }
 0x555   :  { %4419 = vpow2.f32 %v715_v27 }
 0x557   :  { %v4418_v28 = vpop.eup %4417 }
 0x558   :  { %v717_v29 = vsel %vm181_vm1, %v4418_v28, 0.0 }
 0x559   :  { %718 = vadd.xlane.f32.xlu0 %v717_v29 }
 0x55b   :  { %v4420_v30 = vpop.eup %4419 }
 0x55c   :  { %v720_v31 = vsel %vm181_vm1, %v4420_v30, 0.0 }
 0x55d   :  { %721 = vadd.xlane.f32.xlu2 %v720_v31  ;;  %v4678_v31 = vmov 32.0  }
 0x56d   :  { %755 = vrot.lane.b32.xlu0 %v4775_v10, %s4677_s10 }
 0x575   :  { %776 = vrot.lane.b32.xlu2 %v4781_v15, %s4677_s10 }
 0x589   :  { %v632_v35 = vpop.f32.mrf.mxu1 }
 0x58a   :  { %v636_v37 = vpack.c.bf16 %v632_v35, %v611_v63 }
 0x58c   :  { %3648 = vmatmul.msk.bf16.vlgmr.msrb.gmra.mxu2 %vm181_vm1, %v636_v37 }
 0x591   :  { %v634_v38 = vpop.f32.mrf.mxu1 }
 0x5cc   :  { %v719_v39 = vpop.xlane.xlu0 %718 }
 0x5cd   :  { %4421 = vrcp.f32 %v719_v39  ;;  %v732_v45 = vand.u32 2147483647, %v719_v39  ;;  %v734_v10 = vand.u32 2147483648, %v719_v39  ;;  %vm728_vm15 = vweird.f32 %v719_v39 }
 0x5cf   :  { %vm733_vm4 = vcmp.eq.f32.partialorder %v732_v45, 8.507059e+37  ;;  %v735_v51 = vor.u32 1.1754944e-38, %v734_v10  ;;  %v3720_v10 = vld [vmem:[#allocation7 + $0x80] sm:$0xf] }
 0x5d0   :  { %v722_v40 = vpop.xlane.xlu2 %721 }
 0x5d1   :  { %4423 = vrcp.f32 %v722_v40  ;;  %v749_v52 = vand.u32 2147483648, %v722_v40  ;;  %v747_v55 = vand.u32 2147483647, %v722_v40  ;;  %vm743_vm6 = vweird.f32 %v722_v40 }
 0x5d2   :  { %4425 = vrcp.f32 %v4678_v31 }
 0x5d3   :  { %v4422_v41 = vpop.eup %4421  ;;  %v750_v61 = vor.u32 1.1754944e-38, %v749_v52  ;;  %vm748_vm8 = vcmp.eq.f32.partialorder %v747_v55, 8.507059e+37  ;;  %v3730_v55 = vld [vmem:[#allocation7 + $0xc8] sm:$0xf0] }
 0x5d4   :  { %v724_v42 = vmul.f32 %v4422_v41, %v719_v39  ;;  %vm729_vm14 = vweird.f32 %v4422_v41 }
 0x5d5   :  { %vm730_vm3 = vmor %vm728_vm15, %vm729_vm14 }
 0x5d6   :  { %v725_v43 = vsub.f32 1.0, %v724_v42 }
 0x5d7   :  { %v4424_v44 = vpop.eup %4423 }
 0x5d8   :  { %v726_v46 = vmul.f32 %v4422_v41, %v725_v43  ;;  %v739_v15 = vmul.f32 %v4424_v44, %v722_v40  ;;  %v777_v47 = vpop.permute.xlu2 %776  ;;  %vm744_vm5 = vweird.f32 %v4424_v44  ;;  %v4426_v32 = vpop.eup %4425 }
 0x5d9   :  { %v782_v48 = vsel %vm280_vm2, %v777_v47, 0  ;;  %vm745_vm7 = vmor %vm743_vm6, %vm744_vm5  ;;  %v832_v33 = vmul.f32 32.0, %v4426_v32  ;;  %vm836_vm9 = vweird.f32 %v4426_v32 }
 0x5da   :  { %v727_v49 = vadd.f32 %v4422_v41, %v726_v46  ;;  %v740_v50 = vsub.f32 1.0, %v739_v15  ;;  %791 = vmatpush.bf16.msra.mxu2 %v782_v48  ;;  %v4254_v46 = vld [vmem:[#allocation7 + $0xbc] sm:$0xf0]  ;;  %v4246_v15 = vld [vmem:[#allocation7 + $0x84] sm:$0xf] }
 0x5db   :  { %v833_v35 = vsub.f32 1.0, %v832_v33  ;;  %v3721_v47 = vor.u32 %v4254_v46, %v3720_v10  ;;  %v3722_v48 = vld [vmem:[#allocation7 + $0xc0] sm:$0xf0]  ;;  %v3674_v33 = vld [vmem:[#allocation7 + $0x50] sm:$0xf0] }
 0x5dc   :  { %v731_v53 = vsel %vm730_vm3, %v4422_v41, %v727_v49  ;;  %v741_v54 = vmul.f32 %v4424_v44, %v740_v50  ;;  %v3728_v49 = vld [vmem:[#allocation7 + $0x88] sm:$0xf]  ;;  %v3725_v52 = vor.u32 %v4246_v15, %v3722_v48 }
 0x5dd   :  { %v736_v56 = vsel %vm733_vm4, %v735_v51, %v731_v53  ;;  %v4255_v50 = vld [vmem:[#allocation7 + $0xc4] sm:$0xf0]  ;;  %1120 = vmatpush.bf16.msrb.mxu0 %v3721_v47 }
 0x5de   :  { %v737_v58 = vmul.f32 %v4418_v28, %v736_v56  ;;  %v742_v59 = vadd.f32 %v4424_v44, %v741_v54  ;;  %v3729_v53 = vor.u32 %v4255_v50, %v3728_v49  ;;  %v4247_v54 = vld [vmem:[#allocation7 + $0x8c] sm:$0xf]  ;;  %v876_v50 = vperm.slane %v4902_v18, 1 }
 0x5df   :  { %v756_v63 = vpop.permute.xlu0 %755 }
 0x5e0   :  { %v746_v0 = vsel %vm745_vm7, %v4424_v44, %v742_v59  ;;  %v761_v1 = vsel %vm280_vm2, %v756_v63, 0  ;;  %v753_v5 = vpack.c.bf16 %v737_v58, %v737_v58  ;;  %v3733_v58 = vor.u32 %v4247_v54, %v3730_v55  ;;  %1148 = vmatpush.bf16.msrb.mxu2 %v3729_v53  ;;  %v3656_v59 = vld [vmem:[#allocation7] sm:$0xf]  ;;  %v4230_v63 = vld [vmem:[#allocation7 + $0x4] sm:$0xf] }
 0x5e1   :  { %v751_v4 = vsel %vm748_vm8, %v750_v61, %v746_v0  ;;  %770 = vmatpush.bf16.msra.mxu1 %v761_v1  ;;  %v4238_v61 = vld [vmem:[#allocation7 + $0x3c] sm:$0xf0]  ;;  %v879_v54 = vperm.slane %v4902_v18, 2 }
 0x5e2   :  { %v752_v57 = vmul.f32 %v4420_v30, %v751_v4  ;;  %1162 = vmatpush.bf16.msra.mxu3 %v3733_v58  ;;  %v3657_v1 = vor.u32 %v4238_v61, %v3656_v59  ;;  %v3658_v4 = vld [vmem:[#allocation7 + $0x40] sm:$0xf0]  ;;  %v3752_v59 = vld [vmem:[#allocation7 + $0xa0] sm:$0xf] }
 0x5e3   :  { %v4258_v61 = vld [vmem:[#allocation7 + $0xdc] sm:$0xf0] }
 0x5e4   :  { %3651 = vmatmul.msk.bf16.vlgmr.msra.gmra.mxu1 %vm181_vm1, %v753_v5  ;;  %v754_v6 = vpack.c.bf16 %v752_v57, %v752_v57  ;;  %v3664_v57 = vld [vmem:[#allocation7 + $0x8] sm:$0xf]  ;;  %v3661_v5 = vor.u32 %v4230_v63, %v3658_v4  ;;  %1121 = vmatpush.bf16.msrb.mxu0 %v3657_v1  ;;  %v4250_v63 = vld [vmem:[#allocation7 + $0xa4] sm:$0xf] }
 0x5e5   :  { %1134 = vmatpush.bf16.msrb.mxu1 %v3725_v52  ;;  %v3760_v1 = vld [vmem:[#allocation7 + $0xa8] sm:$0xf] }
 0x5e6   :  { %3652 = vmatmul.msk.bf16.vlgmr.msra.gmra.mxu2 %vm181_vm1, %v754_v6  ;;  %v4239_v6 = vld [vmem:[#allocation7 + $0x44] sm:$0xf0] }
 0x5e7   :  { %v3665_v9 = vor.u32 %v4239_v6, %v3664_v57  ;;  %v3762_v6 = vld [vmem:[#allocation7 + $0xe8] sm:$0xf0] }
 0x5e9   :  { %1135 = vmatpush.bf16.msrb.mxu1 %v3661_v5  ;;  %1149 = vmatpush.bf16.msrb.mxu2 %v3665_v9  ;;  %v4251_v5 = vld [vmem:[#allocation7 + $0xac] sm:$0xf] }
 0x60f   :  { %v652_v7 = vpop.f32.mrf.mxu2 }
 0x610   :  { %v657_v8 = vadd.f32 %v652_v7, %v4872_v36  ;;  %v496_v36 = vadd.f32 %v4892_v34, %v4880_v62  ;;  %v834_v62 = vmul.f32 %v4426_v32, %v833_v35  ;;  %v4231_v7 = vld [vmem:[#allocation7 + $0xc] sm:$0xf]  ;;  %v3680_v35 = vld [vmem:[#allocation7 + $0x18] sm:$0xf] }
 0x612   :  { %v835_v34 = vadd.f32 %v4426_v32, %v834_v62  ;;  %v4241_v62 = vld [vmem:[#allocation7 + $0x54] sm:$0xf0] }
 0x617   :  { %v654_v12 = vpop.f32.mrf.mxu2 }
 0x618   :  { %v658_v24 = vadd.f32 %v654_v12, %v496_v36 }
 0x661   :  { %v772_v13 = vpop.f32.mrf.mxu1 }
 0x669   :  { %v774_v14 = vpop.f32.mrf.mxu1  ;;  %v793_v16 = vpop.f32.mrf.mxu2 }
 0x66a   :  { %v797_v17 = vpack.c.bf16 %v793_v16, %v772_v13  ;;  %v3736_v13 = vld [vmem:[#allocation7 + $0x90] sm:$0xf]  ;;  %v4248_v16 = vld [vmem:[#allocation7 + $0x94] sm:$0xf] }
 0x66b   :  { %v4256_v14 = vld [vmem:[#allocation7 + $0xcc] sm:$0xf0] }
 0x66c   :  { %3653 = vmatmul.msk.bf16.vlgmr.msrb.gmra.mxu3 %vm181_vm1, %v797_v17 }
 0x671   :  { %v795_v60 = vpop.f32.mrf.mxu2 }
 0x672   :  { %v3737_v60 = vor.u32 %v4256_v14, %v3736_v13  ;;  %v3765_v13 = vor.u32 %v4251_v5, %v3762_v6  ;;  %v4234_v14 = vld [vmem:[#allocation7 + $0x24] sm:$0xf]  ;;  %v3808_v6 = vld [vmem:[#allocation8 + $0x8] sm:$0xf] }
 0x674   :  { %1176 = vmatpush.bf16.msra.mxu0 %v3737_v60  ;;  %v4243_v60 = vld [vmem:[#allocation7 + $0x64] sm:$0xf0] }
 0x6ef   :  { %v813_v20 = vpop.f32.mrf.mxu3 }
 0x6f0   :  { %v818_v21 = vadd.f32 %v813_v20, %v657_v8  ;;  %v3666_v8 = vld [vmem:[#allocation7 + $0x48] sm:$0xf0]  ;;  %v3744_v20 = vld [vmem:[#allocation7 + $0x98] sm:$0xf] }
 0x6f1   :  { %v3669_v11 = vor.u32 %v4231_v7, %v3666_v8  ;;  %v3753_v8 = vor.u32 %v4258_v61, %v3752_v59  ;;  %v3800_v61 = vld [vmem:[#allocation8] sm:$0xf] }
 0x6f2   :  { %v821_v22 = vadd.f32 %v820_v19, %v818_v21  ;;  %v4257_v21 = vld [vmem:[#allocation7 + $0xd4] sm:$0xf0] }
 0x6f3   :  { %1163 = vmatpush.bf16.msra.mxu3 %v3669_v11  ;;  %v3745_v36 = vor.u32 %v4257_v21, %v3744_v20  ;;  %v4242_v11 = vld [vmem:[#allocation7 + $0x5c] sm:$0xf0]  ;;  %v3698_v20 = vld [vmem:[#allocation7 + $0x68] sm:$0xf0] }
 0x6f4   :  { %v823_v23 = vadd.f32 %v821_v22, %v4762_v2  ;;  %v4911_v2 = vsel %vm836_vm9, %v4426_v32, %v835_v34 }
 0x6f5   :  { %1204 = vmatpush.bf16.msra.mxu2 %v3745_v36 }
 0x6f6   :  { %v825_v25 = vsel %vm152_vm0, %v823_v23, 0.0 }
 0x6f7   :  { %826 = vadd.xlane.f32.xlu1 %v825_v25  ;;  %v815_v26 = vpop.f32.mrf.mxu3  ;;  %v3672_v25 = vld [vmem:[#allocation7 + $0x10] sm:$0xf] }
 0x6f8   :  { %v819_v27 = vadd.f32 %v815_v26, %v658_v24  ;;  %v3746_v24 = vld [vmem:[#allocation7 + $0xd8] sm:$0xf0] }
 0x6fa   :  { %v822_v28 = vadd.f32 %v820_v19, %v819_v27  ;;  %v3738_v19 = vld [vmem:[#allocation7 + $0xd0] sm:$0xf0] }
 0x6fb   :  { %v3741_v22 = vor.u32 %v4248_v16, %v3738_v19  ;;  %v3690_v16 = vld [vmem:[#allocation7 + $0x60] sm:$0xf0]  ;;  %v4235_v19 = vld [vmem:[#allocation7 + $0x2c] sm:$0xf] }
 0x6fc   :  { %v824_v29 = vadd.f32 %v822_v28, %v4767_v3 }
 0x6fd   :  { %1190 = vmatpush.bf16.msra.mxu1 %v3741_v22  ;;  %v3693_v22 = vor.u32 %v4234_v14, %v3690_v16  ;;  %v4280_v14 = vld [vmem:[#allocation8 + $0x94] sm:$0xf] }
 0x6fe   :  { %v828_v30 = vsel %vm152_vm0, %v824_v29, 0.0 }
 0x6ff   :  { %829 = vadd.xlane.f32.xlu0 %v828_v30  ;;  %v4232_v30 = vld [vmem:[#allocation7 + $0x14] sm:$0xf] }
 0x700   :  { %v3677_v34 = vor.u32 %v4232_v30, %v3674_v33  ;;  %v4253_v30 = vld [vmem:[#allocation7 + $0xbc] sm:$0xf] }
 0x702   :  { %1191 = vmatpush.bf16.msra.mxu1 %v3677_v34 }
 0x76a   :  { %v827_v37 = vpop.xlane.xlu1 %826 }
 0x76b   :  { %v838_v38 = vmul.f32 %v4911_v2, %v827_v37  ;;  %v3681_v37 = vor.u32 %v4241_v62, %v3680_v35  ;;  %v3704_v35 = vld [vmem:[#allocation7 + $0x30] sm:$0xf] }
 0x76c   :  { %v4244_v62 = vld [vmem:[#allocation7 + $0x6c] sm:$0xf0] }
 0x76d   :  { %v4914_v39 = vsub.f32 %v823_v23, %v838_v38  ;;  %v4249_v23 = vld [vmem:[#allocation7 + $0x9c] sm:$0xf]  ;;  %1205 = vmatpush.bf16.msra.mxu2 %v3681_v37 }
 0x76e   :  { %v3749_v28 = vor.u32 %v4249_v23, %v3746_v24  ;;  %v4233_v38 = vld [vmem:[#allocation7 + $0x1c] sm:$0xf]  ;;  %v3701_v23 = vor.u32 %v4235_v19, %v3698_v20  ;;  %v3768_v24 = vld [vmem:[#allocation7 + $0xb0] sm:$0xf]  ;;  %v3888_v19 = vld [vmem:[#allocation8 + $0x98] sm:$0xf] }
 0x76f   :  { %v842_v3 = vmul.f32 %v4914_v39, %v4914_v39  ;;  %v4289_v20 = vld [vmem:[#allocation8 + $0xd4] sm:$0xf0] }
 0x770   :  { %1218 = vmatpush.bf16.msrb.mxu3 %v3749_v28  ;;  %v3776_v28 = vld [vmem:[#allocation7 + $0xb8] sm:$0xf] }
 0x771   :  { %v844_v40 = vsel %vm152_vm0, %v842_v3, 0.0  ;;  %v3682_v3 = vld [vmem:[#allocation7 + $0x58] sm:$0xf0] }
 0x772   :  { %845 = vadd.xlane.f32.xlu2 %v844_v40  ;;  %v830_v41 = vpop.xlane.xlu0 %829 }
 0x773   :  { %v839_v42 = vmul.f32 %v4911_v2, %v830_v41  ;;  %v3685_v41 = vor.u32 %v4233_v38, %v3682_v3  ;;  %v4236_v38 = vld [vmem:[#allocation7 + $0x34] sm:$0xf] }
 0x774   :  { %v3706_v3 = vld [vmem:[#allocation7 + $0x70] sm:$0xf0] }
 0x775   :  { %v4920_v43 = vsub.f32 %v824_v29, %v839_v42  ;;  %v4240_v29 = vld [vmem:[#allocation7 + $0x4c] sm:$0xf0]  ;;  %1219 = vmatpush.bf16.msrb.mxu3 %v3685_v41  ;;  %v4245_v41 = vld [vmem:[#allocation7 + $0x74] sm:$0xf0] }
 0x776   :  { %v3673_v32 = vor.u32 %v4240_v29, %v3672_v25  ;;  %v4260_v25 = vld [vmem:[#allocation7 + $0xec] sm:$0xf0]  ;;  %v4261_v29 = vld [vmem:[#allocation7 + $0xf4] sm:$0xf0] }
 0x777   :  { %v843_v44 = vmul.f32 %v4920_v43, %v4920_v43  ;;  %v3777_v34 = vor.u32 %v4261_v29, %v3776_v28  ;;  %v3818_v28 = vld [vmem:[#allocation8 + $0x50] sm:$0xf0] }
 0x778   :  { %1177 = vmatpush.bf16.msra.mxu0 %v3673_v32  ;;  %v3769_v32 = vor.u32 %v4260_v25, %v3768_v24  ;;  %v3816_v24 = vld [vmem:[#allocation8 + $0x10] sm:$0xf] }
 0x779   :  { %v847_v45 = vsel %vm152_vm0, %v843_v44, 0.0  ;;  %v4272_v25 = vld [vmem:[#allocation8 + $0x4c] sm:$0xf0] }
 0x77a   :  { %848 = vadd.xlane.f32.xlu1 %v847_v45 }
 0x7e5   :  { %v846_v51 = vpop.xlane.xlu2 %845 }
 0x7e6   :  { %v850_v56 = vmul.f32 %v846_v51, %v4911_v2 }
 0x7e8   :  { %v4926_v0 = vadd.f32 1e-05, %v850_v56 }
 0x7ea   :  { %4427 = vrsqrt.f32 %v4926_v0  ;;  %vm860_vm11 = vweird.f32 %v4926_v0 }
 0x7ed   :  { %v849_v12 = vpop.xlane.xlu1 %848 }
 0x7ee   :  { %v851_v17 = vmul.f32 %v849_v12, %v4911_v2 }
 0x7f0   :  { %v4428_v26 = vpop.eup %4427  ;;  %v853_v27 = vadd.f32 1e-05, %v851_v17  ;;  %v3696_v17 = vld [vmem:[#allocation7 + $0x28] sm:$0xf] }
 0x7f1   :  { %v855_v31 = vmul.f32 %v4428_v26, %v4926_v0  ;;  %vm861_vm10 = vweird.f32 %v4428_v26  ;;  %v3754_v0 = vld [vmem:[#allocation7 + $0xe0] sm:$0xf0]  ;;  %v3697_v36 = vor.u32 %v4243_v60, %v3696_v17  ;;  %v3882_v17 = vld [vmem:[#allocation8 + $0xd0] sm:$0xf0] }
 0x7f2   :  { %4429 = vrsqrt.f32 %v853_v27  ;;  %vm862_vm12 = vmor %vm860_vm11, %vm861_vm10  ;;  %vm870_vm14 = vweird.f32 %v853_v27  ;;  %v3757_v9 = vor.u32 %v4250_v63, %v3754_v0  ;;  %v4270_v63 = vld [vmem:[#allocation8 + $0x3c] sm:$0xf0]  ;;  %v3885_v60 = vor.u32 %v4280_v14, %v3882_v17  ;;  %v3906_v14 = vld [vmem:[#allocation8 + $0xe8] sm:$0xf0] }
 0x7f3   :  { %v856_v40 = vmul.f32 %v4428_v26, %v855_v31  ;;  %v3778_v31 = vld [vmem:[#allocation7 + $0xf8] sm:$0xf0]  ;;  %v3801_v0 = vor.u32 %v4270_v63, %v3800_v61  ;;  %v4274_v17 = vld [vmem:[#allocation8 + $0x5c] sm:$0xf0] }
 0x7f4   :  { %v3781_v37 = vor.u32 %v4253_v30, %v3778_v31  ;;  %v3824_v30 = vld [vmem:[#allocation8 + $0x18] sm:$0xf] }
 0x7f5   :  { %v857_v42 = vmul.f32 0.5, %v856_v40  ;;  %v3712_v40 = vld [vmem:[#allocation7 + $0x38] sm:$0xf] }
 0x7f6   :  { %v4273_v31 = vld [vmem:[#allocation8 + $0x54] sm:$0xf0] }
 0x7f7   :  { %v858_v44 = vsub.f32 1.5, %v857_v42  ;;  %v4237_v42 = vld [vmem:[#allocation7 + $0x3c] sm:$0xf] }
 0x7f8   :  { %v4430_v45 = vpop.eup %4429 }
 0x7f9   :  { %v859_v10 = vmul.f32 %v4428_v26, %v858_v44  ;;  %v865_v46 = vmul.f32 %v4430_v45, %v853_v27  ;;  %vm871_vm13 = vweird.f32 %v4430_v45  ;;  %v3770_v27 = vld [vmem:[#allocation7 + $0xf0] sm:$0xf0]  ;;  %v3714_v44 = vld [vmem:[#allocation7 + $0x78] sm:$0xf0] }
 0x7fa   :  { %vm872_vm15 = vmor %vm870_vm14, %vm871_vm13 }
 0x7fb   :  { %v866_v15 = vmul.f32 %v4430_v45, %v865_v46  ;;  %v863_v47 = vsel %vm862_vm12, %v4428_v26, %v859_v10  ;;  %v4252_v26 = vld [vmem:[#allocation7 + $0xb4] sm:$0xf]  ;;  %v3709_v10 = vor.u32 %v4236_v38, %v3706_v3  ;;  %v3713_v46 = vor.u32 %v4245_v41, %v3712_v40 }
 0x7fc   :  { %v874_v51 = vmul.f32 %v863_v47, %v4914_v39  ;;  %v4259_v39 = vld [vmem:[#allocation7 + $0xe4] sm:$0xf0]  ;;  %v3773_v33 = vor.u32 %v4252_v26, %v3770_v27  ;;  %v3864_v47 = vld [vmem:[#allocation8 + $0x80] sm:$0xf]  ;;  %v3817_v26 = vor.u32 %v4272_v25, %v3816_v24  ;;  %v4264_v27 = vld [vmem:[#allocation8 + $0x14] sm:$0xf] }
 0x7fd   :  { %v867_v48 = vmul.f32 0.5, %v866_v15  ;;  %v3761_v12 = vor.u32 %v4259_v39, %v3760_v1  ;;  %v3717_v15 = vor.u32 %v4237_v42, %v3714_v44  ;;  %v4262_v1 = vld [vmem:[#allocation8 + $0x4] sm:$0xf]  ;;  %v3821_v29 = vor.u32 %v4264_v27, %v3818_v28 }
 0x7fe   :  { %v877_v55 = vmul.f32 %v876_v50, %v874_v51  ;;  %v3866_v51 = vld [vmem:[#allocation8 + $0xc0] sm:$0xf0] }
 0x7ff   :  { %v868_v49 = vsub.f32 1.5, %v867_v48  ;;  %v4286_v48 = vld [vmem:[#allocation8 + $0xbc] sm:$0xf0]  ;;  %v3802_v39 = vld [vmem:[#allocation8 + $0x40] sm:$0xf0] }
 0x800   :  { %v4936_v4 = vadd.f32 %v879_v54, %v877_v55  ;;  %v4279_v55 = vld [vmem:[#allocation8 + $0x8c] sm:$0xf]  ;;  %v3805_v5 = vor.u32 %v4262_v1, %v3802_v39 }
 0x801   :  { %v869_v52 = vmul.f32 %v4430_v45, %v868_v49  ;;  %v4278_v49 = vld [vmem:[#allocation8 + $0x84] sm:$0xf] }
 0x803   :  { %v873_v53 = vsel %vm872_vm15, %v4430_v45, %v869_v52  ;;  %v3705_v45 = vor.u32 %v4244_v62, %v3704_v35  ;;  %v3869_v52 = vor.u32 %v4278_v49, %v3866_v51  ;;  %v3826_v35 = vld [vmem:[#allocation8 + $0x58] sm:$0xf0]  ;;  %v4290_v49 = vld [vmem:[#allocation8 + $0xdc] sm:$0xf0]  ;;  %v3898_v51 = vld [vmem:[#allocation8 + $0xe0] sm:$0xf0] }
 0x804   :  { %v875_v56 = vmul.f32 %v873_v53, %v4920_v43  ;;  %v3688_v43 = vld [vmem:[#allocation7 + $0x20] sm:$0xf]  ;;  %v3872_v53 = vld [vmem:[#allocation8 + $0x88] sm:$0xf] }
 0x805   :  { %v3689_v21 = vor.u32 %v4242_v11, %v3688_v43  ;;  %v3810_v43 = vld [vmem:[#allocation8 + $0x48] sm:$0xf0] }
 0x806   :  { %v878_v58 = vmul.f32 %v876_v50, %v875_v56  ;;  %v3865_v50 = vor.u32 %v4286_v48, %v3864_v47 }
 0x808   :  { %v4938_v57 = vadd.f32 %v879_v54, %v878_v58  ;;  %v4287_v54 = vld [vmem:[#allocation8 + $0xc4] sm:$0xf0]  ;;  %v3874_v58 = vld [vmem:[#allocation8 + $0xc8] sm:$0xf0] }
 0x809   :  { %v3873_v56 = vor.u32 %v4287_v54, %v3872_v53  ;;  %v3877_v59 = vor.u32 %v4279_v55, %v3874_v58 }
 0x80a   :  { %v4942_v7 = vpack.c.bf16 %v4938_v57, %v4936_v4 }
 0x80c   :  { %3782 = vmatmul.msk.bf16.vlgmr.msrb.gmra.mxu0 %vm152_vm0, %v4942_v7  ;;  %3783 = vmatmul.msk.bf16.vlgmr.msrb.gmra.mxu1 %vm152_vm0, %v4942_v7 }
 0x80d   :  { %3784 = vmatmul.msk.bf16.vlgmr.msrb.gmra.mxu2 %vm152_vm0, %v4942_v7  ;;  %3785 = vmatmul.msk.bf16.vlgmr.msra.gmra.mxu3 %vm152_vm0, %v4942_v7 }
 0x80e   :  { %1232 = vmatpush.bf16.msrb.mxu0 %v3753_v8  ;;  %1246 = vmatpush.bf16.msrb.mxu1 %v3757_v9  ;;  %v4263_v8 = vld [vmem:[#allocation8 + $0xc] sm:$0xf] }
 0x80f   :  { %1260 = vmatpush.bf16.msrb.mxu2 %v3761_v12  ;;  %1274 = vmatpush.bf16.msra.mxu3 %v3765_v13  ;;  %v3813_v11 = vor.u32 %v4263_v8, %v3810_v43  ;;  %v3880_v12 = vld [vmem:[#allocation8 + $0x90] sm:$0xf]  ;;  %v4291_v8 = vld [vmem:[#allocation8 + $0xe4] sm:$0xf0] }
 0x810   :  { %v4288_v13 = vld [vmem:[#allocation8 + $0xcc] sm:$0xf0] }
 0x811   :  { %v3881_v16 = vor.u32 %v4288_v13, %v3880_v12  ;;  %v4283_v13 = vld [vmem:[#allocation8 + $0xac] sm:$0xf] }
 0x812   :  { %1233 = vmatpush.bf16.msrb.mxu0 %v3689_v21  ;;  %1247 = vmatpush.bf16.msrb.mxu1 %v3693_v22  ;;  %v4281_v21 = vld [vmem:[#allocation8 + $0x9c] sm:$0xf]  ;;  %v3889_v22 = vor.u32 %v4289_v20, %v3888_v19  ;;  %v3834_v19 = vld [vmem:[#allocation8 + $0x60] sm:$0xf0] }
 0x813   :  { %1261 = vmatpush.bf16.msrb.mxu2 %v3697_v36  ;;  %1275 = vmatpush.bf16.msra.mxu3 %v3701_v23  ;;  %v3890_v36 = vld [vmem:[#allocation8 + $0xd8] sm:$0xf0] }
 0x814   :  { %v3893_v23 = vor.u32 %v4281_v21, %v3890_v36 }
 0x81c   :  { %3786 = vmatmul.msk.bf16.vlgmr.msra.gmra.mxu0 %vm152_vm0, %v4942_v7  ;;  %3787 = vmatmul.msk.bf16.vlgmr.msra.gmra.mxu1 %vm152_vm0, %v4942_v7 }
 0x81d   :  { %3788 = vmatmul.msk.bf16.vlgmr.msra.gmra.mxu2 %vm152_vm0, %v4942_v7  ;;  %3789 = vmatmul.msk.bf16.vlgmr.msrb.gmra.mxu3 %vm152_vm0, %v4942_v7 }
 0x81e   :  { %1288 = vmatpush.bf16.msra.mxu0 %v3769_v32  ;;  %1302 = vmatpush.bf16.msra.mxu1 %v3773_v33  ;;  %v4265_v32 = vld [vmem:[#allocation8 + $0x1c] sm:$0xf]  ;;  %v3825_v33 = vor.u32 %v4273_v31, %v3824_v30 }
 0x81f   :  { %1316 = vmatpush.bf16.msra.mxu2 %v3777_v34  ;;  %1330 = vmatpush.bf16.msrb.mxu3 %v3781_v37  ;;  %v3829_v62 = vor.u32 %v4265_v32, %v3826_v35  ;;  %v4976_v34 = vld [vmem:[#allocation10] sm:$0xff] }
 0x820   :  { %v919_v3 = vperm.slane %v4976_v34, 0  ;;  %v920_v40 = vperm.slane %v4976_v34, 1  ;;  %v922_v53 = vperm.slane %v4976_v34, 3  ;;  %v924_v24 = vperm.slane %v4976_v34, 5 }
 0x822   :  { %1289 = vmatpush.bf16.msra.mxu0 %v3705_v45  ;;  %1303 = vmatpush.bf16.msra.mxu1 %v3709_v10 }
 0x823   :  { %1317 = vmatpush.bf16.msra.mxu2 %v3713_v46  ;;  %1331 = vmatpush.bf16.msrb.mxu3 %v3717_v15  ;;  %v3896_v15 = vld [vmem:[#allocation8 + $0xa0] sm:$0xf] }
 0x82c   :  { %3790 = vmatmul.msk.bf16.vlgmr.msrb.gmra.mxu0 %vm152_vm0, %v4942_v7  ;;  %3791 = vmatmul.msk.bf16.vlgmr.msrb.gmra.mxu1 %vm152_vm0, %v4942_v7 }
 0x82d   :  { %3792 = vmatmul.msk.bf16.vlgmr.msrb.gmra.mxu2 %vm152_vm0, %v4942_v7  ;;  %3793 = vmatmul.msk.bf16.vlgmr.msra.gmra.mxu3 %vm152_vm0, %v4942_v7 }
 0x82e   :  { %1585 = vmatpush.bf16.xpose.msrb.mxu0 %v3865_v50  ;;  %1599 = vmatpush.bf16.xpose.msrb.mxu1 %v3869_v52  ;;  %v4282_v50 = vld [vmem:[#allocation8 + $0xa4] sm:$0xf]  ;;  %v921_v52 = vperm.slane %v4976_v34, 2 }
 0x82f   :  { %1613 = vmatpush.bf16.xpose.msrb.mxu2 %v3873_v56  ;;  %1627 = vmatpush.bf16.xpose.msra.mxu3 %v3877_v59  ;;  %v3897_v59 = vor.u32 %v4290_v49, %v3896_v15  ;;  %v3901_v61 = vor.u32 %v4282_v50, %v3898_v51  ;;  %v4292_v15 = vld [vmem:[#allocation8 + $0xec] sm:$0xf0] }
 0x836   :  { %1586 = vmatpush.bf16.xpose.msrb.mxu0 %v3801_v0  ;;  %1600 = vmatpush.bf16.xpose.msrb.mxu1 %v3805_v5 }
 0x837   :  { %1628 = vmatpush.bf16.xpose.msra.mxu3 %v3813_v11 }
 0x83c   :  { %3794 = vmatmul.msk.bf16.vlgmr.msra.gmra.mxu0 %vm152_vm0, %v4942_v7  ;;  %3795 = vmatmul.msk.bf16.vlgmr.msra.gmra.mxu1 %vm152_vm0, %v4942_v7 }
 0x83d   :  { %3796 = vmatmul.msk.bf16.vlgmr.msra.gmra.mxu2 %vm152_vm0, %v4942_v7  ;;  %3797 = vmatmul.msk.bf16.vlgmr.msrb.gmra.mxu3 %vm152_vm0, %v4942_v7  ;;  %v4271_v7 = vld [vmem:[#allocation8 + $0x44] sm:$0xf0] }
 0x83e   :  { %v3809_v9 = vor.u32 %v4271_v7, %v3808_v6  ;;  %1641 = vmatpush.bf16.xpose.msra.mxu0 %v3881_v16  ;;  %1655 = vmatpush.bf16.xpose.msra.mxu1 %v3885_v60  ;;  %v3904_v7 = vld [vmem:[#allocation8 + $0xa8] sm:$0xf]  ;;  %v3832_v16 = vld [vmem:[#allocation8 + $0x20] sm:$0xf]  ;;  %v4266_v60 = vld [vmem:[#allocation8 + $0x24] sm:$0xf] }
 0x83f   :  { %1683 = vmatpush.bf16.xpose.msrb.mxu3 %v3893_v23  ;;  %v923_v23 = vperm.slane %v4976_v34, 4  ;;  %v3905_v25 = vor.u32 %v4291_v8, %v3904_v7  ;;  %v3837_v30 = vor.u32 %v4266_v60, %v3834_v19 }
 0x840   :  { %1614 = vmatpush.bf16.xpose.msrb.mxu2 %v3809_v9 }
 0x846   :  { %1642 = vmatpush.bf16.xpose.msra.mxu0 %v3817_v26  ;;  %1656 = vmatpush.bf16.xpose.msra.mxu1 %v3821_v29  ;;  %v3909_v26 = vor.u32 %v4283_v13, %v3906_v14  ;;  %v3833_v29 = vor.u32 %v4274_v17, %v3832_v16  ;;  %v4276_v13 = vld [vmem:[#allocation8 + $0x6c] sm:$0xf0]  ;;  %v4268_v14 = vld [vmem:[#allocation8 + $0x34] sm:$0xf] }
 0x847   :  { %1684 = vmatpush.bf16.xpose.msrb.mxu3 %v3829_v62  ;;  %v925_v62 = vperm.slane %v4976_v34, 6 }
 0x848   :  { %1669 = vmatpush.bf16.xpose.msra.mxu2 %v3889_v22 }
 0x850   :  { %1670 = vmatpush.bf16.xpose.msra.mxu2 %v3825_v33 }
 0x889   :  { %v1123_v37 = vpop.f32.mrf.mxu0  ;;  %v1137_v38 = vpop.f32.mrf.mxu1 }
 0x88a   :  { %v1124_v41 = vadd.f32 %v1123_v37, %v919_v3  ;;  %v1138_v42 = vadd.f32 %v1137_v38, %v920_v40  ;;  %v926_v37 = vperm.slane %v4976_v34, 7 }
 0x88c   :  { %v1338_v54 = vmax.f32 %v1124_v41, 0.0  ;;  %v1339_v55 = vmax.f32 %v1138_v42, 0.0  ;;  %v4275_v41 = vld [vmem:[#allocation8 + $0x64] sm:$0xf0] }
 0x890   :  { %v1151_v44 = vpop.f32.mrf.mxu2  ;;  %v1165_v45 = vpop.f32.mrf.mxu3 }
 0x891   :  { %v1125_v10 = vpop.f32.mrf.mxu0  ;;  %v1139_v46 = vpop.f32.mrf.mxu1  ;;  %v1152_v1 = vadd.f32 %v1151_v44, %v921_v52  ;;  %v1166_v39 = vadd.f32 %v1165_v45, %v922_v53  ;;  %v4267_v45 = vld [vmem:[#allocation8 + $0x2c] sm:$0xf] }
 0x892   :  { %v1126_v47 = vadd.f32 %v1125_v10, %v919_v3  ;;  %v1140_v48 = vadd.f32 %v1139_v46, %v920_v40  ;;  %v3840_v40 = vld [vmem:[#allocation8 + $0x28] sm:$0xf]  ;;  %v3842_v10 = vld [vmem:[#allocation8 + $0x68] sm:$0xf0]  ;;  %v3912_v46 = vld [vmem:[#allocation8 + $0xb0] sm:$0xf] }
 0x893   :  { %v1340_v20 = vmax.f32 %v1152_v1, 0.0  ;;  %v1341_v21 = vmax.f32 %v1166_v39, 0.0  ;;  %v3845_v34 = vor.u32 %v4267_v45, %v3842_v10  ;;  %v4986_v1 = vld [vmem:[#allocation10 + $0x8] sm:$0xff]  ;;  %v3920_v39 = vld [vmem:[#allocation8 + $0xb8] sm:$0xf] }
 0x894   :  { %v1354_v56 = vmax.f32 %v1126_v47, 0.0  ;;  %v1355_v58 = vmax.f32 %v1140_v48, 0.0  ;;  %v4284_v47 = vld [vmem:[#allocation8 + $0xb4] sm:$0xf] }
 0x895   :  { %v3914_v48 = vld [vmem:[#allocation8 + $0xf0] sm:$0xf0] }
 0x896   :  { %v1370_v63 = vpack.c.bf16 %v1354_v56, %v1338_v54  ;;  %v1371_v0 = vpack.c.bf16 %v1355_v58, %v1339_v55  ;;  %v3913_v56 = vor.u32 %v4292_v15, %v3912_v46  ;;  %v3917_v58 = vor.u32 %v4284_v47, %v3914_v48 }
 0x898   :  { %v1153_v5 = vpop.f32.mrf.mxu2  ;;  %v1167_v6 = vpop.f32.mrf.mxu3  ;;  %1587 = vmatmul.bf16.vlgmr.msrb.gmra.mxu0 %v1370_v63  ;;  %1601 = vmatmul.bf16.vlgmr.msrb.gmra.mxu1 %v1371_v0 }
 0x899   :  { %v1154_v9 = vadd.f32 %v1153_v5, %v921_v52  ;;  %v1168_v43 = vadd.f32 %v1167_v6, %v922_v53  ;;  %v1179_v11 = vpop.f32.mrf.mxu0  ;;  %v1193_v12 = vpop.f32.mrf.mxu1  ;;  %1697 = vmatpush.bf16.xpose.msrb.mxu0 %v3897_v59  ;;  %1711 = vmatpush.bf16.xpose.msrb.mxu1 %v3901_v61  ;;  %v3841_v53 = vor.u32 %v4275_v41, %v3840_v40  ;;  %v3858_v40 = vld [vmem:[#allocation8 + $0x78] sm:$0xf0]  ;;  %v929_v41 = vperm.slane %v4986_v1, 2 }
 0x89a   :  { %v1180_v31 = vadd.f32 %v1179_v11, %v923_v23  ;;  %v1194_v32 = vadd.f32 %v1193_v12, %v924_v24  ;;  %v3922_v11 = vld [vmem:[#allocation8 + $0xf8] sm:$0xf0]  ;;  %v3848_v12 = vld [vmem:[#allocation8 + $0x30] sm:$0xf] }
 0x89b   :  { %v1356_v22 = vmax.f32 %v1154_v9, 0.0  ;;  %v1357_v36 = vmax.f32 %v1168_v43, 0.0  ;;  %v4293_v9 = vld [vmem:[#allocation8 + $0xf4] sm:$0xf0]  ;;  %v4285_v43 = vld [vmem:[#allocation8 + $0xbc] sm:$0xf] }
 0x89c   :  { %v1342_v49 = vmax.f32 %v1180_v31, 0.0  ;;  %v1343_v50 = vmax.f32 %v1194_v32, 0.0 }
 0x89d   :  { %v1372_v27 = vpack.c.bf16 %v1356_v22, %v1340_v20  ;;  %v1373_v28 = vpack.c.bf16 %v1357_v36, %v1341_v21  ;;  %v3850_v20 = vld [vmem:[#allocation8 + $0x70] sm:$0xf0]  ;;  %v927_v21 = vperm.slane %v4986_v1, 0  ;;  %v928_v22 = vperm.slane %v4986_v1, 1 }
 0x89e   :  { %v3921_v36 = vor.u32 %v4293_v9, %v3920_v39  ;;  %v932_v39 = vperm.slane %v4986_v1, 5 }
 0x89f   :  { %1615 = vmatmul.bf16.vlgmr.msrb.gmra.mxu2 %v1372_v27  ;;  %1629 = vmatmul.bf16.vlgmr.msra.gmra.mxu3 %v1373_v28  ;;  %v3853_v27 = vor.u32 %v4268_v14, %v3850_v20 }
 0x8a0   :  { %v1207_v33 = vpop.f32.mrf.mxu2  ;;  %v1221_v35 = vpop.f32.mrf.mxu3  ;;  %1725 = vmatpush.bf16.xpose.msrb.mxu2 %v3905_v25  ;;  %1739 = vmatpush.bf16.xpose.msra.mxu3 %v3909_v26  ;;  %v3849_v26 = vor.u32 %v4276_v13, %v3848_v12 }
 0x8a1   :  { %v1181_v38 = vpop.f32.mrf.mxu0  ;;  %v1195_v3 = vpop.f32.mrf.mxu1  ;;  %1698 = vmatpush.bf16.xpose.msrb.mxu0 %v3833_v29  ;;  %1712 = vmatpush.bf16.xpose.msrb.mxu1 %v3837_v30  ;;  %v1208_v59 = vadd.f32 %v1207_v33, %v925_v62  ;;  %v1222_v61 = vadd.f32 %v1221_v35, %v926_v37  ;;  %v3856_v35 = vld [vmem:[#allocation8 + $0x38] sm:$0xf] }
 0x8a2   :  { %v1182_v42 = vadd.f32 %v1181_v38, %v923_v23  ;;  %v1196_v44 = vadd.f32 %v1195_v3, %v924_v24  ;;  %v3925_v23 = vor.u32 %v4285_v43, %v3922_v11  ;;  %v4277_v38 = vld [vmem:[#allocation8 + $0x74] sm:$0xf0]  ;;  %v4269_v3 = vld [vmem:[#allocation8 + $0x3c] sm:$0xf] }
 0x8a3   :  { %v1344_v16 = vmax.f32 %v1208_v59, 0.0  ;;  %v1345_v17 = vmax.f32 %v1222_v61, 0.0  ;;  %v3857_v15 = vor.u32 %v4277_v38, %v3856_v35  ;;  %v3861_v47 = vor.u32 %v4269_v3, %v3858_v40 }
 0x8a4   :  { %v1358_v51 = vmax.f32 %v1182_v42, 0.0  ;;  %v1359_v52 = vmax.f32 %v1196_v44, 0.0  ;;  %v930_v42 = vperm.slane %v4986_v1, 3  ;;  %v1418_v3 = vperm.slane %v4902_v18, 3 }
 0x8a6   :  { %v1374_v54 = vpack.c.bf16 %v1358_v51, %v1342_v49  ;;  %v1375_v55 = vpack.c.bf16 %v1359_v52, %v1343_v50 }
 0x8a8   :  { %v1209_v63 = vpop.f32.mrf.mxu2  ;;  %v1223_v0 = vpop.f32.mrf.mxu3  ;;  %1643 = vmatmul.bf16.vlgmr.msra.gmra.mxu0 %v1374_v54  ;;  %1657 = vmatmul.bf16.vlgmr.msra.gmra.mxu1 %v1375_v55 }
 0x8a9   :  { %v1210_v5 = vadd.f32 %v1209_v63, %v925_v62  ;;  %v1224_v6 = vadd.f32 %v1223_v0, %v926_v37  ;;  %v1235_v7 = vpop.f32.mrf.mxu0  ;;  %v1249_v8 = vpop.f32.mrf.mxu1  ;;  %1726 = vmatpush.bf16.xpose.msrb.mxu2 %v3841_v53  ;;  %1740 = vmatpush.bf16.xpose.msra.mxu3 %v3845_v34  ;;  %v931_v0 = vperm.slane %v4986_v1, 4 }
 0x8aa   :  { %1753 = vmatpush.bf16.xpose.msra.mxu0 %v3913_v56  ;;  %1767 = vmatpush.bf16.xpose.msra.mxu1 %v3917_v58  ;;  %v1236_v28 = vadd.f32 %v1235_v7, %v927_v21  ;;  %v1250_v29 = vadd.f32 %v1249_v8, %v928_v22 }
 0x8ab   :  { %v1360_v60 = vmax.f32 %v1210_v5, 0.0  ;;  %v1361_v19 = vmax.f32 %v1224_v6, 0.0 }
 0x8ac   :  { %v1346_v44 = vmax.f32 %v1236_v28, 0.0  ;;  %v1347_v45 = vmax.f32 %v1250_v29, 0.0 }
 0x8ad   :  { %v1376_v24 = vpack.c.bf16 %v1360_v60, %v1344_v16  ;;  %v1377_v25 = vpack.c.bf16 %v1361_v19, %v1345_v17  ;;  %v933_v16 = vperm.slane %v4986_v1, 6  ;;  %v934_v17 = vperm.slane %v4986_v1, 7 }
 0x8af   :  { %1671 = vmatmul.bf16.vlgmr.msra.gmra.mxu2 %v1376_v24  ;;  %1685 = vmatmul.bf16.vlgmr.msrb.gmra.mxu3 %v1377_v25 }
 0x8b0   :  { %v1263_v30 = vpop.f32.mrf.mxu2  ;;  %v1277_v31 = vpop.f32.mrf.mxu3 }
 0x8b1   :  { %1781 = vmatpush.bf16.xpose.msra.mxu2 %v3921_v36  ;;  %1795 = vmatpush.bf16.xpose.msrb.mxu3 %v3925_v23  ;;  %v1237_v32 = vpop.f32.mrf.mxu0  ;;  %v1251_v33 = vpop.f32.mrf.mxu1  ;;  %v1264_v50 = vadd.f32 %v1263_v30, %v929_v41  ;;  %v1278_v51 = vadd.f32 %v1277_v31, %v930_v42 }
 0x8b2   :  { %v1238_v62 = vadd.f32 %v1237_v32, %v927_v21  ;;  %v1252_v37 = vadd.f32 %v1251_v33, %v928_v22  ;;  %1754 = vmatpush.bf16.xpose.msra.mxu0 %v3849_v26  ;;  %1768 = vmatpush.bf16.xpose.msra.mxu1 %v3853_v27 }
 0x8b3   :  { %v1348_v58 = vmax.f32 %v1264_v50, 0.0  ;;  %v1349_v59 = vmax.f32 %v1278_v51, 0.0 }
 0x8b4   :  { %v1362_v10 = vmax.f32 %v1238_v62, 0.0  ;;  %v1363_v46 = vmax.f32 %v1252_v37, 0.0 }
 0x8b6   :  { %v1378_v48 = vpack.c.bf16 %v1362_v10, %v1346_v44  ;;  %v1379_v49 = vpack.c.bf16 %v1363_v46, %v1347_v45 }
 0x8b8   :  { %v1265_v52 = vpop.f32.mrf.mxu2  ;;  %v1279_v53 = vpop.f32.mrf.mxu3  ;;  %1699 = vmatmul.bf16.vlgmr.msrb.gmra.mxu0 %v1378_v48  ;;  %1713 = vmatmul.bf16.vlgmr.msrb.gmra.mxu1 %v1379_v49 }
 0x8b9   :  { %v1266_v34 = vadd.f32 %v1265_v52, %v929_v41  ;;  %v1280_v54 = vadd.f32 %v1279_v53, %v930_v42  ;;  %v1291_v55 = vpop.f32.mrf.mxu0  ;;  %v1305_v56 = vpop.f32.mrf.mxu1  ;;  %1782 = vmatpush.bf16.xpose.msra.mxu2 %v3857_v15  ;;  %1796 = vmatpush.bf16.xpose.msrb.mxu3 %v3861_v47 }
 0x8ba   :  { %v1292_v7 = vadd.f32 %v1291_v55, %v931_v0  ;;  %v1306_v8 = vadd.f32 %v1305_v56, %v932_v39 }
 0x8bb   :  { %v1364_v61 = vmax.f32 %v1266_v34, 0.0  ;;  %v1365_v63 = vmax.f32 %v1280_v54, 0.0 }
 0x8bc   :  { %v1350_v60 = vmax.f32 %v1292_v7, 0.0  ;;  %v1351_v19 = vmax.f32 %v1306_v8, 0.0 }
 0x8bd   :  { %v1380_v5 = vpack.c.bf16 %v1364_v61, %v1348_v58  ;;  %v1381_v6 = vpack.c.bf16 %v1365_v63, %v1349_v59 }
 0x8bf   :  { %1727 = vmatmul.bf16.vlgmr.msrb.gmra.mxu2 %v1380_v5  ;;  %1741 = vmatmul.bf16.vlgmr.msra.gmra.mxu3 %v1381_v6 }
 0x8c0   :  { %v1319_v9 = vpop.f32.mrf.mxu2  ;;  %v1333_v43 = vpop.f32.mrf.mxu3 }
 0x8c1   :  { %v1293_v11 = vpop.f32.mrf.mxu0  ;;  %v1307_v12 = vpop.f32.mrf.mxu1  ;;  %v1320_v23 = vadd.f32 %v1319_v9, %v933_v16  ;;  %v1334_v24 = vadd.f32 %v1333_v43, %v934_v17 }
 0x8c2   :  { %v1294_v13 = vadd.f32 %v1293_v11, %v931_v0  ;;  %v1308_v14 = vadd.f32 %v1307_v12, %v932_v39 }
 0x8c3   :  { %v1352_v29 = vmax.f32 %v1320_v23, 0.0  ;;  %v1353_v30 = vmax.f32 %v1334_v24, 0.0 }
 0x8c4   :  { %v1366_v20 = vmax.f32 %v1294_v13, 0.0  ;;  %v1367_v21 = vmax.f32 %v1308_v14, 0.0 }
 0x8c6   :  { %v1382_v22 = vpack.c.bf16 %v1366_v20, %v1350_v60  ;;  %v1383_v36 = vpack.c.bf16 %v1367_v21, %v1351_v19 }
 0x8c8   :  { %v1321_v25 = vpop.f32.mrf.mxu2  ;;  %v1335_v26 = vpop.f32.mrf.mxu3  ;;  %1755 = vmatmul.bf16.vlgmr.msra.gmra.mxu0 %v1382_v22  ;;  %1769 = vmatmul.bf16.vlgmr.msra.gmra.mxu1 %v1383_v36 }
 0x8c9   :  { %v1322_v27 = vadd.f32 %v1321_v25, %v933_v16  ;;  %v1336_v28 = vadd.f32 %v1335_v26, %v934_v17 }
 0x8cb   :  { %v1368_v31 = vmax.f32 %v1322_v27, 0.0  ;;  %v1369_v32 = vmax.f32 %v1336_v28, 0.0 }
 0x8cd   :  { %v1384_v33 = vpack.c.bf16 %v1368_v31, %v1352_v29  ;;  %v1385_v1 = vpack.c.bf16 %v1369_v32, %v1353_v30 }
 0x8cf   :  { %1783 = vmatmul.bf16.vlgmr.msra.gmra.mxu2 %v1384_v33  ;;  %1797 = vmatmul.bf16.vlgmr.msrb.gmra.mxu3 %v1385_v1 }
 0x915   :  { %v1588_v35 = vpop.f32.mrf.mxu0  ;;  %v1602_v62 = vpop.f32.mrf.mxu1 }
 0x916   :  { %v1589_v42 = vadd.f32 %v1588_v35, %v1418_v3 }
 0x918   :  { %v1603_v10 = vadd.f32 %v1602_v62, %v1589_v42 }
 0x91d   :  { %v1590_v37 = vpop.f32.mrf.mxu0  ;;  %v1604_v38 = vpop.f32.mrf.mxu1 }
 0x91e   :  { %v1591_v48 = vadd.f32 %v1590_v37, %v1418_v3 }
 0x920   :  { %v1605_v51 = vadd.f32 %v1604_v38, %v1591_v48 }
 0x922   :  { %v1616_v40 = vpop.f32.mrf.mxu2  ;;  %v1630_v41 = vpop.f32.mrf.mxu3 }
 0x923   :  { %v1617_v46 = vadd.f32 %v1616_v40, %v1603_v10 }
 0x925   :  { %v1644_v44 = vpop.f32.mrf.mxu0  ;;  %v1658_v45 = vpop.f32.mrf.mxu1  ;;  %v1631_v49 = vadd.f32 %v1630_v41, %v1617_v46 }
 0x927   :  { %v1645_v53 = vadd.f32 %v1644_v44, %v1631_v49 }
 0x929   :  { %v1659_v56 = vadd.f32 %v1658_v45, %v1645_v53  ;;  %v4294_v53 = vld [vmem:[#allocation2 + $0x10] sm:$0xff] }
 0x92a   :  { %v1618_v15 = vpop.f32.mrf.mxu2  ;;  %v1632_v47 = vpop.f32.mrf.mxu3 }
 0x92b   :  { %v1619_v34 = vadd.f32 %v1618_v15, %v1605_v51 }
 0x92d   :  { %v1646_v50 = vpop.f32.mrf.mxu0  ;;  %v1660_v52 = vpop.f32.mrf.mxu1  ;;  %v1633_v18 = vadd.f32 %v1632_v47, %v1619_v34 }
 0x92f   :  { %v1647_v61 = vadd.f32 %v1646_v50, %v1633_v18 }
 0x931   :  { %v1661_v6 = vadd.f32 %v1660_v52, %v1647_v61 }
 0x932   :  { %v1672_v54 = vpop.f32.mrf.mxu2  ;;  %v1686_v55 = vpop.f32.mrf.mxu3 }
 0x933   :  { %v1673_v59 = vadd.f32 %v1672_v54, %v1659_v56 }
 0x935   :  { %v1700_v58 = vpop.f32.mrf.mxu0  ;;  %v1714_v63 = vpop.f32.mrf.mxu1  ;;  %v1687_v5 = vadd.f32 %v1686_v55, %v1673_v59 }
 0x937   :  { %v1701_v8 = vadd.f32 %v1700_v58, %v1687_v5 }
 0x939   :  { %v1715_v12 = vadd.f32 %v1714_v63, %v1701_v8 }
 0x93a   :  { %v1674_v0 = vpop.f32.mrf.mxu2  ;;  %v1688_v39 = vpop.f32.mrf.mxu3 }
 0x93b   :  { %v1675_v9 = vadd.f32 %v1674_v0, %v1661_v6 }
 0x93d   :  { %v1702_v7 = vpop.f32.mrf.mxu0  ;;  %v1689_v13 = vadd.f32 %v1688_v39, %v1675_v9  ;;  %v1716_v14 = vpop.f32.mrf.mxu1 }
 0x93f   :  { %v1703_v17 = vadd.f32 %v1702_v7, %v1689_v13 }
 0x941   :  { %v1717_v22 = vadd.f32 %v1716_v14, %v1703_v17 }
 0x942   :  { %v1728_v43 = vpop.f32.mrf.mxu2  ;;  %v1742_v11 = vpop.f32.mrf.mxu3 }
 0x943   :  { %v1729_v16 = vadd.f32 %v1728_v43, %v1715_v12  ;;  %v4475_v43 = vld [vmem:[#allocation11] sm:$0xff] }
 0x945   :  { %v1756_v60 = vpop.f32.mrf.mxu0  ;;  %v1743_v19 = vadd.f32 %v1742_v11, %v1729_v16  ;;  %v1770_v24 = vpop.f32.mrf.mxu1  ;;  %v1849_v11 = vperm.slane %v4475_v43, 4  ;;  %v1852_v16 = vperm.slane %v4475_v43, 5 }
 0x947   :  { %v1757_v36 = vadd.f32 %v1756_v60, %v1743_v19 }
 0x949   :  { %v1771_v25 = vadd.f32 %v1770_v24, %v1757_v36  ;;  %v4392_v36 = vld [vmem:[%s5272_s5 + $0x1] ss:$0 sm:$0xff] }
 0x94a   :  { %v1730_v20 = vpop.f32.mrf.mxu2  ;;  %v1744_v21 = vpop.f32.mrf.mxu3 }
 0x94b   :  { %v1731_v23 = vadd.f32 %v1730_v20, %v1717_v22 }
 0x94d   :  { %v1745_v26 = vadd.f32 %v1744_v21, %v1731_v23  ;;  %v1758_v27 = vpop.f32.mrf.mxu0  ;;  %v1772_v1 = vpop.f32.mrf.mxu1 }
 0x94f   :  { %v1759_v31 = vadd.f32 %v1758_v27, %v1745_v26 }
 0x951   :  { %v1773_v35 = vadd.f32 %v1772_v1, %v1759_v31 }
 0x952   :  { %v1784_v28 = vpop.f32.mrf.mxu2  ;;  %v1798_v29 = vpop.f32.mrf.mxu3 }
 0x953   :  { %v1785_v30 = vadd.f32 %v1784_v28, %v1771_v25 }
 0x955   :  { %v1799_v32 = vadd.f32 %v1798_v29, %v1785_v30 }
 0x957   :  { %v1803_v33 = vadd.f32 %v1799_v32, %v4936_v4 }
 0x959   :  { %v1805_v62 = vsel %vm152_vm0, %v1803_v33, 0.0 }
 0x95a   :  { %v1786_v37 = vpop.f32.mrf.mxu2  ;;  %1806 = vadd.xlane.f32.xlu1 %v1805_v62  ;;  %v1800_v3 = vpop.f32.mrf.mxu3 }
 0x95b   :  { %v1787_v38 = vadd.f32 %v1786_v37, %v1773_v35 }
 0x95d   :  { %v1801_v40 = vadd.f32 %v1800_v3, %v1787_v38 }
 0x95f   :  { %v1804_v41 = vadd.f32 %v1801_v40, %v4938_v57  ;;  %v4295_v57 = vld [vmem:[#allocation2 + $0x18] sm:$0xff] }
 0x960   :  { %1889 = vmatpush.bf16.msrb.mxu0 %v4295_v57 }
 0x961   :  { %v1808_v42 = vsel %vm152_vm0, %v1804_v41, 0.0 }
 0x962   :  { %1809 = vadd.xlane.f32.xlu1 %v1808_v42 }
 0x964   :  { %1890 = vmatpush.bf16.msrb.mxu0 %v4294_v53 }
 0x9cd   :  { %v1807_v44 = vpop.xlane.xlu1 %1806 }
 0x9ce   :  { %v1811_v45 = vmul.f32 %v1807_v44, %v4911_v2 }
 0x9d0   :  { %v1813_v10 = vsub.f32 %v1803_v33, %v1811_v45 }
 0x9d2   :  { %v1815_v46 = vmul.f32 %v1813_v10, %v1813_v10 }
 0x9d4   :  { %v1817_v4 = vsel %vm152_vm0, %v1815_v46, 0.0 }
 0x9d5   :  { %1818 = vadd.xlane.f32.xlu1 %v1817_v4  ;;  %v1810_v15 = vpop.xlane.xlu1 %1809 }
 0x9d6   :  { %v1812_v47 = vmul.f32 %v1810_v15, %v4911_v2 }
 0x9d8   :  { %v1814_v48 = vsub.f32 %v1804_v41, %v1812_v47 }
 0x9da   :  { %v1816_v49 = vmul.f32 %v1814_v48, %v1814_v48 }
 0x9dc   :  { %v1820_v50 = vsel %vm152_vm0, %v1816_v49, 0.0 }
 0x9dd   :  { %1821 = vadd.xlane.f32.xlu1 %v1820_v50 }
 0xa48   :  { %v1819_v51 = vpop.xlane.xlu1 %1818 }
 0xa49   :  { %v1823_v52 = vmul.f32 %v1819_v51, %v4911_v2 }
 0xa4b   :  { %v1825_v34 = vadd.f32 1e-05, %v1823_v52 }
 0xa4d   :  { %4431 = vrsqrt.f32 %v1825_v34  ;;  %vm1833_vm4 = vweird.f32 %v1825_v34 }
 0xa50   :  { %v1822_v54 = vpop.xlane.xlu1 %1821 }
 0xa51   :  { %v1824_v55 = vmul.f32 %v1822_v54, %v4911_v2 }
 0xa53   :  { %v4432_v56 = vpop.eup %4431  ;;  %v1826_v18 = vadd.f32 1e-05, %v1824_v55 }
 0xa54   :  { %v1828_v58 = vmul.f32 %v4432_v56, %v1825_v34  ;;  %vm1834_vm3 = vweird.f32 %v4432_v56 }
 0xa55   :  { %4433 = vrsqrt.f32 %v1826_v18  ;;  %vm1835_vm5 = vmor %vm1833_vm4, %vm1834_vm3  ;;  %vm1843_vm7 = vweird.f32 %v1826_v18 }
 0xa56   :  { %v1829_v59 = vmul.f32 %v4432_v56, %v1828_v58 }
 0xa58   :  { %v1830_v61 = vmul.f32 0.5, %v1829_v59 }
 0xa5a   :  { %v1831_v63 = vsub.f32 1.5, %v1830_v61 }
 0xa5b   :  { %v4434_v0 = vpop.eup %4433 }
 0xa5c   :  { %v1832_v39 = vmul.f32 %v4432_v56, %v1831_v63  ;;  %v1838_v5 = vmul.f32 %v4434_v0, %v1826_v18  ;;  %vm1844_vm6 = vweird.f32 %v4434_v0 }
 0xa5d   :  { %vm1845_vm8 = vmor %vm1843_vm7, %vm1844_vm6 }
 0xa5e   :  { %v1839_v6 = vmul.f32 %v4434_v0, %v1838_v5  ;;  %v1836_v7 = vsel %vm1835_vm5, %v4432_v56, %v1832_v39 }
 0xa5f   :  { %v1847_v12 = vmul.f32 %v1836_v7, %v1813_v10 }
 0xa60   :  { %v1840_v8 = vmul.f32 0.5, %v1839_v6 }
 0xa61   :  { %v1850_v17 = vmul.f32 %v1849_v11, %v1847_v12 }
 0xa62   :  { %v1841_v9 = vsub.f32 1.5, %v1840_v8 }
 0xa63   :  { %v5007_v20 = vadd.f32 %v1852_v16, %v1850_v17 }
 0xa64   :  { %v1842_v13 = vmul.f32 %v4434_v0, %v1841_v9 }
 0xa66   :  { %v1846_v14 = vsel %vm1845_vm8, %v4434_v0, %v1842_v13 }
 0xa67   :  { %v1848_v60 = vmul.f32 %v1846_v14, %v1814_v48 }
 0xa69   :  { %v1851_v19 = vmul.f32 %v1849_v11, %v1848_v60 }
 0xa6b   :  { %v5009_v21 = vadd.f32 %v1852_v16, %v1851_v19 }
 0xa6d   :  { %v1857_v22 = vpack.c.bf16 %v5009_v21, %v5007_v20 }
 0xa6f   :  { %3935 = vmatmul.msk.bf16.vlgmr.msrb.gmra.mxu0 %vm152_vm0, %v1857_v22 }
 0xaec   :  { %v1892_v23 = vpop.f32.mrf.mxu0 }
 0xaed   :  { %v1893_v24 = vadd.f32 %v4392_v36, %v1892_v23 }
 0xaef   :  { %v1902_v25 = vpack.c.bf16 %v1893_v24, %v1893_v24 }
 0xaf1   :  { %v1905_v26 = vunpack.c.l.b16 %v1902_v25 }
 0xaf3   :  { %v5017_v27 = vpack.c.b16 %v1905_v26, %v1905_v26 }
 0xaf4   :  { %v1894_v28 = vpop.f32.mrf.mxu0 }
 0xaf5   :  { %v1895_v29 = vadd.f32 %v4392_v36, %v1894_v28  ;;  %2045 = vrot.lane.b32.xlu1 %v5017_v27, %s4670_s26  ;;  %2047 = vrot.lane.b32.xlu0 %v5017_v27, %s4669_s25 }
 0xaf6   :  { %1907 = vrot.lane.b32.xlu2 %v5017_v27, %s4668_s0 }
 0xaf7   :  { %v1903_v30 = vpack.c.bf16 %v1895_v29, %v1895_v29 }
 0xaf9   :  { %v1929_v31 = vunpack.c.l.b16 %v1903_v30 }
 0xafb   :  { %v5025_v32 = vpack.c.b16 %v1929_v31, %v1929_v31 }
 0xafd   :  { %1931 = vrot.lane.b32.xlu0 %v5025_v32, %s4668_s0 }
 0xafe   :  { %2070 = vrot.lane.b32.xlu2 %v5025_v32, %s4669_s25 }
 0xb05   :  { %2068 = vrot.lane.b32.xlu0 %v5025_v32, %s4670_s26 }
 0xb50   :  { %v1908_v33 = vpop.permute.xlu2 %1907 }
 0xb51   :  { %v1913_v1 = vsel %vm181_vm1, %v1908_v33, 0 }
 0xb52   :  { %1922 = vmatpush.bf16.xpose.msrb.mxu1 %v1913_v1 }
 0xb58   :  { %v2071_v37 = vpop.permute.xlu2 %2070 }
 0xb59   :  { %3936 = vmatmul.msk.bf16.vlgmr.msrb.gmra.mxu1 %vm181_vm1, %v1902_v25  ;;  %v2076_v41 = vsel %vm181_vm1, %v2071_v37, 0 }
 0xb67   :  { %v2048_v35 = vpop.permute.xlu0 %2047  ;;  %v2046_v38 = vpop.permute.xlu1 %2045 }
 0xb68   :  { %v2053_v62 = vsel %vm181_vm1, %v2048_v35, 0 }
 0xb69   :  { %2062 = vmatpush.bf16.xpose.msra.mxu1 %v2053_v62 }
 0xb6f   :  { %v1932_v3 = vpop.permute.xlu0 %1931 }
 0xb70   :  { %v1937_v40 = vsel %vm181_vm1, %v1932_v3, 0  ;;  %3940 = vmatmul.msk.bf16.vlgmr.msra.gmra.mxu1 %vm181_vm1, %v2046_v38 }
 0xb71   :  { %1946 = vmatpush.bf16.xpose.msrb.mxu2 %v1937_v40 }
 0xb77   :  { %v2069_v42 = vpop.permute.xlu0 %2068 }
 0xb78   :  { %3937 = vmatmul.msk.bf16.vlgmr.msrb.gmra.mxu2 %vm181_vm1, %v1903_v30 }
 0xb79   :  { %2085 = vmatpush.bf16.xpose.msra.mxu2 %v2076_v41 }
 0xb88   :  { %3941 = vmatmul.msk.bf16.vlgmr.msra.gmra.mxu2 %vm181_vm1, %v2069_v42 }
 0xbd6   :  { %v1924_v44 = vpop.f32.mrf.mxu1 }
 0xbd7   :  { %v1952_v45 = vsel %vm181_vm1, %v1924_v44, -inf }
 0xbd8   :  { %1953 = vmax.xlane.f32.xlu1 %v1952_v45 }
 0xbde   :  { %v1926_v10 = vpop.f32.mrf.mxu1 }
 0xbed   :  { %v2064_v46 = vpop.f32.mrf.mxu1 }
 0xbee   :  { %v2091_v4 = vsel %vm181_vm1, %v2064_v46, -inf }
 0xbef   :  { %2092 = vmax.xlane.f32.xlu2 %v2091_v4 }
 0xbf5   :  { %v2066_v15 = vpop.f32.mrf.mxu1 }
 0xbfb   :  { %v5043_v47 = vpop.f32.mrf.mxu2 }
 0xbfc   :  { %v1955_v63 = vsel %vm181_vm1, %v5043_v47, -inf }
 0xc03   :  { %v1950_v48 = vpop.f32.mrf.mxu2 }
 0xc07   :  { %2002 = vrot.lane.b32.xlu2 %v5017_v27, %s4656_s14 }
 0xc0b   :  { %v5047_v49 = vpop.f32.mrf.mxu2 }
 0xc0c   :  { %v2094_v0 = vsel %vm181_vm1, %v5047_v49, -inf }
 0xc0f   :  { %2224 = vrot.lane.b32.xlu2 %v5017_v27, %s4673_s4 }
 0xc13   :  { %v2089_v50 = vpop.f32.mrf.mxu2 }
 0xc4b   :  { %v1954_v57 = vpop.xlane.xlu1 %1953 }
 0xc4c   :  { %v1958_v51 = vsub.f32 %v1924_v44, %v1954_v57 }
 0xc4e   :  { %v1960_v52 = vmul.f32 1.442695, %v1958_v51 }
 0xc50   :  { %4435 = vpow2.f32 %v1960_v52 }
 0xc56   :  { %v4436_v53 = vpop.eup %4435 }
 0xc57   :  { %v1964_v34 = vsel %vm181_vm1, %v4436_v53, 0.0 }
 0xc58   :  { %1965 = vadd.xlane.f32.xlu0 %v1964_v34 }
 0xc62   :  { %v2093_v54 = vpop.xlane.xlu2 %2092 }
 0xc63   :  { %v2097_v55 = vsub.f32 %v2064_v46, %v2093_v54 }
 0xc65   :  { %v2099_v56 = vmul.f32 1.442695, %v2097_v55 }
 0xc67   :  { %4437 = vpow2.f32 %v2099_v56 }
 0xc6a   :  { %v2003_v18 = vpop.permute.xlu2 %2002 }
 0xc6b   :  { %v2008_v58 = vsel %vm280_vm2, %v2003_v18, 0 }
 0xc6c   :  { %2141 = vrot.lane.b32.xlu0 %v5017_v27, %s4671_s27  ;;  %2017 = vmatpush.bf16.msra.mxu3 %v2008_v58 }
 0xc6d   :  { %v4438_v59 = vpop.eup %4437 }
 0xc6e   :  { %v2103_v61 = vsel %vm181_vm1, %v4438_v59, 0.0 }
 0xc6f   :  { %2104 = vadd.xlane.f32.xlu1 %v2103_v61 }
 0xc72   :  { %v2225_v38 = vpop.permute.xlu2 %2224 }
 0xc88   :  { %2226 = vrot.lane.b32.xlu1 %v5017_v27, %s4672_s28 }
 0xc96   :  { %1956 = vmax.xlane.f32.xlu0 %v1955_v63 }
 0xcaa   :  { %2249 = vrot.lane.b32.xlu0 %v5025_v32, %s4672_s28 }
 0xcb2   :  { %2095 = vmax.xlane.f32.xlu1 %v2094_v0 }
 0xccb   :  { %v1966_v39 = vpop.xlane.xlu0 %1965  ;;  %2162 = vrot.lane.b32.xlu1 %v5025_v32, %s4671_s27 }
 0xccc   :  { %4439 = vrcp.f32 %v1966_v39  ;;  %v1981_v8 = vand.u32 2147483648, %v1966_v39  ;;  %v1979_v43 = vand.u32 2147483647, %v1966_v39  ;;  %vm1975_vm10 = vweird.f32 %v1966_v39 }
 0xcce   :  { %v1982_v12 = vor.u32 1.1754944e-38, %v1981_v8  ;;  %vm1980_vm12 = vcmp.eq.f32.partialorder %v1979_v43, 8.507059e+37 }
 0xcd2   :  { %v4440_v5 = vpop.eup %4439 }
 0xcd3   :  { %v1971_v6 = vmul.f32 %v4440_v5, %v1966_v39  ;;  %vm1976_vm9 = vweird.f32 %v4440_v5 }
 0xcd4   :  { %vm1977_vm11 = vmor %vm1975_vm10, %vm1976_vm9 }
 0xcd5   :  { %v1972_v7 = vsub.f32 1.0, %v1971_v6 }
 0xcd7   :  { %v1973_v9 = vmul.f32 %v4440_v5, %v1972_v7 }
 0xcd9   :  { %v1974_v11 = vadd.f32 %v4440_v5, %v1973_v9 }
 0xcdb   :  { %v1978_v13 = vsel %vm1977_vm11, %v4440_v5, %v1974_v11 }
 0xcdc   :  { %v1983_v14 = vsel %vm1980_vm12, %v1982_v12, %v1978_v13  ;;  %v1899_v12 = vld [vmem:[#allocation5 + $0x14] sm:$0xf] }
 0xcdd   :  { %v1984_v16 = vmul.f32 %v4436_v53, %v1983_v14  ;;  %v2188_v13 = vsel %vm280_vm2, %v1899_v12, 0 }
 0xcde   :  { %v2142_v17 = vpop.permute.xlu0 %2141  ;;  %2197 = vmatpush.bf16.msrb.mxu1 %v2188_v13 }
 0xcdf   :  { %v2000_v60 = vpack.c.bf16 %v1984_v16, %v1984_v16  ;;  %v2147_v19 = vsel %vm280_vm2, %v2142_v17, 0 }
 0xce0   :  { %2156 = vmatpush.bf16.msrb.mxu3 %v2147_v19 }
 0xce1   :  { %3938 = vmatmul.msk.bf16.vlgmr.msra.gmra.mxu3 %vm181_vm1, %v2000_v60 }
 0xce2   :  { %v2105_v22 = vpop.xlane.xlu1 %2104 }
 0xce3   :  { %4441 = vrcp.f32 %v2105_v22  ;;  %v2120_v25 = vand.u32 2147483648, %v2105_v22  ;;  %v2118_v28 = vand.u32 2147483647, %v2105_v22  ;;  %vm2114_vm14 = vweird.f32 %v2105_v22 }
 0xce5   :  { %v2121_v30 = vor.u32 1.1754944e-38, %v2120_v25  ;;  %vm2119_vm3 = vcmp.eq.f32.partialorder %v2118_v28, 8.507059e+37 }
 0xce9   :  { %v4442_v36 = vpop.eup %4441 }
 0xcea   :  { %v2110_v23 = vmul.f32 %v4442_v36, %v2105_v22  ;;  %vm2115_vm13 = vweird.f32 %v4442_v36 }
 0xceb   :  { %vm2116_vm15 = vmor %vm2114_vm14, %vm2115_vm13 }
 0xcec   :  { %v2111_v24 = vsub.f32 1.0, %v2110_v23 }
 0xcee   :  { %v2112_v26 = vmul.f32 %v4442_v36, %v2111_v24 }
 0xcf0   :  { %v2113_v29 = vadd.f32 %v4442_v36, %v2112_v26 }
 0xcf2   :  { %v2117_v31 = vsel %vm2116_vm15, %v4442_v36, %v2113_v29 }
 0xcf3   :  { %v2122_v33 = vsel %vm2119_vm3, %v2121_v30, %v2117_v31 }
 0xcf4   :  { %v2123_v1 = vmul.f32 %v4438_v59, %v2122_v33 }
 0xcf6   :  { %v2139_v35 = vpack.c.bf16 %v2123_v1, %v2123_v1 }
 0xcf8   :  { %3942 = vmatmul.msk.bf16.vlgmr.msrb.gmra.mxu3 %vm181_vm1, %v2139_v35 }
 0xcfa   :  { %v2227_v62 = vpop.permute.xlu1 %2226 }
 0xcfb   :  { %v2232_v37 = vsel %vm181_vm1, %v2227_v62, 0  ;;  %v1898_v62 = vld [vmem:[#allocation5 + $0x10] sm:$0xf] }
 0xcfc   :  { %2241 = vmatpush.bf16.xpose.msra.mxu3 %v2232_v37  ;;  %v2208_v37 = vsel %vm280_vm2, %v1898_v62, 0 }
 0xcfd   :  { %2217 = vmatpush.bf16.msrb.mxu2 %v2208_v37 }
 0xd08   :  { %3946 = vmatmul.msk.bf16.vlgmr.msra.gmra.mxu3 %vm181_vm1, %v2225_v38 }
 0xd09   :  { %v1957_v3 = vpop.xlane.xlu0 %1956 }
 0xd0a   :  { %v1959_v40 = vsub.f32 %v5043_v47, %v1957_v3 }
 0xd0c   :  { %v1962_v41 = vmul.f32 1.442695, %v1959_v40 }
 0xd0e   :  { %4443 = vpow2.f32 %v1962_v41 }
 0xd14   :  { %v4444_v42 = vpop.eup %4443 }
 0xd15   :  { %v1967_v44 = vsel %vm181_vm1, %v4444_v42, 0.0 }
 0xd16   :  { %1968 = vadd.xlane.f32.xlu2 %v1967_v44 }
 0xd1c   :  { %v2250_v9 = vpop.permute.xlu0 %2249 }
 0xd1d   :  { %v2255_v11 = vsel %vm181_vm1, %v2250_v9, 0 }
 0xd25   :  { %v2096_v45 = vpop.xlane.xlu1 %2095 }
 0xd26   :  { %v2098_v10 = vsub.f32 %v5047_v49, %v2096_v45 }
 0xd28   :  { %v2101_v46 = vmul.f32 1.442695, %v2098_v10 }
 0xd2a   :  { %4445 = vpow2.f32 %v2101_v46 }
 0xd2e   :  { %2023 = vrot.lane.b32.xlu2 %v5025_v32, %s4656_s14 }
 0xd30   :  { %v5076_v4 = vpop.eup %4445 }
 0xd31   :  { %v2106_v15 = vsel %vm181_vm1, %v5076_v4, 0.0 }
 0xd32   :  { %2107 = vadd.xlane.f32.xlu0 %v2106_v15 }
 0xd3d   :  { %v2163_v34 = vpop.permute.xlu1 %2162 }
 0xd3e   :  { %v2168_v18 = vsel %vm280_vm2, %v2163_v34, 0 }
 0xd46   :  { %2247 = vrot.lane.b32.xlu0 %v5025_v32, %s4673_s4 }
 0xd4e   :  { %2320 = vrot.lane.b32.xlu0 %v5017_v27, %s4674_s29 }
 0xd56   :  { %2387 = vrot.lane.b32.xlu0 %v5017_v27, %s4675_s30 }
 0xd5e   :  { %2410 = vrot.lane.b32.xlu0 %v5025_v32, %s4675_s30 }
 0xd64   :  { %v5088_v47 = vpop.f32.mrf.mxu3 }
 0xd66   :  { %2385 = vrot.lane.b32.xlu0 %v5017_v27, %s4676_s1 }
 0xd6c   :  { %v2021_v48 = vpop.f32.mrf.mxu3 }
 0xd6e   :  { %2408 = vrot.lane.b32.xlu0 %v5025_v32, %s4676_s1 }
 0xd76   :  { %2341 = vrot.lane.b32.xlu0 %v5025_v32, %s4674_s29 }
 0xd7b   :  { %v5096_v49 = vpop.f32.mrf.mxu3 }
 0xd83   :  { %v2160_v50 = vpop.f32.mrf.mxu3 }
 0xd89   :  { %v1969_v57 = vpop.xlane.xlu2 %1968 }
 0xd8a   :  { %4447 = vrcp.f32 %v1969_v57  ;;  %v1996_v61 = vand.u32 2147483648, %v1969_v57  ;;  %v1994_v0 = vand.u32 2147483647, %v1969_v57  ;;  %vm1990_vm5 = vweird.f32 %v1969_v57 }
 0xd8b   :  { %v5098_v51 = vpop.f32.mrf.mxu3 }
 0xd8c   :  { %v2270_v52 = vsel %vm181_vm1, %v5098_v51, -inf  ;;  %v1997_v5 = vor.u32 1.1754944e-38, %v1996_v61  ;;  %vm1995_vm7 = vcmp.eq.f32.partialorder %v1994_v0, 8.507059e+37 }
 0xd8d   :  { %2271 = vmax.xlane.f32.xlu2 %v2270_v52 }
 0xd90   :  { %v4448_v53 = vpop.eup %4447 }
 0xd91   :  { %v1986_v54 = vmul.f32 %v4448_v53, %v1969_v57  ;;  %v2024_v55 = vpop.permute.xlu2 %2023  ;;  %vm1991_vm4 = vweird.f32 %v4448_v53 }
 0xd92   :  { %v2029_v56 = vsel %vm280_vm2, %v2024_v55, 0  ;;  %vm1992_vm6 = vmor %vm1990_vm5, %vm1991_vm4 }
 0xd93   :  { %v1987_v58 = vsub.f32 1.0, %v1986_v54  ;;  %2038 = vmatpush.bf16.msra.mxu0 %v2029_v56  ;;  %v2245_v59 = vpop.f32.mrf.mxu3 }
 0xd95   :  { %v1988_v63 = vmul.f32 %v4448_v53, %v1987_v58 }
 0xd97   :  { %2177 = vmatpush.bf16.msrb.mxu0 %v2168_v18  ;;  %v1989_v39 = vadd.f32 %v4448_v53, %v1988_v63 }
 0xd99   :  { %v1993_v6 = vsel %vm1992_vm6, %v4448_v53, %v1989_v39 }
 0xd9a   :  { %v1998_v7 = vsel %vm1995_vm7, %v1997_v5, %v1993_v6 }
 0xd9b   :  { %v1999_v8 = vmul.f32 %v4444_v42, %v1998_v7 }
 0xd9d   :  { %v2001_v43 = vpack.c.bf16 %v1999_v8, %v1999_v8 }
 0xd9f   :  { %3939 = vmatmul.msk.bf16.vlgmr.msra.gmra.mxu0 %vm181_vm1, %v2001_v43 }
 0xda0   :  { %2264 = vmatpush.bf16.xpose.msra.mxu0 %v2255_v11 }
 0xda5   :  { %v2108_v14 = vpop.xlane.xlu0 %2107 }
 0xda6   :  { %4449 = vrcp.f32 %v2108_v14  ;;  %v2135_v19 = vand.u32 2147483648, %v2108_v14  ;;  %v2133_v36 = vand.u32 2147483647, %v2108_v14  ;;  %vm2129_vm9 = vweird.f32 %v2108_v14 }
 0xda8   :  { %v2136_v24 = vor.u32 1.1754944e-38, %v2135_v19  ;;  %vm2134_vm11 = vcmp.eq.f32.partialorder %v2133_v36, 8.507059e+37 }
 0xdac   :  { %v4450_v16 = vpop.eup %4449 }
 0xdad   :  { %v2125_v17 = vmul.f32 %v4450_v16, %v2108_v14  ;;  %vm2130_vm8 = vweird.f32 %v4450_v16 }
 0xdae   :  { %vm2131_vm10 = vmor %vm2129_vm9, %vm2130_vm8 }
 0xdaf   :  { %v2126_v60 = vsub.f32 1.0, %v2125_v17 }
 0xdb1   :  { %v2127_v22 = vmul.f32 %v4450_v16, %v2126_v60 }
 0xdb3   :  { %v2128_v23 = vadd.f32 %v4450_v16, %v2127_v22 }
 0xdb5   :  { %v2132_v25 = vsel %vm2131_vm10, %v4450_v16, %v2128_v23 }
 0xdb6   :  { %v2137_v26 = vsel %vm2134_vm11, %v2136_v24, %v2132_v25 }
 0xdb7   :  { %v2138_v28 = vmul.f32 %v5076_v4, %v2137_v26 }
 0xdb8   :  { %v2248_v29 = vpop.permute.xlu0 %2247 }
 0xdb9   :  { %v2140_v30 = vpack.c.bf16 %v2138_v28, %v2138_v28 }
 0xdbb   :  { %3943 = vmatmul.msk.bf16.vlgmr.msrb.gmra.mxu0 %vm181_vm1, %v2140_v30 }
 0xdc0   :  { %v2321_v31 = vpop.permute.xlu0 %2320 }
 0xdc1   :  { %v2326_v33 = vsel %vm280_vm2, %v2321_v31, 0 }
 0xdc2   :  { %2335 = vmatpush.bf16.msra.mxu1 %v2326_v33 }
 0xdc8   :  { %v2388_v1 = vpop.permute.xlu0 %2387 }
 0xdc9   :  { %v2393_v35 = vsel %vm181_vm1, %v2388_v1, 0 }
 0xdca   :  { %2402 = vmatpush.bf16.xpose.msrb.mxu0 %v2393_v35 }
 0xdcb   :  { %3947 = vmatmul.msk.bf16.vlgmr.msra.gmra.mxu0 %vm181_vm1, %v2248_v29 }
 0xdd0   :  { %v2411_v38 = vpop.permute.xlu0 %2410 }
 0xdd1   :  { %v2416_v53 = vsel %vm181_vm1, %v2411_v38, 0 }
 0xdd8   :  { %v2386_v3 = vpop.permute.xlu0 %2385 }
 0xddb   :  { %3951 = vmatmul.msk.bf16.vlgmr.msrb.gmra.mxu0 %vm181_vm1, %v2386_v3 }
 0xde0   :  { %v2409_v40 = vpop.permute.xlu0 %2408 }
 0xde8   :  { %v2342_v41 = vpop.permute.xlu0 %2341 }
 0xde9   :  { %v2347_v42 = vsel %vm280_vm2, %v2342_v41, 0 }
 0xdea   :  { %2356 = vmatpush.bf16.msra.mxu2 %v2347_v42 }
 0xe00   :  { %v2272_v44 = vpop.xlane.xlu2 %2271 }
 0xe01   :  { %v2276_v45 = vsub.f32 %v5098_v51, %v2272_v44 }
 0xe03   :  { %v2278_v10 = vmul.f32 1.442695, %v2276_v45 }
 0xe05   :  { %4451 = vpow2.f32 %v2278_v10 }
 0xe0b   :  { %v4452_v46 = vpop.eup %4451 }
 0xe0c   :  { %v2282_v4 = vsel %vm181_vm1, %v4452_v46, 0.0 }
 0xe0d   :  { %2283 = vadd.xlane.f32.xlu1 %v2282_v4 }
 0xe1c   :  { %v2040_v15 = vpop.f32.mrf.mxu0 }
 0xe1d   :  { %v2044_v48 = vpack.c.bf16 %v2040_v15, %v5088_v47 }
 0xe1f   :  { %3945 = vmatmul.msk.bf16.vlgmr.msrb.gmra.mxu2 %vm181_vm1, %v2044_v48 }
 0xe24   :  { %v2042_v50 = vpop.f32.mrf.mxu0 }
 0xe38   :  { %v2179_v57 = vpop.f32.mrf.mxu0 }
 0xe39   :  { %v2183_v52 = vpack.c.bf16 %v2179_v57, %v5096_v49 }
 0xe3b   :  { %3944 = vmatmul.msk.bf16.vlgmr.msrb.gmra.mxu1 %vm181_vm1, %v2183_v52 }
 0xe3c   :  { %2425 = vmatpush.bf16.xpose.msrb.mxu1 %v2416_v53 }
 0xe40   :  { %v2181_v51 = vpop.f32.mrf.mxu0 }
 0xe48   :  { %v2266_v34 = vpop.f32.mrf.mxu0 }
 0xe49   :  { %v2273_v54 = vsel %vm181_vm1, %v2266_v34, -inf }
 0xe4a   :  { %2274 = vmax.xlane.f32.xlu2 %v2273_v54 }
 0xe50   :  { %v2268_v55 = vpop.f32.mrf.mxu0 }
 0xe58   :  { %v2404_v56 = vpop.f32.mrf.mxu0 }
 0xe59   :  { %v2431_v47 = vsel %vm181_vm1, %v2404_v56, -inf }
 0xe5a   :  { %2432 = vmax.xlane.f32.xlu2 %v2431_v47 }
 0xe60   :  { %v2406_v18 = vpop.f32.mrf.mxu0 }
 0xe80   :  { %v2284_v58 = vpop.xlane.xlu1 %2283 }
 0xe81   :  { %4453 = vrcp.f32 %v2284_v58  ;;  %v2299_v63 = vand.u32 2147483648, %v2284_v58  ;;  %v2297_v39 = vand.u32 2147483647, %v2284_v58  ;;  %vm2293_vm13 = vweird.f32 %v2284_v58 }
 0xe83   :  { %v2300_v6 = vor.u32 1.1754944e-38, %v2299_v63  ;;  %vm2298_vm15 = vcmp.eq.f32.partialorder %v2297_v39, 8.507059e+37 }
 0xe87   :  { %v4454_v59 = vpop.eup %4453 }
 0xe88   :  { %v2289_v49 = vmul.f32 %v4454_v59, %v2284_v58  ;;  %vm2294_vm12 = vweird.f32 %v4454_v59 }
 0xe89   :  { %vm2295_vm14 = vmor %vm2293_vm13, %vm2294_vm12 }
 0xe8a   :  { %v2290_v61 = vsub.f32 1.0, %v2289_v49 }
 0xe8c   :  { %v2291_v0 = vmul.f32 %v4454_v59, %v2290_v61 }
 0xe8e   :  { %v2292_v5 = vadd.f32 %v4454_v59, %v2291_v0  ;;  %v1900_v0 = vld [vmem:[#allocation5 + $0x18] sm:$0xf] }
 0xe8f   :  { %v2367_v39 = vsel %vm280_vm2, %v1900_v0, 0 }
 0xe90   :  { %v2296_v7 = vsel %vm2295_vm14, %v4454_v59, %v2292_v5  ;;  %2376 = vmatpush.bf16.msrb.mxu3 %v2367_v39 }
 0xe91   :  { %v2301_v8 = vsel %vm2298_vm15, %v2300_v6, %v2296_v7 }
 0xe92   :  { %v2302_v9 = vmul.f32 %v4452_v46, %v2301_v8 }
 0xe94   :  { %v2318_v43 = vpack.c.bf16 %v2302_v9, %v2302_v9 }
 0xe96   :  { %3948 = vmatmul.msk.bf16.vlgmr.msra.gmra.mxu1 %vm181_vm1, %v2318_v43 }
 0xea2   :  { %v2219_v11 = vpop.f32.mrf.mxu2 }
 0xea6   :  { %3952 = vmatmul.msk.bf16.vlgmr.msrb.gmra.mxu1 %vm181_vm1, %v2409_v40 }
 0xeaa   :  { %v2221_v5 = vpop.f32.mrf.mxu2 }
 0xeb8   :  { %v2199_v12 = vpop.f32.mrf.mxu1 }
 0xeb9   :  { %v5126_v13 = vadd.f32 %v2219_v11, %v2199_v12 }
 0xebd   :  { %v2275_v14 = vpop.xlane.xlu2 %2274 }
 0xebe   :  { %v2277_v16 = vsub.f32 %v2266_v34, %v2275_v14 }
 0xec0   :  { %v2280_v17 = vmul.f32 1.442695, %v2277_v16  ;;  %v5130_v26 = vpop.f32.mrf.mxu1 }
 0xec2   :  { %4455 = vpow2.f32 %v2280_v17 }
 0xec8   :  { %v4456_v60 = vpop.eup %4455 }
 0xec9   :  { %v2285_v19 = vsel %vm181_vm1, %v4456_v60, 0.0 }
 0xeca   :  { %2286 = vadd.xlane.f32.xlu1 %v2285_v19 }
 0xecd   :  { %v2433_v22 = vpop.xlane.xlu2 %2432 }
 0xece   :  { %v2437_v36 = vsub.f32 %v2404_v56, %v2433_v22 }
 0xed0   :  { %v2439_v23 = vmul.f32 1.442695, %v2437_v36 }
 0xed2   :  { %4457 = vpow2.f32 %v2439_v23 }
 0xed8   :  { %v4458_v24 = vpop.eup %4457 }
 0xed9   :  { %v2443_v25 = vsel %vm181_vm1, %v4458_v24, 0.0 }
 0xeda   :  { %2444 = vadd.xlane.f32.xlu0 %v2443_v25 }
 0xf13   :  { %v5132_v28 = vpop.f32.mrf.mxu1 }
 0xf1b   :  { %v2339_v29 = vpop.f32.mrf.mxu1 }
 0xf23   :  { %v2427_v30 = vpop.f32.mrf.mxu1 }
 0xf24   :  { %v2434_v31 = vsel %vm181_vm1, %v2427_v30, -inf }
 0xf25   :  { %2435 = vmax.xlane.f32.xlu1 %v2434_v31 }
 0xf2b   :  { %v2429_v33 = vpop.f32.mrf.mxu1 }
 0xf3d   :  { %v2287_v1 = vpop.xlane.xlu1 %2286 }
 0xf3e   :  { %4459 = vrcp.f32 %v2287_v1  ;;  %2481 = vrot.lane.b32.xlu1 %v5017_v27, %s4677_s10  ;;  %v2314_v38 = vand.u32 2147483648, %v2287_v1  ;;  %v2312_v40 = vand.u32 2147483647, %v2287_v1  ;;  %vm2308_vm4 = vweird.f32 %v2287_v1 }
 0xf40   :  { %v2315_v42 = vor.u32 1.1754944e-38, %v2314_v38  ;;  %vm2313_vm6 = vcmp.eq.f32.partialorder %v2312_v40, 8.507059e+37 }
 0xf44   :  { %v4460_v35 = vpop.eup %4459 }
 0xf45   :  { %v2304_v62 = vmul.f32 %v4460_v35, %v2287_v1  ;;  %vm2309_vm3 = vweird.f32 %v4460_v35 }
 0xf46   :  { %vm2310_vm5 = vmor %vm2308_vm4, %vm2309_vm3 }
 0xf47   :  { %v2305_v37 = vsub.f32 1.0, %v2304_v62 }
 0xf49   :  { %v2306_v3 = vmul.f32 %v4460_v35, %v2305_v37 }
 0xf4b   :  { %v2307_v41 = vadd.f32 %v4460_v35, %v2306_v3  ;;  %v5151_v3 = vld [vmem:[#allocation11 + $0x8] sm:$0xff] }
 0xf4c   :  { %v2546_v40 = vperm.slane %v5151_v3, 0 }
 0xf4d   :  { %v2311_v44 = vsel %vm2310_vm5, %v4460_v35, %v2307_v41  ;;  %v2445_v4 = vpop.xlane.xlu0 %2444 }
 0xf4e   :  { %v2316_v45 = vsel %vm2313_vm6, %v2315_v42, %v2311_v44  ;;  %4461 = vrcp.f32 %v2445_v4  ;;  %v2460_v55 = vand.u32 2147483648, %v2445_v4  ;;  %vm2454_vm8 = vweird.f32 %v2445_v4 }
 0xf4f   :  { %v2317_v10 = vmul.f32 %v4456_v60, %v2316_v45  ;;  %v2458_v56 = vand.u32 2147483647, %v2445_v4  ;;  %v2222_v45 = vadd.f32 %v2221_v5, %v5130_v26 }
 0xf50   :  { %v2461_v18 = vor.u32 1.1754944e-38, %v2460_v55 }
 0xf51   :  { %v2319_v46 = vpack.c.bf16 %v2317_v10, %v2317_v10  ;;  %vm2459_vm10 = vcmp.eq.f32.partialorder %v2458_v56, 8.507059e+37  ;;  %v4022_v56 = vld [vmem:[#allocation7 + $0x180] sm:$0xf] }
 0xf53   :  { %3949 = vmatmul.msk.bf16.vlgmr.msra.gmra.mxu2 %vm181_vm1, %v2319_v46 }
 0xf54   :  { %v4462_v27 = vpop.eup %4461 }
 0xf55   :  { %v2450_v48 = vmul.f32 %v4462_v27, %v2445_v4  ;;  %vm2455_vm7 = vweird.f32 %v4462_v27 }
 0xf56   :  { %vm2456_vm9 = vmor %vm2454_vm8, %vm2455_vm7 }
 0xf57   :  { %v2451_v52 = vsub.f32 1.0, %v2450_v48 }
 0xf59   :  { %v2452_v53 = vmul.f32 %v4462_v27, %v2451_v52 }
 0xf5b   :  { %v2453_v54 = vadd.f32 %v4462_v27, %v2452_v53 }
 0xf5d   :  { %v2457_v47 = vsel %vm2456_vm9, %v4462_v27, %v2453_v54 }
 0xf5e   :  { %v2462_v58 = vsel %vm2459_vm10, %v2461_v18, %v2457_v47  ;;  %v4320_v47 = vld [vmem:[#allocation7 + $0x1bc] sm:$0xf0]  ;;  %v4312_v18 = vld [vmem:[#allocation7 + $0x184] sm:$0xf] }
 0xf5f   :  { %v2463_v59 = vmul.f32 %v4458_v24, %v2462_v58 }
 0xf61   :  { %v2479_v63 = vpack.c.bf16 %v2463_v59, %v2463_v59  ;;  %v4023_v59 = vor.u32 %v4320_v47, %v4022_v56 }
 0xf63   :  { %2841 = vmatpush.bf16.msra.mxu1 %v4023_v59 }
 0xf98   :  { %v2436_v15 = vpop.xlane.xlu1 %2435 }
 0xf99   :  { %v2438_v50 = vsub.f32 %v2427_v30, %v2436_v15  ;;  %v1901_v30 = vld [vmem:[#allocation5 + $0x1c] sm:$0xf] }
 0xf9a   :  { %v2528_v31 = vsel %vm280_vm2, %v1901_v30, 0 }
 0xf9b   :  { %v2441_v57 = vmul.f32 1.442695, %v2438_v50  ;;  %2537 = vmatpush.bf16.msra.mxu0 %v2528_v31 }
 0xf9d   :  { %4463 = vpow2.f32 %v2441_v57 }
 0xfa3   :  { %v4464_v51 = vpop.eup %4463 }
 0xfa4   :  { %v2446_v34 = vsel %vm181_vm1, %v4464_v51, 0.0 }
 0xfa5   :  { %2447 = vadd.xlane.f32.xlu2 %v2446_v34 }
 0xfb0   :  { %v2482_v49 = vpop.permute.xlu1 %2481 }
 0xfb1   :  { %v2487_v61 = vsel %vm280_vm2, %v2482_v49, 0  ;;  %v4024_v49 = vld [vmem:[#allocation7 + $0x1c0] sm:$0xf0] }
 0xfb2   :  { %2496 = vmatpush.bf16.msrb.mxu2 %v2487_v61  ;;  %v4030_v61 = vld [vmem:[#allocation7 + $0x188] sm:$0xf]  ;;  %v4027_v39 = vor.u32 %v4312_v18, %v4024_v49 }
 0xfb5   :  { %3953 = vmatmul.msk.bf16.vlgmr.msrb.gmra.mxu2 %vm181_vm1, %v2479_v63  ;;  %v4321_v63 = vld [vmem:[#allocation7 + $0x1c4] sm:$0xf0] }
 0xfb6   :  { %v4031_v5 = vor.u32 %v4321_v63, %v4030_v61  ;;  %2855 = vmatpush.bf16.msra.mxu2 %v4027_v39  ;;  %v2595_v61 = vperm.slane %v5151_v3, 1 }
 0xfbd   :  { %2502 = vrot.lane.b32.xlu2 %v5025_v32, %s4677_s10 }
 0xfd6   :  { %v2358_v6 = vpop.f32.mrf.mxu2 }
 0xfd7   :  { %v2362_v7 = vpack.c.bf16 %v2358_v6, %v5132_v28  ;;  %v4313_v6 = vld [vmem:[#allocation7 + $0x18c] sm:$0xf] }
 0xfd9   :  { %3950 = vmatmul.msk.bf16.vlgmr.msrb.gmra.mxu3 %vm181_vm1, %v2362_v7  ;;  %v4032_v7 = vld [vmem:[#allocation7 + $0x1c8] sm:$0xf0] }
 0xfde   :  { %v2360_v8 = vpop.f32.mrf.mxu2 }
 0xfdf   :  { %v4035_v8 = vor.u32 %v4313_v6, %v4032_v7 }
 0xfe1   :  { %2883 = vmatpush.bf16.msrb.mxu0 %v4035_v8 }
0x1018   :  { %v2448_v9 = vpop.xlane.xlu2 %2447 }
0x1019   :  { %4465 = vrcp.f32 %v2448_v9  ;;  %v2475_v17 = vand.u32 2147483648, %v2448_v9  ;;  %v2473_v32 = vand.u32 2147483647, %v2448_v9  ;;  %vm2469_vm12 = vweird.f32 %v2448_v9 }
0x101b   :  { %v2476_v22 = vor.u32 1.1754944e-38, %v2475_v17  ;;  %vm2474_vm14 = vcmp.eq.f32.partialorder %v2473_v32, 8.507059e+37  ;;  %v3966_v17 = vld [vmem:[#allocation7 + $0x108] sm:$0xf] }
0x101c   :  { %v4305_v32 = vld [vmem:[#allocation7 + $0x144] sm:$0xf0] }
0x101f   :  { %v4466_v43 = vpop.eup %4465 }
0x1020   :  { %v2465_v11 = vmul.f32 %v4466_v43, %v2448_v9  ;;  %v2503_v12 = vpop.permute.xlu2 %2502  ;;  %vm2470_vm11 = vweird.f32 %v4466_v43 }
0x1021   :  { %v2508_v14 = vsel %vm280_vm2, %v2503_v12, 0  ;;  %vm2471_vm13 = vmor %vm2469_vm12, %vm2470_vm11 }
0x1022   :  { %v2466_v16 = vsub.f32 1.0, %v2465_v11  ;;  %2517 = vmatpush.bf16.msra.mxu3 %v2508_v14  ;;  %v4304_v11 = vld [vmem:[#allocation7 + $0x13c] sm:$0xf0]  ;;  %v4296_v14 = vld [vmem:[#allocation7 + $0x104] sm:$0xf] }
0x1024   :  { %v2467_v60 = vmul.f32 %v4466_v43, %v2466_v16  ;;  %v3960_v16 = vld [vmem:[#allocation7 + $0x140] sm:$0xf0] }
0x1026   :  { %v2468_v19 = vadd.f32 %v4466_v43, %v2467_v60  ;;  %2869 = vmatpush.bf16.msrb.mxu3 %v4031_v5  ;;  %v3963_v60 = vor.u32 %v4296_v14, %v3960_v16  ;;  %v2598_v5 = vperm.slane %v5151_v3, 2  ;;  %v4062_v14 = vld [vmem:[#allocation7 + $0x1a8] sm:$0xf] }
0x1028   :  { %v2472_v36 = vsel %vm2471_vm13, %v4466_v43, %v2468_v19  ;;  %v3958_v43 = vld [vmem:[#allocation7 + $0x100] sm:$0xf]  ;;  %v4297_v19 = vld [vmem:[#allocation7 + $0x10c] sm:$0xf]  ;;  %2856 = vmatpush.bf16.msra.mxu2 %v3963_v60 }
0x1029   :  { %v2477_v23 = vsel %vm2474_vm14, %v2476_v22, %v2472_v36  ;;  %v3959_v12 = vor.u32 %v4304_v11, %v3958_v43  ;;  %v3968_v22 = vld [vmem:[#allocation7 + $0x148] sm:$0xf0]  ;;  %v3967_v36 = vor.u32 %v4305_v32, %v3966_v17  ;;  %v4324_v43 = vld [vmem:[#allocation7 + $0x1dc] sm:$0xf0]  ;;  %v4316_v11 = vld [vmem:[#allocation7 + $0x1a4] sm:$0xf] }
0x102a   :  { %v2478_v24 = vmul.f32 %v4464_v51, %v2477_v23  ;;  %v3971_v23 = vor.u32 %v4297_v19, %v3968_v22  ;;  %v4317_v60 = vld [vmem:[#allocation7 + $0x1ac] sm:$0xf] }
0x102b   :  { %2842 = vmatpush.bf16.msra.mxu1 %v3959_v12  ;;  %2870 = vmatpush.bf16.msrb.mxu3 %v3967_v36  ;;  %v4056_v12 = vld [vmem:[#allocation7 + $0x1e0] sm:$0xf0]  ;;  %v4064_v32 = vld [vmem:[#allocation7 + $0x1e8] sm:$0xf0] }
0x102c   :  { %v2480_v25 = vpack.c.bf16 %v2478_v24, %v2478_v24  ;;  %2884 = vmatpush.bf16.msrb.mxu0 %v3971_v23  ;;  %v4059_v36 = vor.u32 %v4316_v11, %v4056_v12  ;;  %v4308_v23 = vld [vmem:[#allocation7 + $0x15c] sm:$0xf0] }
0x102d   :  { %v4336_v11 = vld [vmem:[#allocation8 + $0x13c] sm:$0xf0] }
0x102e   :  { %3954 = vmatmul.msk.bf16.vlgmr.msra.gmra.mxu3 %vm181_vm1, %v2480_v25  ;;  %v4038_v25 = vld [vmem:[#allocation7 + $0x190] sm:$0xf] }
0x1038   :  { %v2498_v28 = vpop.f32.mrf.mxu2 }
0x1040   :  { %v2500_v29 = vpop.f32.mrf.mxu2 }
0x1041   :  { %v4314_v29 = vld [vmem:[#allocation7 + $0x194] sm:$0xf] }
0x105c   :  { %v2378_v33 = vpop.f32.mrf.mxu3 }
0x105d   :  { %v2383_v1 = vadd.f32 %v2378_v33, %v5126_v13  ;;  %v4040_v33 = vld [vmem:[#allocation7 + $0x1d0] sm:$0xf0] }
0x1064   :  { %v2380_v35 = vpop.f32.mrf.mxu3 }
0x1065   :  { %v2384_v46 = vadd.f32 %v2380_v35, %v2222_v45  ;;  %v4323_v35 = vld [vmem:[#allocation7 + $0x1d4] sm:$0xf0] }
0x10b1   :  { %v2519_v62 = vpop.f32.mrf.mxu3 }
0x10b2   :  { %v2523_v37 = vpack.c.bf16 %v2519_v62, %v2498_v28  ;;  %v4322_v28 = vld [vmem:[#allocation7 + $0x1cc] sm:$0xf0]  ;;  %v4043_v62 = vor.u32 %v4314_v29, %v4040_v33  ;;  %v3992_v29 = vld [vmem:[#allocation7 + $0x160] sm:$0xf0]  ;;  %v4301_v33 = vld [vmem:[#allocation7 + $0x12c] sm:$0xf] }
0x10b3   :  { %v4039_v31 = vor.u32 %v4322_v28, %v4038_v25  ;;  %v4067_v25 = vor.u32 %v4317_v60, %v4064_v32  ;;  %v4300_v28 = vld [vmem:[#allocation7 + $0x124] sm:$0xf] }
0x10b4   :  { %3955 = vmatmul.msk.bf16.vlgmr.msra.gmra.mxu0 %vm181_vm1, %v2523_v37  ;;  %2911 = vmatpush.bf16.msrb.mxu2 %v4043_v62  ;;  %v3995_v62 = vor.u32 %v4300_v28, %v3992_v29  ;;  %v4328_v32 = vld [vmem:[#allocation8 + $0x104] sm:$0xf]  ;;  %v4347_v28 = vld [vmem:[#allocation8 + $0x19c] sm:$0xf] }
0x10b5   :  { %2897 = vmatpush.bf16.msrb.mxu1 %v4039_v31  ;;  %v4309_v31 = vld [vmem:[#allocation7 + $0x164] sm:$0xf0] }
0x10b9   :  { %v2521_v38 = vpop.f32.mrf.mxu3 }
0x10ba   :  { %v4315_v38 = vld [vmem:[#allocation7 + $0x19c] sm:$0xf] }
0x1131   :  { %v2539_v41 = vpop.f32.mrf.mxu0 }
0x1132   :  { %v2544_v42 = vadd.f32 %v2539_v41, %v2383_v1  ;;  %v4046_v1 = vld [vmem:[#allocation7 + $0x198] sm:$0xf]  ;;  %v3974_v41 = vld [vmem:[#allocation7 + $0x110] sm:$0xf] }
0x1133   :  { %v4047_v37 = vor.u32 %v4323_v35, %v4046_v1  ;;  %v4000_v1 = vld [vmem:[#allocation7 + $0x168] sm:$0xf0] }
0x1134   :  { %v2547_v44 = vadd.f32 %v2546_v40, %v2544_v42 }
0x1135   :  { %2925 = vmatpush.bf16.msra.mxu3 %v4047_v37 }
0x1136   :  { %v2549_v10 = vadd.f32 %v2547_v44, %v5007_v20 }
0x1138   :  { %v2551_v13 = vsel %vm152_vm0, %v2549_v10, 0.0 }
0x1139   :  { %2552 = vadd.xlane.f32.xlu1 %v2551_v13  ;;  %v2541_v4 = vpop.f32.mrf.mxu0 }
0x113a   :  { %v2545_v27 = vadd.f32 %v2541_v4, %v2384_v46  ;;  %v4298_v46 = vld [vmem:[#allocation7 + $0x114] sm:$0xf] }
0x113c   :  { %v2548_v15 = vadd.f32 %v2546_v40, %v2545_v27  ;;  %v4048_v40 = vld [vmem:[#allocation7 + $0x1d8] sm:$0xf0]  ;;  %v3976_v27 = vld [vmem:[#allocation7 + $0x150] sm:$0xf0] }
0x113d   :  { %v4051_v45 = vor.u32 %v4315_v38, %v4048_v40  ;;  %v4003_v38 = vor.u32 %v4301_v33, %v4000_v1  ;;  %v4070_v40 = vld [vmem:[#allocation7 + $0x1b0] sm:$0xf]  ;;  %v4346_v33 = vld [vmem:[#allocation8 + $0x194] sm:$0xf] }
0x113e   :  { %v2550_v48 = vadd.f32 %v2548_v15, %v5009_v21  ;;  %v3982_v15 = vld [vmem:[#allocation7 + $0x118] sm:$0xf]  ;;  %v4184_v1 = vld [vmem:[#allocation8 + $0x1d0] sm:$0xf0] }
0x113f   :  { %2939 = vmatpush.bf16.msra.mxu0 %v4051_v45  ;;  %v4078_v45 = vld [vmem:[#allocation7 + $0x1b8] sm:$0xf] }
0x1140   :  { %v2554_v50 = vsel %vm152_vm0, %v2550_v48, 0.0 }
0x1141   :  { %2555 = vadd.xlane.f32.xlu2 %v2554_v50  ;;  %v3979_v50 = vor.u32 %v4298_v46, %v3976_v27  ;;  %v4319_v46 = vld [vmem:[#allocation7 + $0x1bc] sm:$0xf] }
0x1143   :  { %2912 = vmatpush.bf16.msrb.mxu2 %v3979_v50 }
0x11ac   :  { %v2553_v57 = vpop.xlane.xlu1 %2552 }
0x11ad   :  { %v2557_v52 = vmul.f32 %v2553_v57, %v4911_v2 }
0x11af   :  { %v5160_v53 = vsub.f32 %v2549_v10, %v2557_v52  ;;  %v4306_v10 = vld [vmem:[#allocation7 + $0x14c] sm:$0xf0]  ;;  %v4299_v52 = vld [vmem:[#allocation7 + $0x11c] sm:$0xf] }
0x11b0   :  { %v3975_v4 = vor.u32 %v4306_v10, %v3974_v41  ;;  %v4326_v41 = vld [vmem:[#allocation7 + $0x1ec] sm:$0xf0]  ;;  %v4327_v10 = vld [vmem:[#allocation7 + $0x1f4] sm:$0xf0] }
0x11b1   :  { %v2561_v20 = vmul.f32 %v5160_v53, %v5160_v53  ;;  %v4079_v50 = vor.u32 %v4327_v10, %v4078_v45  ;;  %v4128_v45 = vld [vmem:[#allocation8 + $0x158] sm:$0xf0] }
0x11b2   :  { %2898 = vmatpush.bf16.msrb.mxu1 %v3975_v4  ;;  %v4071_v4 = vor.u32 %v4326_v41, %v4070_v40  ;;  %v4118_v40 = vld [vmem:[#allocation8 + $0x110] sm:$0xf] }
0x11b3   :  { %v2563_v26 = vsel %vm152_vm0, %v2561_v20, 0.0  ;;  %v3984_v20 = vld [vmem:[#allocation7 + $0x158] sm:$0xf0]  ;;  %v4338_v41 = vld [vmem:[#allocation8 + $0x14c] sm:$0xf0] }
0x11b4   :  { %2564 = vadd.xlane.f32.xlu0 %v2563_v26  ;;  %v2556_v51 = vpop.xlane.xlu2 %2555 }
0x11b5   :  { %v2558_v34 = vmul.f32 %v2556_v51, %v4911_v2  ;;  %v3987_v51 = vor.u32 %v4299_v52, %v3984_v20  ;;  %v4302_v52 = vld [vmem:[#allocation7 + $0x134] sm:$0xf] }
0x11b6   :  { %v4008_v20 = vld [vmem:[#allocation7 + $0x170] sm:$0xf0] }
0x11b7   :  { %v5166_v54 = vsub.f32 %v2550_v48, %v2558_v34  ;;  %v4307_v48 = vld [vmem:[#allocation7 + $0x154] sm:$0xf0]  ;;  %2940 = vmatpush.bf16.msra.mxu0 %v3987_v51 }
0x11b8   :  { %v3983_v57 = vor.u32 %v4307_v48, %v3982_v15  ;;  %v4006_v15 = vld [vmem:[#allocation7 + $0x130] sm:$0xf]  ;;  %v4311_v51 = vld [vmem:[#allocation7 + $0x174] sm:$0xf0] }
0x11b9   :  { %v2562_v21 = vmul.f32 %v5166_v54, %v5166_v54  ;;  %v4310_v48 = vld [vmem:[#allocation7 + $0x16c] sm:$0xf0] }
0x11ba   :  { %2926 = vmatpush.bf16.msra.mxu3 %v3983_v57 }
0x11bb   :  { %v2566_v55 = vsel %vm152_vm0, %v2562_v21, 0.0 }
0x11bc   :  { %2567 = vadd.xlane.f32.xlu0 %v2566_v55 }
0x1227   :  { %v2565_v58 = vpop.xlane.xlu0 %2564 }
0x1228   :  { %v2569_v0 = vmul.f32 %v2565_v58, %v4911_v2 }
0x122a   :  { %v5172_v9 = vadd.f32 1e-05, %v2569_v0 }
0x122c   :  { %4467 = vrsqrt.f32 %v5172_v9  ;;  %vm2579_vm2 = vweird.f32 %v5172_v9 }
0x122f   :  { %v2568_v24 = vpop.xlane.xlu0 %2567 }
0x1230   :  { %v2570_v30 = vmul.f32 %v2568_v24, %v4911_v2 }
0x1232   :  { %v4468_v42 = vpop.eup %4467  ;;  %v2572_v44 = vadd.f32 1e-05, %v2570_v30  ;;  %v3998_v30 = vld [vmem:[#allocation7 + $0x128] sm:$0xf] }
0x1233   :  { %v2574_v13 = vmul.f32 %v4468_v42, %v5172_v9  ;;  %vm2580_vm1 = vweird.f32 %v4468_v42  ;;  %v4054_v9 = vld [vmem:[#allocation7 + $0x1a0] sm:$0xf]  ;;  %v3999_v37 = vor.u32 %v4309_v31, %v3998_v30  ;;  %v4192_v30 = vld [vmem:[#allocation8 + $0x1d8] sm:$0xf0] }
0x1234   :  { %4469 = vrsqrt.f32 %v2572_v44  ;;  %vm2581_vm15 = vmor %vm2579_vm2, %vm2580_vm1  ;;  %vm2589_vm4 = vweird.f32 %v2572_v44  ;;  %v4055_v22 = vor.u32 %v4324_v43, %v4054_v9  ;;  %v4102_v43 = vld [vmem:[#allocation8 + $0x100] sm:$0xf]  ;;  %v4195_v31 = vor.u32 %v4347_v28, %v4192_v30 }
0x1235   :  { %v2575_v26 = vmul.f32 %v4468_v42, %v2574_v13  ;;  %v4080_v13 = vld [vmem:[#allocation7 + $0x1f8] sm:$0xf0]  ;;  %v4103_v12 = vor.u32 %v4336_v11, %v4102_v43 }
0x1236   :  { %v4083_v57 = vor.u32 %v4319_v46, %v4080_v13  ;;  %v4330_v46 = vld [vmem:[#allocation8 + $0x114] sm:$0xf] }
0x1237   :  { %v2576_v34 = vmul.f32 0.5, %v2575_v26  ;;  %v4014_v26 = vld [vmem:[#allocation7 + $0x138] sm:$0xf]  ;;  %v4120_v13 = vld [vmem:[#allocation8 + $0x150] sm:$0xf0] }
0x1239   :  { %v2577_v21 = vsub.f32 1.5, %v2576_v34  ;;  %v4303_v34 = vld [vmem:[#allocation7 + $0x13c] sm:$0xf] }
0x123a   :  { %v4470_v55 = vpop.eup %4469 }
0x123b   :  { %v2578_v56 = vmul.f32 %v4468_v42, %v2577_v21  ;;  %v2584_v47 = vmul.f32 %v4470_v55, %v2572_v44  ;;  %vm2590_vm3 = vweird.f32 %v4470_v55  ;;  %v4072_v44 = vld [vmem:[#allocation7 + $0x1f0] sm:$0xf0]  ;;  %v4016_v21 = vld [vmem:[#allocation7 + $0x178] sm:$0xf0] }
0x123c   :  { %vm2591_vm5 = vmor %vm2589_vm4, %vm2590_vm3 }
0x123d   :  { %v2585_v18 = vmul.f32 %v4470_v55, %v2584_v47  ;;  %v2582_v58 = vsel %vm2581_vm15, %v4468_v42, %v2578_v56  ;;  %v4318_v42 = vld [vmem:[#allocation7 + $0x1b4] sm:$0xf]  ;;  %v4011_v56 = vor.u32 %v4302_v52, %v4008_v20  ;;  %v4015_v47 = vor.u32 %v4311_v51, %v4014_v26 }
0x123e   :  { %v2593_v63 = vmul.f32 %v2582_v58, %v5160_v53  ;;  %v4325_v53 = vld [vmem:[#allocation7 + $0x1e4] sm:$0xf0]  ;;  %v4075_v27 = vor.u32 %v4318_v42, %v4072_v44  ;;  %v4166_v58 = vld [vmem:[#allocation8 + $0x180] sm:$0xf]  ;;  %v4119_v42 = vor.u32 %v4338_v41, %v4118_v40  ;;  %v4331_v44 = vld [vmem:[#allocation8 + $0x11c] sm:$0xf] }
0x123f   :  { %v2586_v59 = vmul.f32 0.5, %v2585_v18  ;;  %v4063_v24 = vor.u32 %v4325_v53, %v4062_v14  ;;  %v4019_v18 = vor.u32 %v4303_v34, %v4016_v21  ;;  %v4329_v14 = vld [vmem:[#allocation8 + $0x10c] sm:$0xf]  ;;  %v4131_v10 = vor.u32 %v4331_v44, %v4128_v45 }
0x1240   :  { %v2596_v6 = vmul.f32 %v2595_v61, %v2593_v63  ;;  %v4176_v63 = vld [vmem:[#allocation8 + $0x1c8] sm:$0xf0] }
0x1241   :  { %v2587_v49 = vsub.f32 1.5, %v2586_v59  ;;  %v4352_v59 = vld [vmem:[#allocation8 + $0x1bc] sm:$0xf0]  ;;  %v4112_v53 = vld [vmem:[#allocation8 + $0x148] sm:$0xf0] }
0x1242   :  { %v5182_v16 = vadd.f32 %v2598_v5, %v2596_v6  ;;  %v4174_v6 = vld [vmem:[#allocation8 + $0x188] sm:$0xf]  ;;  %v4115_v60 = vor.u32 %v4329_v14, %v4112_v53 }
0x1243   :  { %v2588_v0 = vmul.f32 %v4470_v55, %v2587_v49  ;;  %v4345_v49 = vld [vmem:[#allocation8 + $0x18c] sm:$0xf] }
0x1245   :  { %v2592_v39 = vsel %vm2591_vm5, %v4470_v55, %v2588_v0  ;;  %v4007_v55 = vor.u32 %v4310_v48, %v4006_v15  ;;  %v4179_v0 = vor.u32 %v4345_v49, %v4176_v63  ;;  %v4339_v15 = vld [vmem:[#allocation8 + $0x154] sm:$0xf0]  ;;  %v4356_v49 = vld [vmem:[#allocation8 + $0x1dc] sm:$0xf0] }
0x1246   :  { %v2594_v7 = vmul.f32 %v2592_v39, %v5166_v54  ;;  %v3990_v54 = vld [vmem:[#allocation7 + $0x120] sm:$0xf]  ;;  %v4344_v39 = vld [vmem:[#allocation8 + $0x184] sm:$0xf] }
0x1247   :  { %v3991_v35 = vor.u32 %v4308_v23, %v3990_v54  ;;  %v4337_v54 = vld [vmem:[#allocation8 + $0x144] sm:$0xf0] }
0x1248   :  { %v2597_v8 = vmul.f32 %v2595_v61, %v2594_v7  ;;  %v4167_v61 = vor.u32 %v4352_v59, %v4166_v58  ;;  %v4198_v59 = vld [vmem:[#allocation8 + $0x1a0] sm:$0xf] }
0x124a   :  { %v5184_v17 = vadd.f32 %v2598_v5, %v2597_v8  ;;  %v4168_v5 = vld [vmem:[#allocation8 + $0x1c0] sm:$0xf0]  ;;  %v4353_v8 = vld [vmem:[#allocation8 + $0x1c4] sm:$0xf0] }
0x124b   :  { %v4171_v7 = vor.u32 %v4344_v39, %v4168_v5  ;;  %v4175_v9 = vor.u32 %v4353_v8, %v4174_v6  ;;  %v4208_v39 = vld [vmem:[#allocation8 + $0x1e8] sm:$0xf0] }
0x124c   :  { %v5188_v19 = vpack.c.bf16 %v5184_v17, %v5182_v16 }
0x124e   :  { %4084 = vmatmul.msk.bf16.vlgmr.msra.gmra.mxu1 %vm152_vm0, %v5188_v19  ;;  %4085 = vmatmul.msk.bf16.vlgmr.msra.gmra.mxu2 %vm152_vm0, %v5188_v19 }
0x124f   :  { %4086 = vmatmul.msk.bf16.vlgmr.msrb.gmra.mxu3 %vm152_vm0, %v5188_v19  ;;  %4087 = vmatmul.msk.bf16.vlgmr.msrb.gmra.mxu0 %vm152_vm0, %v5188_v19 }
0x1250   :  { %2953 = vmatpush.bf16.msra.mxu1 %v4055_v22  ;;  %2967 = vmatpush.bf16.msra.mxu2 %v4059_v36  ;;  %v4110_v22 = vld [vmem:[#allocation8 + $0x108] sm:$0xf] }
0x1251   :  { %2981 = vmatpush.bf16.msrb.mxu3 %v4063_v24  ;;  %2995 = vmatpush.bf16.msrb.mxu0 %v4067_v25  ;;  %v4111_v23 = vor.u32 %v4337_v54, %v4110_v22  ;;  %v4182_v24 = vld [vmem:[#allocation8 + $0x190] sm:$0xf]  ;;  %v4348_v22 = vld [vmem:[#allocation8 + $0x1a4] sm:$0xf] }
0x1252   :  { %v4354_v25 = vld [vmem:[#allocation8 + $0x1cc] sm:$0xf0] }
0x1253   :  { %v4183_v29 = vor.u32 %v4354_v25, %v4182_v24  ;;  %v4206_v24 = vld [vmem:[#allocation8 + $0x1a8] sm:$0xf] }
0x1254   :  { %2954 = vmatpush.bf16.msra.mxu1 %v3991_v35  ;;  %2968 = vmatpush.bf16.msra.mxu2 %v3995_v62  ;;  %v4190_v35 = vld [vmem:[#allocation8 + $0x198] sm:$0xf]  ;;  %v4187_v62 = vor.u32 %v4346_v33, %v4184_v1  ;;  %v4357_v25 = vld [vmem:[#allocation8 + $0x1e4] sm:$0xf0]  ;;  %v4340_v33 = vld [vmem:[#allocation8 + $0x15c] sm:$0xf0] }
0x1255   :  { %2982 = vmatpush.bf16.msrb.mxu3 %v3999_v37  ;;  %2996 = vmatpush.bf16.msrb.mxu0 %v4003_v38  ;;  %v4355_v37 = vld [vmem:[#allocation8 + $0x1d4] sm:$0xf0] }
0x1256   :  { %v4191_v38 = vor.u32 %v4355_v37, %v4190_v35  ;;  %v4333_v37 = vld [vmem:[#allocation8 + $0x12c] sm:$0xf] }
0x125e   :  { %4088 = vmatmul.msk.bf16.vlgmr.msrb.gmra.mxu1 %vm152_vm0, %v5188_v19  ;;  %4089 = vmatmul.msk.bf16.vlgmr.msrb.gmra.mxu2 %vm152_vm0, %v5188_v19 }
0x125f   :  { %4090 = vmatmul.msk.bf16.vlgmr.msra.gmra.mxu3 %vm152_vm0, %v5188_v19  ;;  %4091 = vmatmul.msk.bf16.vlgmr.msra.gmra.mxu0 %vm152_vm0, %v5188_v19 }
0x1260   :  { %3009 = vmatpush.bf16.msrb.mxu1 %v4071_v4  ;;  %3023 = vmatpush.bf16.msrb.mxu2 %v4075_v27  ;;  %v4126_v4 = vld [vmem:[#allocation8 + $0x118] sm:$0xf]  ;;  %v4123_v27 = vor.u32 %v4330_v46, %v4120_v13 }
0x1261   :  { %3037 = vmatpush.bf16.msra.mxu3 %v4079_v50  ;;  %3051 = vmatpush.bf16.msra.mxu0 %v4083_v57  ;;  %v4127_v48 = vor.u32 %v4339_v15, %v4126_v4  ;;  %v5222_v50 = vld [vmem:[#allocation10 + $0x10] sm:$0xff]  ;;  %v4332_v15 = vld [vmem:[#allocation8 + $0x124] sm:$0xf] }
0x1262   :  { %v2640_v20 = vperm.slane %v5222_v50, 0  ;;  %v2643_v26 = vperm.slane %v5222_v50, 3  ;;  %v2644_v41 = vperm.slane %v5222_v50, 4  ;;  %v2647_v45 = vperm.slane %v5222_v50, 7 }
0x1264   :  { %3010 = vmatpush.bf16.msrb.mxu1 %v4007_v55  ;;  %3024 = vmatpush.bf16.msrb.mxu2 %v4011_v56 }
0x1265   :  { %3038 = vmatpush.bf16.msra.mxu3 %v4015_v47  ;;  %3052 = vmatpush.bf16.msra.mxu0 %v4019_v18  ;;  %v2641_v47 = vperm.slane %v5222_v50, 1 }
0x126e   :  { %4092 = vmatmul.msk.bf16.vlgmr.msra.gmra.mxu1 %vm152_vm0, %v5188_v19  ;;  %4093 = vmatmul.msk.bf16.vlgmr.msra.gmra.mxu2 %vm152_vm0, %v5188_v19 }
0x126f   :  { %4094 = vmatmul.msk.bf16.vlgmr.msrb.gmra.mxu3 %vm152_vm0, %v5188_v19  ;;  %4095 = vmatmul.msk.bf16.vlgmr.msrb.gmra.mxu0 %vm152_vm0, %v5188_v19 }
0x1270   :  { %3307 = vmatpush.bf16.xpose.msra.mxu1 %v4167_v61  ;;  %3349 = vmatpush.bf16.xpose.msrb.mxu0 %v4179_v0  ;;  %v2642_v61 = vperm.slane %v5222_v50, 2  ;;  %v4349_v0 = vld [vmem:[#allocation8 + $0x1ac] sm:$0xf] }
0x1271   :  { %3321 = vmatpush.bf16.xpose.msra.mxu2 %v4171_v7  ;;  %3335 = vmatpush.bf16.xpose.msrb.mxu3 %v4175_v9  ;;  %v4199_v9 = vor.u32 %v4356_v49, %v4198_v59  ;;  %v4351_v59 = vld [vmem:[#allocation8 + $0x1bc] sm:$0xf] }
0x1272   :  { %v4224_v49 = vld [vmem:[#allocation8 + $0x1f8] sm:$0xf0] }
0x1278   :  { %3308 = vmatpush.bf16.xpose.msra.mxu1 %v4103_v12  ;;  %3350 = vmatpush.bf16.xpose.msrb.mxu0 %v4115_v60  ;;  %v4211_v12 = vor.u32 %v4349_v0, %v4208_v39 }
0x1279   :  { %3336 = vmatpush.bf16.xpose.msrb.mxu3 %v4111_v23 }
0x127e   :  { %4096 = vmatmul.msk.bf16.vlgmr.msrb.gmra.mxu1 %vm152_vm0, %v5188_v19  ;;  %4097 = vmatmul.msk.bf16.vlgmr.msrb.gmra.mxu2 %vm152_vm0, %v5188_v19 }
0x127f   :  { %4098 = vmatmul.msk.bf16.vlgmr.msra.gmra.mxu3 %vm152_vm0, %v5188_v19  ;;  %4099 = vmatmul.msk.bf16.vlgmr.msra.gmra.mxu0 %vm152_vm0, %v5188_v19  ;;  %v4104_v19 = vld [vmem:[#allocation8 + $0x140] sm:$0xf0] }
0x1280   :  { %v4107_v36 = vor.u32 %v4328_v32, %v4104_v19  ;;  %3363 = vmatpush.bf16.xpose.msrb.mxu1 %v4183_v29  ;;  %3405 = vmatpush.bf16.xpose.msra.mxu0 %v4195_v31  ;;  %v4134_v31 = vld [vmem:[#allocation8 + $0x120] sm:$0xf] }
0x1281   :  { %3391 = vmatpush.bf16.xpose.msra.mxu3 %v4191_v38  ;;  %v4144_v38 = vld [vmem:[#allocation8 + $0x168] sm:$0xf0] }
0x1282   :  { %3322 = vmatpush.bf16.xpose.msra.mxu2 %v4107_v36  ;;  %v4200_v36 = vld [vmem:[#allocation8 + $0x1e0] sm:$0xf0]  ;;  %v4147_v46 = vor.u32 %v4333_v37, %v4144_v38 }
0x1288   :  { %3364 = vmatpush.bf16.xpose.msrb.mxu1 %v4119_v42  ;;  %3406 = vmatpush.bf16.xpose.msra.mxu0 %v4131_v10  ;;  %v4207_v42 = vor.u32 %v4357_v25, %v4206_v24  ;;  %v4135_v10 = vor.u32 %v4340_v33, %v4134_v31 }
0x1289   :  { %3392 = vmatpush.bf16.xpose.msra.mxu3 %v4127_v48  ;;  %v4136_v48 = vld [vmem:[#allocation8 + $0x160] sm:$0xf0] }
0x128a   :  { %3377 = vmatpush.bf16.xpose.msrb.mxu2 %v4187_v62  ;;  %v4203_v62 = vor.u32 %v4348_v22, %v4200_v36  ;;  %v4222_v36 = vld [vmem:[#allocation8 + $0x1b8] sm:$0xf] }
0x1292   :  { %3378 = vmatpush.bf16.xpose.msrb.mxu2 %v4123_v27 }
0x12cb   :  { %v2844_v57 = vpop.f32.mrf.mxu1 }
0x12cc   :  { %v2886_v52 = vpop.f32.mrf.mxu0  ;;  %v2845_v34 = vadd.f32 %v2844_v57, %v2640_v20 }
0x12cd   :  { %v2887_v55 = vadd.f32 %v2886_v52, %v2643_v26 }
0x12ce   :  { %v3059_v5 = vmax.f32 %v2845_v34, 0.0 }
0x12cf   :  { %v3062_v7 = vmax.f32 %v2887_v55, 0.0  ;;  %v4214_v55 = vld [vmem:[#allocation8 + $0x1b0] sm:$0xf] }
0x12d1   :  { %v2858_v51 = vpop.f32.mrf.mxu2 }
0x12d2   :  { %v2872_v21 = vpop.f32.mrf.mxu3  ;;  %v2859_v43 = vadd.f32 %v2858_v51, %v2641_v47  ;;  %v2645_v51 = vperm.slane %v5222_v50, 5 }
0x12d3   :  { %v2846_v56 = vpop.f32.mrf.mxu1  ;;  %v2873_v14 = vadd.f32 %v2872_v21, %v2642_v61 }
0x12d4   :  { %v2847_v18 = vadd.f32 %v2846_v56, %v2640_v20  ;;  %v2888_v58 = vpop.f32.mrf.mxu0  ;;  %v3060_v28 = vmax.f32 %v2859_v43, 0.0  ;;  %v4142_v20 = vld [vmem:[#allocation8 + $0x128] sm:$0xf]  ;;  %v4358_v56 = vld [vmem:[#allocation8 + $0x1ec] sm:$0xf0] }
0x12d5   :  { %v2889_v63 = vadd.f32 %v2888_v58, %v2643_v26  ;;  %v3061_v1 = vmax.f32 %v2873_v14, 0.0  ;;  %v4341_v26 = vld [vmem:[#allocation8 + $0x164] sm:$0xf0]  ;;  %v4139_v58 = vor.u32 %v4332_v15, %v4136_v48  ;;  %v4158_v48 = vld [vmem:[#allocation8 + $0x138] sm:$0xf] }
0x12d6   :  { %v3075_v6 = vmax.f32 %v2847_v18, 0.0  ;;  %v4143_v0 = vor.u32 %v4341_v26, %v4142_v20 }
0x12d7   :  { %v3078_v8 = vmax.f32 %v2889_v63, 0.0 }
0x12d8   :  { %v3091_v11 = vpack.c.bf16 %v3075_v6, %v3059_v5  ;;  %v4215_v6 = vor.u32 %v4358_v56, %v4214_v55 }
0x12d9   :  { %v3094_v53 = vpack.c.bf16 %v3078_v8, %v3062_v7  ;;  %v2860_v60 = vpop.f32.mrf.mxu2 }
0x12da   :  { %v2861_v32 = vadd.f32 %v2860_v60, %v2641_v47  ;;  %v2874_v19 = vpop.f32.mrf.mxu3  ;;  %3309 = vmatmul.bf16.vlgmr.msra.gmra.mxu1 %v3091_v11  ;;  %v2646_v47 = vperm.slane %v5222_v50, 6  ;;  %v4350_v50 = vld [vmem:[#allocation8 + $0x1b4] sm:$0xf] }
0x12db   :  { %v2875_v54 = vadd.f32 %v2874_v19, %v2642_v61  ;;  %3351 = vmatmul.bf16.vlgmr.msrb.gmra.mxu0 %v3094_v53  ;;  %v2900_v23 = vpop.f32.mrf.mxu1  ;;  %3419 = vmatpush.bf16.xpose.msra.mxu1 %v4199_v9  ;;  %v4227_v9 = vor.u32 %v4351_v59, %v4224_v49  ;;  %v4216_v60 = vld [vmem:[#allocation8 + $0x1f0] sm:$0xf0]  ;;  %v5232_v19 = vld [vmem:[#allocation10 + $0x18] sm:$0xff] }
0x12dc   :  { %v3076_v29 = vmax.f32 %v2861_v32, 0.0  ;;  %v2942_v30 = vpop.f32.mrf.mxu0  ;;  %3461 = vmatpush.bf16.xpose.msrb.mxu0 %v4211_v12  ;;  %v2901_v4 = vadd.f32 %v2900_v23, %v2644_v41  ;;  %v4219_v33 = vor.u32 %v4350_v50, %v4216_v60  ;;  %v2648_v37 = vperm.slane %v5232_v19, 0 }
0x12dd   :  { %v3077_v35 = vmax.f32 %v2875_v54, 0.0  ;;  %v2943_v57 = vadd.f32 %v2942_v30, %v2647_v45  ;;  %v4359_v54 = vld [vmem:[#allocation8 + $0x1f4] sm:$0xf0]  ;;  %v2655_v60 = vperm.slane %v5232_v19, 7 }
0x12de   :  { %v3092_v40 = vpack.c.bf16 %v3076_v29, %v3060_v28  ;;  %v3063_v61 = vmax.f32 %v2901_v4, 0.0  ;;  %v4150_v28 = vld [vmem:[#allocation8 + $0x130] sm:$0xf]  ;;  %v4223_v38 = vor.u32 %v4359_v54, %v4222_v36  ;;  %v4152_v4 = vld [vmem:[#allocation8 + $0x170] sm:$0xf0] }
0x12df   :  { %v3093_v44 = vpack.c.bf16 %v3077_v35, %v3061_v1  ;;  %v3066_v39 = vmax.f32 %v2943_v57, 0.0  ;;  %v4342_v29 = vld [vmem:[#allocation8 + $0x16c] sm:$0xf0]  ;;  %v4335_v1 = vld [vmem:[#allocation8 + $0x13c] sm:$0xf] }
0x12e0   :  { %3323 = vmatmul.bf16.vlgmr.msra.gmra.mxu2 %v3092_v40  ;;  %v4160_v35 = vld [vmem:[#allocation8 + $0x178] sm:$0xf0]  ;;  %v4343_v57 = vld [vmem:[#allocation8 + $0x174] sm:$0xf0] }
0x12e1   :  { %3337 = vmatmul.bf16.vlgmr.msrb.gmra.mxu3 %v3093_v44  ;;  %v2914_v13 = vpop.f32.mrf.mxu2  ;;  %3433 = vmatpush.bf16.xpose.msra.mxu2 %v4203_v62  ;;  %v4163_v44 = vor.u32 %v4335_v1, %v4160_v35 }
0x12e2   :  { %v2928_v27 = vpop.f32.mrf.mxu3  ;;  %3447 = vmatpush.bf16.xpose.msrb.mxu3 %v4207_v42  ;;  %v2915_v7 = vadd.f32 %v2914_v13, %v2645_v51  ;;  %v4151_v42 = vor.u32 %v4342_v29, %v4150_v28  ;;  %v4334_v13 = vld [vmem:[#allocation8 + $0x134] sm:$0xf]  ;;  %v2654_v29 = vperm.slane %v5232_v19, 6 }
0x12e3   :  { %v2902_v52 = vpop.f32.mrf.mxu1  ;;  %3420 = vmatpush.bf16.xpose.msra.mxu1 %v4135_v10  ;;  %v2929_v43 = vadd.f32 %v2928_v27, %v2646_v47 }
0x12e4   :  { %v2903_v34 = vadd.f32 %v2902_v52, %v2644_v41  ;;  %v2944_v21 = vpop.f32.mrf.mxu0  ;;  %3462 = vmatpush.bf16.xpose.msrb.mxu0 %v4147_v46  ;;  %v3064_v23 = vmax.f32 %v2915_v7, 0.0  ;;  %v2651_v41 = vperm.slane %v5232_v19, 3  ;;  %v2649_v52 = vperm.slane %v5232_v19, 1 }
0x12e5   :  { %v2945_v18 = vadd.f32 %v2944_v21, %v2647_v45  ;;  %v3065_v30 = vmax.f32 %v2929_v43, 0.0  ;;  %v4155_v21 = vor.u32 %v4334_v13, %v4152_v4 }
0x12e6   :  { %v3079_v63 = vmax.f32 %v2903_v34, 0.0 }
0x12e7   :  { %v3082_v5 = vmax.f32 %v2945_v18, 0.0 }
0x12e8   :  { %v3095_v8 = vpack.c.bf16 %v3079_v63, %v3063_v61 }
0x12e9   :  { %v3098_v11 = vpack.c.bf16 %v3082_v5, %v3066_v39  ;;  %v2916_v12 = vpop.f32.mrf.mxu2  ;;  %3434 = vmatpush.bf16.xpose.msra.mxu2 %v4139_v58 }
0x12ea   :  { %v2917_v14 = vadd.f32 %v2916_v12, %v2645_v51  ;;  %v2930_v53 = vpop.f32.mrf.mxu3  ;;  %3365 = vmatmul.bf16.vlgmr.msrb.gmra.mxu1 %v3095_v8  ;;  %3448 = vmatpush.bf16.xpose.msrb.mxu3 %v4143_v0  ;;  %v2650_v51 = vperm.slane %v5232_v19, 2 }
0x12eb   :  { %v2931_v32 = vadd.f32 %v2930_v53, %v2646_v47  ;;  %3407 = vmatmul.bf16.vlgmr.msra.gmra.mxu0 %v3098_v11  ;;  %v2956_v22 = vpop.f32.mrf.mxu1  ;;  %3475 = vmatpush.bf16.xpose.msrb.mxu1 %v4215_v6  ;;  %v4159_v47 = vor.u32 %v4343_v57, %v4158_v48  ;;  %v2652_v53 = vperm.slane %v5232_v19, 4 }
0x12ec   :  { %v3080_v24 = vmax.f32 %v2917_v14, 0.0  ;;  %v2998_v25 = vpop.f32.mrf.mxu0  ;;  %3517 = vmatpush.bf16.xpose.msra.mxu0 %v4227_v9  ;;  %v2957_v10 = vadd.f32 %v2956_v22, %v2648_v37 }
0x12ed   :  { %v3081_v31 = vmax.f32 %v2931_v32, 0.0  ;;  %v2999_v27 = vadd.f32 %v2998_v25, %v2651_v41 }
0x12ee   :  { %v3096_v62 = vpack.c.bf16 %v3080_v24, %v3064_v23  ;;  %v3067_v55 = vmax.f32 %v2957_v10, 0.0  ;;  %v2653_v24 = vperm.slane %v5232_v19, 5 }
0x12ef   :  { %v3097_v40 = vpack.c.bf16 %v3081_v31, %v3065_v30  ;;  %v3070_v18 = vmax.f32 %v2999_v27, 0.0 }
0x12f0   :  { %3379 = vmatmul.bf16.vlgmr.msrb.gmra.mxu2 %v3096_v62 }
0x12f1   :  { %3393 = vmatmul.bf16.vlgmr.msra.gmra.mxu3 %v3097_v40  ;;  %v2970_v45 = vpop.f32.mrf.mxu2  ;;  %3489 = vmatpush.bf16.xpose.msrb.mxu2 %v4219_v33 }
0x12f2   :  { %v2984_v46 = vpop.f32.mrf.mxu3  ;;  %3503 = vmatpush.bf16.xpose.msra.mxu3 %v4223_v38  ;;  %v2971_v59 = vadd.f32 %v2970_v45, %v2649_v52 }
0x12f3   :  { %v2958_v15 = vpop.f32.mrf.mxu1  ;;  %3476 = vmatpush.bf16.xpose.msrb.mxu1 %v4151_v42  ;;  %v2985_v61 = vadd.f32 %v2984_v46, %v2650_v51 }
0x12f4   :  { %v2959_v20 = vadd.f32 %v2958_v15, %v2648_v37  ;;  %v3000_v26 = vpop.f32.mrf.mxu0  ;;  %3518 = vmatpush.bf16.xpose.msra.mxu0 %v4163_v44  ;;  %v3068_v8 = vmax.f32 %v2971_v59, 0.0 }
0x12f5   :  { %v3001_v34 = vadd.f32 %v3000_v26, %v2651_v41  ;;  %v3069_v11 = vmax.f32 %v2985_v61, 0.0  ;;  %v3140_v26 = vperm.slane %v5151_v3, 3 }
0x12f6   :  { %v3083_v56 = vmax.f32 %v2959_v20, 0.0 }
0x12f7   :  { %v3086_v58 = vmax.f32 %v3001_v34, 0.0 }
0x12f8   :  { %v3099_v49 = vpack.c.bf16 %v3083_v56, %v3067_v55 }
0x12f9   :  { %v3102_v63 = vpack.c.bf16 %v3086_v58, %v3070_v18  ;;  %v2972_v0 = vpop.f32.mrf.mxu2  ;;  %3490 = vmatpush.bf16.xpose.msrb.mxu2 %v4155_v21 }
0x12fa   :  { %v2973_v39 = vadd.f32 %v2972_v0, %v2649_v52  ;;  %v2986_v5 = vpop.f32.mrf.mxu3  ;;  %3421 = vmatmul.bf16.vlgmr.msra.gmra.mxu1 %v3099_v49  ;;  %3504 = vmatpush.bf16.xpose.msra.mxu3 %v4159_v47 }
0x12fb   :  { %v2987_v6 = vadd.f32 %v2986_v5, %v2650_v51  ;;  %3463 = vmatmul.bf16.vlgmr.msrb.gmra.mxu0 %v3102_v63  ;;  %v3012_v7 = vpop.f32.mrf.mxu1 }
0x12fc   :  { %v3084_v9 = vmax.f32 %v2973_v39, 0.0  ;;  %v3054_v43 = vpop.f32.mrf.mxu0  ;;  %v3013_v22 = vadd.f32 %v3012_v7, %v2652_v53 }
0x12fd   :  { %v3085_v12 = vmax.f32 %v2987_v6, 0.0  ;;  %v3055_v54 = vadd.f32 %v3054_v43, %v2655_v60 }
0x12fe   :  { %v3100_v14 = vpack.c.bf16 %v3084_v9, %v3068_v8  ;;  %v3071_v31 = vmax.f32 %v3013_v22, 0.0 }
0x12ff   :  { %v3101_v50 = vpack.c.bf16 %v3085_v12, %v3069_v11  ;;  %v3074_v1 = vmax.f32 %v3055_v54, 0.0 }
0x1300   :  { %3435 = vmatmul.bf16.vlgmr.msra.gmra.mxu2 %v3100_v14 }
0x1301   :  { %3449 = vmatmul.bf16.vlgmr.msrb.gmra.mxu3 %v3101_v50  ;;  %v3026_v32 = vpop.f32.mrf.mxu2 }
0x1302   :  { %v3040_v36 = vpop.f32.mrf.mxu3  ;;  %v3027_v62 = vadd.f32 %v3026_v32, %v2653_v24 }
0x1303   :  { %v3014_v23 = vpop.f32.mrf.mxu1  ;;  %v3041_v38 = vadd.f32 %v3040_v36, %v2654_v29 }
0x1304   :  { %v3015_v25 = vadd.f32 %v3014_v23, %v2652_v53  ;;  %v3056_v28 = vpop.f32.mrf.mxu0  ;;  %v3072_v10 = vmax.f32 %v3027_v62, 0.0 }
0x1305   :  { %v3057_v30 = vadd.f32 %v3056_v28, %v2655_v60  ;;  %v3073_v13 = vmax.f32 %v3041_v38, 0.0 }
0x1306   :  { %v3087_v33 = vmax.f32 %v3015_v25, 0.0 }
0x1307   :  { %v3090_v35 = vmax.f32 %v3057_v30, 0.0 }
0x1308   :  { %v3103_v37 = vpack.c.bf16 %v3087_v33, %v3071_v31 }
0x1309   :  { %v3106_v40 = vpack.c.bf16 %v3090_v35, %v3074_v1  ;;  %v3028_v41 = vpop.f32.mrf.mxu2 }
0x130a   :  { %v3029_v42 = vadd.f32 %v3028_v41, %v2653_v24  ;;  %v3042_v44 = vpop.f32.mrf.mxu3  ;;  %3477 = vmatmul.bf16.vlgmr.msrb.gmra.mxu1 %v3103_v37 }
0x130b   :  { %v3043_v45 = vadd.f32 %v3042_v44, %v2654_v29  ;;  %3519 = vmatmul.bf16.vlgmr.msra.gmra.mxu0 %v3106_v40 }
0x130c   :  { %v3088_v46 = vmax.f32 %v3029_v42, 0.0 }
0x130d   :  { %v3089_v4 = vmax.f32 %v3043_v45, 0.0 }
0x130e   :  { %v3104_v19 = vpack.c.bf16 %v3088_v46, %v3072_v10 }
0x130f   :  { %v3105_v27 = vpack.c.bf16 %v3089_v4, %v3073_v13 }
0x1310   :  { %3491 = vmatmul.bf16.vlgmr.msrb.gmra.mxu2 %v3104_v19 }
0x1311   :  { %3505 = vmatmul.bf16.vlgmr.msra.gmra.mxu3 %v3105_v27 }
0x1357   :  { %v3310_v15 = vpop.f32.mrf.mxu1 }
0x1358   :  { %v3352_v48 = vpop.f32.mrf.mxu0  ;;  %v3311_v21 = vadd.f32 %v3310_v15, %v3140_v26 }
0x135f   :  { %v3312_v57 = vpop.f32.mrf.mxu1 }
0x1360   :  { %v3354_v52 = vpop.f32.mrf.mxu0  ;;  %v3313_v59 = vadd.f32 %v3312_v57, %v3140_v26 }
0x1363   :  { %v3324_v20 = vpop.f32.mrf.mxu2 }
0x1364   :  { %v3338_v51 = vpop.f32.mrf.mxu3  ;;  %v3325_v55 = vadd.f32 %v3324_v20, %v3311_v21  ;;  %v4679_v21 = vmov 1  }
0x1365   :  { %4389 = vset.pattern.permute.xlu0 %v4679_v21 }
0x1366   :  { %v3339_v58 = vadd.f32 %v3338_v51, %v3325_v55 }
0x1367   :  { %v3366_v34 = vpop.f32.mrf.mxu1 }
0x1368   :  { %v3408_v18 = vpop.f32.mrf.mxu0  ;;  %v3353_v61 = vadd.f32 %v3352_v48, %v3339_v58  ;;  %v4680_v58 = vmov 0  }
0x1369   :  { %4388 = vset.pattern.permute.xlu1 %v4680_v58  ;;  %4387 = vset.pattern.permute.xlu2 %v4680_v58 }
0x136a   :  { %v3367_v5 = vadd.f32 %v3366_v34, %v3353_v61 }
0x136b   :  { %v3326_v56 = vpop.f32.mrf.mxu2 }
0x136c   :  { %v3340_v47 = vpop.f32.mrf.mxu3  ;;  %v3327_v63 = vadd.f32 %v3326_v56, %v3313_v59 }
0x136e   :  { %v3341_v6 = vadd.f32 %v3340_v47, %v3327_v63 }
0x136f   :  { %v3368_v49 = vpop.f32.mrf.mxu1 }
0x1370   :  { %v3410_v7 = vpop.f32.mrf.mxu0  ;;  %v3355_v9 = vadd.f32 %v3354_v52, %v3341_v6 }
0x1372   :  { %v3369_v14 = vadd.f32 %v3368_v49, %v3355_v9 }
0x1373   :  { %v3380_v0 = vpop.f32.mrf.mxu2 }
0x1374   :  { %v3394_v39 = vpop.f32.mrf.mxu3  ;;  %v3381_v8 = vadd.f32 %v3380_v0, %v3367_v5  ;;  %v3578_v0 = vld [vmem:[%s5275_s8 + $0x8] sm:$0xff] }
0x1376   :  { %v3395_v11 = vadd.f32 %v3394_v39, %v3381_v8 }
0x1377   :  { %v3422_v3 = vpop.f32.mrf.mxu1 }
0x1378   :  { %v3409_v53 = vadd.f32 %v3408_v18, %v3395_v11  ;;  %v3464_v60 = vpop.f32.mrf.mxu0  ;;  %v3577_v18 = vld [vmem:[%s5275_s8] sm:$0xff]  ;;  %s4681_s8 = smov [#allocation13]  }
0x1379   :  { %3581 = vperm.xlu2 %4387, %v3577_v18   ;;  %s3607_s16 = sshll.u32 %s4681_s8, 4  ;;  %s3608_s16 = int_to_ptr.vmem [resolvable:$true] %s3607_s16 }
0x137a   :  { %v3423_v22 = vadd.f32 %v3422_v3, %v3409_v53 }
0x137b   :  { %v3382_v43 = vpop.f32.mrf.mxu2 }
0x137c   :  { %v3396_v12 = vpop.f32.mrf.mxu3  ;;  %v3383_v50 = vadd.f32 %v3382_v43, %v3369_v14 }
0x137e   :  { %v3397_v36 = vadd.f32 %v3396_v12, %v3383_v50 }
0x137f   :  { %v3424_v23 = vpop.f32.mrf.mxu1 }
0x1380   :  { %v3411_v25 = vadd.f32 %v3410_v7, %v3397_v36  ;;  %v3466_v29 = vpop.f32.mrf.mxu0 }
0x1381   :  { %4390 = vset.pattern.permute.xlu2 %v4679_v21 }
0x1382   :  { %v3425_v31 = vadd.f32 %v3424_v23, %v3411_v25  ;;  %3596 = vperm.xlu2 %4390, %v3578_v0  }
0x1383   :  { %v3436_v32 = vpop.f32.mrf.mxu2 }
0x1384   :  { %v3450_v54 = vpop.f32.mrf.mxu3  ;;  %v3437_v24 = vadd.f32 %v3436_v32, %v3423_v22  ;;  %v4476_v22 = vld [vmem:[#allocation11 + $0x8] sm:$0xff] }
0x1385   :  { %v3571_v36 = vperm.slane %v4476_v22, 4 }
0x1386   :  { %v3451_v28 = vadd.f32 %v3450_v54, %v3437_v24  ;;  %v3574_v24 = vperm.slane %v4476_v22, 5 }
0x1387   :  { %v3478_v62 = vpop.f32.mrf.mxu1 }
0x1388   :  { %v3465_v1 = vadd.f32 %v3464_v60, %v3451_v28  ;;  %v3520_v44 = vpop.f32.mrf.mxu0 }
0x138a   :  { %v3479_v37 = vadd.f32 %v3478_v62, %v3465_v1 }
0x138b   :  { %v3438_v30 = vpop.f32.mrf.mxu2 }
0x138c   :  { %v3452_v33 = vpop.f32.mrf.mxu3  ;;  %v3439_v35 = vadd.f32 %v3438_v30, %v3425_v31 }
0x138e   :  { %v3453_v38 = vadd.f32 %v3452_v33, %v3439_v35 }
0x138f   :  { %v3480_v13 = vpop.f32.mrf.mxu1 }
0x1390   :  { %v3467_v45 = vadd.f32 %v3466_v29, %v3453_v38  ;;  %v3522_v20 = vpop.f32.mrf.mxu0 }
0x1392   :  { %v3481_v4 = vadd.f32 %v3480_v13, %v3467_v45 }
0x1393   :  { %v3492_v40 = vpop.f32.mrf.mxu2 }
0x1394   :  { %v3493_v41 = vadd.f32 %v3492_v40, %v3479_v37  ;;  %v3506_v42 = vpop.f32.mrf.mxu3 }
0x1396   :  { %v3507_v10 = vadd.f32 %v3506_v42, %v3493_v41 }
0x1398   :  { %v3521_v46 = vadd.f32 %v3520_v44, %v3507_v10 }
0x139a   :  { %v3525_v19 = vadd.f32 %v3521_v46, %v5182_v16 }
0x139b   :  { %v3494_v27 = vpop.f32.mrf.mxu2 }
0x139c   :  { %v3495_v15 = vadd.f32 %v3494_v27, %v3481_v4  ;;  %v3527_v48 = vsel %vm152_vm0, %v3525_v19, 0.0  ;;  %v3508_v57 = vpop.f32.mrf.mxu3 }
0x139d   :  { %3528 = vadd.xlane.f32.xlu0 %v3527_v48 }
0x139e   :  { %v3509_v52 = vadd.f32 %v3508_v57, %v3495_v15 }
0x13a0   :  { %v3523_v26 = vadd.f32 %v3522_v20, %v3509_v52 }
0x13a2   :  { %v3526_v51 = vadd.f32 %v3523_v26, %v5184_v17 }
0x13a4   :  { %v3530_v34 = vsel %vm152_vm0, %v3526_v51, 0.0 }
0x13a5   :  { %3531 = vadd.xlane.f32.xlu0 %v3530_v34 }
0x13d3   :  { %v3582_v30 = vpop.permute.xlu2 %3581 }
0x13dc   :  { %v3597_v44 = vpop.permute.xlu2 %3596 }
0x1410   :  { %v3529_v55 = vpop.xlane.xlu0 %3528 }
0x1411   :  { %v3533_v56 = vmul.f32 %v3529_v55, %v4911_v2 }
0x1413   :  { %v3535_v16 = vsub.f32 %v3525_v19, %v3533_v56 }
0x1415   :  { %v3537_v47 = vmul.f32 %v3535_v16, %v3535_v16 }
0x1417   :  { %v3539_v17 = vsel %vm152_vm0, %v3537_v47, 0.0 }
0x1418   :  { %3540 = vadd.xlane.f32.xlu1 %v3539_v17  ;;  %v3532_v59 = vpop.xlane.xlu0 %3531 }
0x1419   :  { %v3534_v49 = vmul.f32 %v3532_v59, %v4911_v2 }
0x141b   :  { %v3536_v61 = vsub.f32 %v3526_v51, %v3534_v49 }
0x141d   :  { %v3538_v63 = vmul.f32 %v3536_v61, %v3536_v61 }
0x141f   :  { %v3542_v39 = vsel %vm152_vm0, %v3538_v63, 0.0 }
0x1420   :  { %3543 = vadd.xlane.f32.xlu0 %v3542_v39 }
0x1431   :  { %3586 = vperm.xlu1 %4388, %v3578_v0  }
0x1434   :  { %3592 = vperm.xlu0 %4389, %v3577_v18  }
0x148b   :  { %v3541_v5 = vpop.xlane.xlu1 %3540 }
0x148c   :  { %v3545_v6 = vmul.f32 %v3541_v5, %v4911_v2 }
0x148e   :  { %v3547_v7 = vadd.f32 1e-05, %v3545_v6 }
0x1490   :  { %4471 = vrsqrt.f32 %v3547_v7  ;;  %vm3555_vm7 = vweird.f32 %v3547_v7 }
0x1493   :  { %v3544_v8 = vpop.xlane.xlu0 %3543 }
0x1494   :  { %v3546_v9 = vmul.f32 %v3544_v8, %v4911_v2 }
0x1496   :  { %v4472_v3 = vpop.eup %4471  ;;  %v3548_v43 = vadd.f32 1e-05, %v3546_v9 }
0x1497   :  { %v3550_v11 = vmul.f32 %v4472_v3, %v3547_v7  ;;  %vm3556_vm6 = vweird.f32 %v4472_v3 }
0x1498   :  { %4473 = vrsqrt.f32 %v3548_v43  ;;  %vm3557_vm8 = vmor %vm3555_vm7, %vm3556_vm6  ;;  %vm3565_vm10 = vweird.f32 %v3548_v43 }
0x1499   :  { %v3551_v12 = vmul.f32 %v4472_v3, %v3550_v11 }
0x149b   :  { %v3552_v14 = vmul.f32 0.5, %v3551_v12 }
0x149d   :  { %v3553_v53 = vsub.f32 1.5, %v3552_v14 }
0x149e   :  { %v4474_v50 = vpop.eup %4473 }
0x149f   :  { %v3554_v60 = vmul.f32 %v4472_v3, %v3553_v53  ;;  %v3560_v32 = vmul.f32 %v4474_v50, %v3548_v43  ;;  %vm3566_vm9 = vweird.f32 %v4474_v50 }
0x14a0   :  { %vm3567_vm11 = vmor %vm3565_vm10, %vm3566_vm9 }
0x14a1   :  { %v3561_v54 = vmul.f32 %v4474_v50, %v3560_v32  ;;  %v3558_v23 = vsel %vm3557_vm8, %v4472_v3, %v3554_v60 }
0x14a2   :  { %v3569_v25 = vmul.f32 %v3558_v23, %v3535_v16 }
0x14a3   :  { %v3562_v2 = vmul.f32 0.5, %v3561_v54  ;;  %v3587_v41 = vpop.permute.xlu1 %3586 }
0x14a4   :  { %v3572_v28 = vmul.f32 %v3571_v36, %v3569_v25 }
0x14a5   :  { %v3563_v29 = vsub.f32 1.5, %v3562_v2 }
0x14a6   :  { %v3575_v31 = vadd.f32 %v3574_v24, %v3572_v28  ;;  %v3593_v1 = vpop.permute.xlu0 %3592 }
0x14a7   :  { %v3564_v33 = vmul.f32 %v4474_v50, %v3563_v29 }
0x14a8   :  { %v3589_v35 = vmul.f32 %v3582_v30, %v3575_v31 }
0x14a9   :  { %v3568_v62 = vsel %vm3567_vm11, %v4474_v50, %v3564_v33 }
0x14aa   :  { %v3599_v37 = vadd.f32 %v3593_v1, %v3589_v35  ;;  %v3570_v38 = vmul.f32 %v3568_v62, %v3536_v61 }
0x14ac   :  { %3601 = vst.msk [vmem:[#allocation13] sm:$0xff] %vm152_vm0, %v3599_v37  ;;  %v3573_v40 = vmul.f32 %v3571_v36, %v3570_v38 }
0x14ae   :  { %v3576_v42 = vadd.f32 %v3574_v24, %v3573_v40 }
0x14b0   :  { %v3590_v45 = vmul.f32 %v3587_v41, %v3576_v42 }
0x14b2   :  { %v3600_v10 = vadd.f32 %v3597_v44, %v3590_v45 }
0x14b4   :  { %3602 = vst.msk [vmem:[#allocation13 + $0x8] sm:$0xff] %vm152_vm0, %v3600_v10 }
0x14b5   :  { %3615 = dma.vmem_to_hbm [thread:$0]  %s3608_s16, 256, %s3610_s18, [#allocation4], %s4666_s6, %s4666_s6, %s4667_s20  }
0x14b6   :  { %4653 = dma.done.wait [#allocation4], 256  }
0x14b7   :  { %4654 = vsyncadd [#allocation4], 4294967040 }
0x14b8   :  { %3620 = vsyncpa [#allocation3], 1 }
0x14b9   :  { %3621 = vsyncpa [#allocation6], 1 }
0x14ba   :  { %3622 = vsyncpa [#allocation9], 1 }
0x14bb   :  { %3623 = vsyncpa [#allocation12], 1 }
0x14bc   :  { %3624 = vsyncpa [#allocation4], 1 }

</bundles_post_ra>
